<compile_context>
chip_gen: v7x
topology: tpu7x:2x2x1
jax: 0.10.0
libtpu: 0.0.40
codegen_flags: <defaults>
</compile_context>

<pallas_src>
import functools

import jax
import jax.numpy as jnp
import numpy as np
from jax.experimental import pallas as pl
from jax.experimental.pallas import tpu as pltpu

N_BINS = 15
_BOUNDARIES = np.linspace(0.0, 1.0, N_BINS + 1).astype(np.float32)
BIN_LOWERS = tuple(float(v) for v in _BOUNDARIES[:-1])
BIN_UPPERS = tuple(float(v) for v in _BOUNDARIES[1:])


def _round_up(x, m):
    return ((x + m - 1) // m) * m


def _choose_tn(n, c, dtype_bytes):
    """Row-tile size: ~4 MiB of logits per block, clamped, multiple of 8."""
    budget = 4 * 1024 * 1024
    tn = budget // max(1, c * dtype_bytes)
    tn = max(512, min(8192, tn))
    tn = min(tn, _round_up(n, 8))   # never larger than the (8-rounded) array
    return _round_up(tn, 8)


def _ece_kernel(logits_ref, labels_ref, out_ref, *, n_total, tn):
    i = pl.program_id(0)

    logits = logits_ref[...].astype(jnp.float32)              # (tn, C)
    _, c = logits.shape

    # Valid-row mask for the ragged tail of the last block.
    row_ids = i * tn + jax.lax.broadcasted_iota(jnp.int32, (tn, 1), 0)
    valid = row_ids < n_total                                 # (tn, 1) bool

    # Zero garbage tail rows so max/exp stay finite (NaN*0 would poison sums).
    logits = jnp.where(valid, logits, 0.0)

    # conf = max softmax prob = 1 / sum(exp(l - row_max)); probs never built.
    row_max = jnp.max(logits, axis=1, keepdims=True)          # (tn, 1)
    denom = jnp.sum(jnp.exp(logits - row_max), axis=1, keepdims=True)
    conf = 1.0 / denom                                        # exact divide

    # Prediction: first argmax index on the raw logits (softmax is monotone).
    col = jax.lax.broadcasted_iota(jnp.int32, logits.shape, 1)
    is_max = logits >= row_max
    pred = jnp.min(jnp.where(is_max, col, jnp.int32(c)), axis=1, keepdims=True)

    labels = labels_ref[...]                                  # (tn, 1) int32
    acc = (pred == labels).astype(jnp.float32)                # (tn, 1)

    # Uniform-bin one-hot membership: bin k <=> conf in (k/NB, (k+1)/NB].
    bin_idx = jnp.clip(
        jnp.ceil(conf * jnp.float32(N_BINS)).astype(jnp.int32) - 1, 0, N_BINS - 1
    )                                                         # (tn, 1)
    bins = jax.lax.broadcasted_iota(jnp.int32, (tn, N_BINS), 1)
    in_bin = jnp.logical_and(bin_idx == bins, valid).astype(jnp.float32)

    # Per-block partial stats -> independent output block (no carried state).
    out_ref[0, 0:1, :] = jnp.sum(in_bin, axis=0, keepdims=True)         # counts
    out_ref[0, 1:2, :] = jnp.sum(in_bin * conf, axis=0, keepdims=True)  # sum conf
    out_ref[0, 2:3, :] = jnp.sum(in_bin * acc, axis=0, keepdims=True)   # sum acc


def ece_loss(logits, labels, *, tn=None):
    """logits: (N, C) float (f32 or bf16), labels: (N,) int -> (1,) f32 ECE."""
    n, c = logits.shape
    dtype_bytes = jnp.dtype(logits.dtype).itemsize
    if tn is None:
        tn = _choose_tn(n, c, dtype_bytes)
    else:
        tn = _round_up(min(tn, _round_up(n, 8)), 8)
    num_blocks = (n + tn - 1) // tn

    labels2d = labels.reshape(n, 1).astype(jnp.int32)

    kernel = functools.partial(_ece_kernel, n_total=n, tn=tn)
    partials = pl.pallas_call(
        kernel,
        out_shape=jax.ShapeDtypeStruct((num_blocks, 3, N_BINS), jnp.float32),
        grid=(num_blocks,),
        in_specs=[
            pl.BlockSpec((tn, c), lambda i: (i, 0)),
            pl.BlockSpec((tn, 1), lambda i: (i, 0)),
        ],
        out_specs=pl.BlockSpec((1, 3, N_BINS), lambda i: (i, 0, 0)),
        compiler_params=pltpu.CompilerParams(
            dimension_semantics=("parallel",),
        ),
    )(logits, labels2d)

    # Tiny epilogue in plain JAX: reduce per-block partials and normalize.
    stats = jnp.sum(partials, axis=0)                         # (3, N_BINS)
    counts = stats[0]
    sconf = stats[1]
    sacc = stats[2]
    safe = jnp.maximum(counts, 1.0)
    avg_conf = sconf / safe
    avg_acc = sacc / safe
    contrib = jnp.where(
        counts > 0.0,
        jnp.abs(avg_conf - avg_acc) * (counts / jnp.float32(n)),
        jnp.float32(0.0),
    )
    return jnp.sum(contrib).reshape(1)


def _ece_reference(logits, labels):
    """Pure-JAX reference mirroring the PyTorch module."""
    probs = jax.nn.softmax(logits.astype(jnp.float32), axis=1)
    conf = jnp.max(probs, axis=1)
    pred = jnp.argmax(probs, axis=1)
    acc = (pred == labels).astype(jnp.float32)
    n = conf.shape[0]
    ece = jnp.float32(0.0)
    for lo, up in zip(BIN_LOWERS, BIN_UPPERS):
        in_bin = jnp.logical_and(conf > lo, conf <= up).astype(jnp.float32)
        count = jnp.sum(in_bin)
        safe = jnp.maximum(count, 1.0)
        avg_c = jnp.sum(conf * in_bin) / safe
        avg_a = jnp.sum(acc * in_bin) / safe
        ece = ece + jnp.where(count > 0, jnp.abs(avg_c - avg_a) * (count / n), 0.0)
    return ece.reshape(1)


if __name__ == "__main__":
    key = jax.random.PRNGKey(0)
    k1, k2 = jax.random.split(key)
    # N deliberately not a multiple of 8 / of the tile to exercise the ragged
    # last block, the valid mask, and multi-block partial accumulation.
    N, C = 300, 16
    logits = jax.random.normal(k1, (N, C), dtype=jnp.float32) * 2.0
    labels = jax.random.randint(k2, (N,), 0, C, dtype=jnp.int32)

    ref = jax.block_until_ready(_ece_reference(logits, labels))

    # Auto tile size (single ragged block for this small N).
    ece = jax.block_until_ready(ece_loss(logits, labels))
    assert ece.shape == (1,)
    np.testing.assert_allclose(np.asarray(ece), np.asarray(ref), rtol=1e-5, atol=5e-6)

    # Forced small tile: multi-block grid + ragged tail + parallel axis.
    ece_mb = jax.block_until_ready(ece_loss(logits, labels, tn=128))
    np.testing.assert_allclose(np.asarray(ece_mb), np.asarray(ref), rtol=1e-5, atol=5e-6)

    print("KERNEL_OK")
</pallas_src>

<mosaic_0001>
module attributes {stable_mosaic.version = 11 : i64} {
  func.func @_ece_kernel(%arg0: i32, %arg1: memref<304x16xf32, #tpu.memory_space<vmem>>, %arg2: memref<304x1xi32, #tpu.memory_space<vmem>>, %arg3: memref<1x3x15xf32, #tpu.memory_space<vmem>>) attributes {dimension_semantics = [#tpu.dimension_semantics<parallel>], iteration_bounds = array<i64: 1>, scalar_prefetch = 0 : i64, scratch_operands = 0 : i64, tpu.core_type = #tpu.core_type<tc>, window_params = [{transform_indices = @transform_0, window_bounds = array<i64: 304, 16>}, {transform_indices = @transform_1, window_bounds = array<i64: 304, 1>}, {transform_indices = @transform_2, window_bounds = array<i64: 1, 3, 15>}]} {
    %c0 = arith.constant 0 : index
    %c0_0 = arith.constant 0 : index
    %0 = vector.load %arg1[%c0, %c0_0] : memref<304x16xf32, #tpu.memory_space<vmem>>, vector<304x16xf32>
    %c304_i32 = arith.constant 304 : i32
    %1 = arith.muli %arg0, %c304_i32 : i32
    %2 = tpu.iota {dimensions = array<i32: 0>} : vector<304x1xi32>
    %3 = vector.broadcast %1 : i32 to vector<304x1xi32>
    %4 = arith.addi %3, %2 : vector<304x1xi32>
    %c300_i32 = arith.constant 300 : i32
    %5 = vector.broadcast %c300_i32 : i32 to vector<304x1xi32>
    %6 = arith.cmpi slt, %4, %5 : vector<304x1xi32>
    %cst = arith.constant 0.000000e+00 : f32
    %7 = vector.shape_cast %6 : vector<304x1xi1> to vector<304x1xi1>
    %8 = vector.broadcast %7 : vector<304x1xi1> to vector<304x16xi1>
    %9 = vector.broadcast %cst : f32 to vector<304x16xf32>
    %10 = arith.select %8, %0, %9 : vector<304x16xi1>, vector<304x16xf32>
    %cst_1 = arith.constant dense<0xFF800000> : vector<304xf32>
    %11 = vector.multi_reduction <maximumf>, %10, %cst_1 [1] : vector<304x16xf32> to vector<304xf32>
    %12 = vector.shape_cast %11 : vector<304xf32> to vector<304x1xf32>
    %13 = vector.broadcast %12 : vector<304x1xf32> to vector<304x16xf32>
    %14 = arith.subf %10, %13 : vector<304x16xf32>
    %15 = math.exp %14 : vector<304x16xf32>
    %cst_2 = arith.constant dense<0.000000e+00> : vector<304xf32>
    %16 = vector.multi_reduction <add>, %15, %cst_2 [1] : vector<304x16xf32> to vector<304xf32>
    %17 = vector.shape_cast %16 : vector<304xf32> to vector<304x1xf32>
    %cst_3 = arith.constant 1.000000e+00 : f32
    %18 = vector.broadcast %cst_3 : f32 to vector<304x1xf32>
    %19 = arith.divf %18, %17 : vector<304x1xf32>
    %20 = tpu.iota {dimensions = array<i32: 1>} : vector<304x16xi32>
    %21 = vector.broadcast %12 : vector<304x1xf32> to vector<304x16xf32>
    %22 = arith.cmpf oge, %10, %21 : vector<304x16xf32>
    %c16_i32 = arith.constant 16 : i32
    %23 = vector.broadcast %c16_i32 : i32 to vector<304x16xi32>
    %24 = arith.select %22, %20, %23 : vector<304x16xi1>, vector<304x16xi32>
    %cst_4 = arith.constant dense<2147483647> : vector<304xi32>
    %25 = vector.multi_reduction <minsi>, %24, %cst_4 [1] : vector<304x16xi32> to vector<304xi32>
    %26 = vector.shape_cast %25 : vector<304xi32> to vector<304x1xi32>
    %c0_5 = arith.constant 0 : index
    %c0_6 = arith.constant 0 : index
    %27 = vector.load %arg2[%c0_5, %c0_6] : memref<304x1xi32, #tpu.memory_space<vmem>>, vector<304x1xi32>
    %28 = arith.cmpi eq, %26, %27 : vector<304x1xi32>
    %29 = arith.extui %28 : vector<304x1xi1> to vector<304x1xi32>
    %30 = arith.sitofp %29 : vector<304x1xi32> to vector<304x1xf32>
    %cst_7 = arith.constant 1.500000e+01 : f32
    %31 = vector.broadcast %cst_7 : f32 to vector<304x1xf32>
    %32 = arith.mulf %19, %31 : vector<304x1xf32>
    %33 = math.ceil %32 : vector<304x1xf32>
    %34 = arith.fptosi %33 : vector<304x1xf32> to vector<304x1xi32>
    %c1_i32 = arith.constant 1 : i32
    %35 = vector.broadcast %c1_i32 : i32 to vector<304x1xi32>
    %36 = arith.subi %34, %35 : vector<304x1xi32>
    %c0_i32 = arith.constant 0 : i32
    %c14_i32 = arith.constant 14 : i32
    %37 = vector.broadcast %c0_i32 : i32 to vector<304x1xi32>
    %38 = arith.maxsi %37, %36 : vector<304x1xi32>
    %39 = vector.broadcast %c14_i32 : i32 to vector<304x1xi32>
    %40 = arith.minsi %39, %38 : vector<304x1xi32>
    %41 = tpu.iota {dimensions = array<i32: 1>} : vector<304x15xi32>
    %42 = vector.broadcast %40 : vector<304x1xi32> to vector<304x15xi32>
    %43 = arith.cmpi eq, %42, %41 : vector<304x15xi32>
    %44 = vector.broadcast %6 : vector<304x1xi1> to vector<304x15xi1>
    %45 = arith.andi %43, %44 : vector<304x15xi1>
    %46 = arith.extui %45 : vector<304x15xi1> to vector<304x15xi32>
    %47 = arith.sitofp %46 : vector<304x15xi32> to vector<304x15xf32>
    %cst_8 = arith.constant dense<0.000000e+00> : vector<15xf32>
    %48 = vector.multi_reduction <add>, %47, %cst_8 [0] : vector<304x15xf32> to vector<15xf32>
    %49 = vector.shape_cast %48 : vector<15xf32> to vector<1x15xf32>
    %c0_9 = arith.constant 0 : index
    %c0_10 = arith.constant 0 : index
    %c0_11 = arith.constant 0 : index
    %50 = vector.load %arg3[%c0_9, %c0_10, %c0_11] : memref<1x3x15xf32, #tpu.memory_space<vmem>>, vector<1x1x15xf32>
    %51 = vector.shape_cast %50 : vector<1x1x15xf32> to vector<1x15xf32>
    %52 = vector.shape_cast %49 : vector<1x15xf32> to vector<1x1x15xf32>
    tpu.vector_store %arg3[%c0_9, %c0_10, %c0_11], %52 {strides = array<i32>} : memref<1x3x15xf32, #tpu.memory_space<vmem>>, vector<1x1x15xf32>,
    %53 = vector.broadcast %19 : vector<304x1xf32> to vector<304x15xf32>
    %54 = arith.mulf %47, %53 : vector<304x15xf32>
    %cst_12 = arith.constant dense<0.000000e+00> : vector<15xf32>
    %55 = vector.multi_reduction <add>, %54, %cst_12 [0] : vector<304x15xf32> to vector<15xf32>
    %56 = vector.shape_cast %55 : vector<15xf32> to vector<1x15xf32>
    %c0_13 = arith.constant 0 : index
    %c1 = arith.constant 1 : index
    %c0_14 = arith.constant 0 : index
    %57 = vector.load %arg3[%c0_13, %c1, %c0_14] : memref<1x3x15xf32, #tpu.memory_space<vmem>>, vector<1x1x15xf32>
    %58 = vector.shape_cast %57 : vector<1x1x15xf32> to vector<1x15xf32>
    %59 = vector.shape_cast %56 : vector<1x15xf32> to vector<1x1x15xf32>
    tpu.vector_store %arg3[%c0_13, %c1, %c0_14], %59 {strides = array<i32>} : memref<1x3x15xf32, #tpu.memory_space<vmem>>, vector<1x1x15xf32>,
    %60 = vector.broadcast %30 : vector<304x1xf32> to vector<304x15xf32>
    %61 = arith.mulf %47, %60 : vector<304x15xf32>
    %cst_15 = arith.constant dense<0.000000e+00> : vector<15xf32>
    %62 = vector.multi_reduction <add>, %61, %cst_15 [0] : vector<304x15xf32> to vector<15xf32>
    %63 = vector.shape_cast %62 : vector<15xf32> to vector<1x15xf32>
    %c0_16 = arith.constant 0 : index
    %c2 = arith.constant 2 : index
    %c0_17 = arith.constant 0 : index
    %64 = vector.load %arg3[%c0_16, %c2, %c0_17] : memref<1x3x15xf32, #tpu.memory_space<vmem>>, vector<1x1x15xf32>
    %65 = vector.shape_cast %64 : vector<1x1x15xf32> to vector<1x15xf32>
    %66 = vector.shape_cast %63 : vector<1x15xf32> to vector<1x1x15xf32>
    tpu.vector_store %arg3[%c0_16, %c2, %c0_17], %66 {strides = array<i32>} : memref<1x3x15xf32, #tpu.memory_space<vmem>>, vector<1x1x15xf32>,
    return
  }
  func.func @transform_0(%arg0: i32) -> (i32, i32) {
    %c0_i32 = arith.constant 0 : i32
    %c0_i32_0 = arith.constant 0 : i32
    return %arg0, %c0_i32 : i32, i32
  }
  func.func @transform_1(%arg0: i32) -> (i32, i32) {
    %c0_i32 = arith.constant 0 : i32
    %c0_i32_0 = arith.constant 0 : i32
    return %arg0, %c0_i32 : i32, i32
  }
  func.func @transform_2(%arg0: i32) -> (i32, i32, i32) {
    %c0_i32 = arith.constant 0 : i32
    %c0_i32_0 = arith.constant 0 : i32
    %c0_i32_1 = arith.constant 0 : i32
    return %arg0, %c0_i32, %c0_i32_0 : i32, i32, i32
  }
}

</mosaic_0001>

<bundles_post_ra>
// kernel: tpu_custom_call.1
= control target key start
LH: loop header
LB: loop body
LE: loop exit
PB: predicated region body
PF: predicated region fallthrough
CT: control target
= control target key end

     0   :  { %vm280_vm0 = vcmask 130048   ;;  %v50_v58 = vlaneseq  ;;  %s4934_s0 = inlined_call_operand.vmem [shape: f32[300,16], index: 0, kind: input, shape index: {}]   ;;  %s4935_s1 = inlined_call_operand.vmem [shape: s32[300,1], index: 1, kind: input, shape index: {}]   ;;  %s4936_s2 = inlined_call_operand.vmem [shape: f32[1,3,15], index: 2, kind: output, shape index: {}]  }
   0x1   :  { %v2844_v0 = vld [vmem:[%s4934_s0] sm:$0xff]  ;;  %v2849_v1 = vld [vmem:[%s4934_s0 + $0x10] sm:$0xff]  ;;  %v2854_v2 = vld [vmem:[%s4934_s0 + $0x8] sm:$0xff] }
   0x2   :  { %v281_v3 = vsel %vm280_vm0, %v2844_v0, -inf  ;;  %v287_v4 = vsel %vm280_vm0, %v2849_v1, -inf  ;;  %v2863_v5 = vld [vmem:[%s4934_s0 + $0x18] sm:$0xff]  ;;  %v284_v6 = vsel %vm280_vm0, %v2854_v2, -inf  ;;  %v2872_v8 = vld [vmem:[%s4934_s0 + $0x20] sm:$0xff]  ;;  %v2877_v9 = vld [vmem:[%s4934_s0 + $0x28] sm:$0xff] }
   0x3   :  { %282 = vmax.xlane.f32.xlu0 %v281_v3  ;;  %288 = vmax.xlane.f32.xlu1 %v287_v4  ;;  %v290_v7 = vsel %vm280_vm0, %v2863_v5, -inf  ;;  %v293_v10 = vsel %vm280_vm0, %v2872_v8, -inf  ;;  %v296_v11 = vsel %vm280_vm0, %v2877_v9, -inf  ;;  %v2886_v12 = vld [vmem:[%s4934_s0 + $0x30] sm:$0xff]  ;;  %v2891_v13 = vld [vmem:[%s4934_s0 + $0x38] sm:$0xff]  ;;  %v2900_v16 = vld [vmem:[%s4934_s0 + $0x40] sm:$0xff] }
   0x4   :  { %v299_v14 = vsel %vm280_vm0, %v2886_v12, -inf  ;;  %v302_v15 = vsel %vm280_vm0, %v2891_v13, -inf  ;;  %v2905_v17 = vld [vmem:[%s4934_s0 + $0x48] sm:$0xff]  ;;  %v305_v18 = vsel %vm280_vm0, %v2900_v16, -inf  ;;  %v2914_v20 = vld [vmem:[%s4934_s0 + $0x50] sm:$0xff]  ;;  %v2919_v21 = vld [vmem:[%s4934_s0 + $0x58] sm:$0xff] }
   0x5   :  { %v308_v19 = vsel %vm280_vm0, %v2905_v17, -inf  ;;  %v311_v22 = vsel %vm280_vm0, %v2914_v20, -inf  ;;  %v314_v23 = vsel %vm280_vm0, %v2919_v21, -inf  ;;  %v2928_v24 = vld [vmem:[%s4934_s0 + $0x60] sm:$0xff]  ;;  %v2933_v25 = vld [vmem:[%s4934_s0 + $0x68] sm:$0xff]  ;;  %v2942_v28 = vld [vmem:[%s4934_s0 + $0x70] sm:$0xff] }
   0x6   :  { %v317_v26 = vsel %vm280_vm0, %v2928_v24, -inf  ;;  %v320_v27 = vsel %vm280_vm0, %v2933_v25, -inf  ;;  %v2947_v29 = vld [vmem:[%s4934_s0 + $0x78] sm:$0xff]  ;;  %v323_v30 = vsel %vm280_vm0, %v2942_v28, -inf  ;;  %v2956_v32 = vld [vmem:[%s4934_s0 + $0x80] sm:$0xff]  ;;  %v2961_v33 = vld [vmem:[%s4934_s0 + $0x88] sm:$0xff] }
   0x7   :  { %285 = vmax.xlane.f32.xlu0 %v284_v6  ;;  %291 = vmax.xlane.f32.xlu1 %v290_v7  ;;  %5049 = vst [vmem:[#allocation2_spill] sm:$0xff] %v2947_v29  ;;  %v326_v31 = vsel %vm280_vm0, %v2947_v29, -inf  ;;  %5050 = vst [vmem:[#allocation3_spill] sm:$0xff] %v2961_v33  ;;  %v329_v34 = vsel %vm280_vm0, %v2956_v32, -inf  ;;  %v332_v35 = vsel %vm280_vm0, %v2961_v33, -inf  ;;  %v2970_v36 = vld [vmem:[%s4934_s0 + $0x90] sm:$0xff] }
   0x8   :  { %v2975_v37 = vld [vmem:[%s4934_s0 + $0x98] sm:$0xff]  ;;  %v335_v38 = vsel %vm280_vm0, %v2970_v36, -inf  ;;  %v2984_v40 = vld [vmem:[%s4934_s0 + $0xa0] sm:$0xff]  ;;  %v2989_v41 = vld [vmem:[%s4934_s0 + $0xa8] sm:$0xff]  ;;  %v51_v63 = vshrl.u32 %v50_v58, 7 }
   0x9   :  { %5051 = vst [vmem:[#allocation4_spill] sm:$0xff] %v2975_v37  ;;  %v338_v39 = vsel %vm280_vm0, %v2975_v37, -inf  ;;  %5052 = vst [vmem:[#allocation5_spill] sm:$0xff] %v2989_v41  ;;  %v341_v42 = vsel %vm280_vm0, %v2984_v40, -inf  ;;  %v344_v43 = vsel %vm280_vm0, %v2989_v41, -inf  ;;  %v2998_v44 = vld [vmem:[%s4934_s0 + $0xb0] sm:$0xff] }
   0xa   :  { %v3003_v45 = vld [vmem:[%s4934_s0 + $0xb8] sm:$0xff]  ;;  %v347_v46 = vsel %vm280_vm0, %v2998_v44, -inf  ;;  %v3012_v48 = vld [vmem:[%s4934_s0 + $0xc0] sm:$0xff]  ;;  %v3017_v49 = vld [vmem:[%s4934_s0 + $0xc8] sm:$0xff] }
   0xb   :  { %294 = vmax.xlane.f32.xlu0 %v293_v10  ;;  %297 = vmax.xlane.f32.xlu1 %v296_v11  ;;  %5053 = vst [vmem:[#allocation6_spill] sm:$0xff] %v3003_v45  ;;  %v350_v47 = vsel %vm280_vm0, %v3003_v45, -inf  ;;  %5054 = vst [vmem:[#allocation7_spill] sm:$0xff] %v3017_v49  ;;  %v353_v50 = vsel %vm280_vm0, %v3012_v48, -inf  ;;  %v356_v51 = vsel %vm280_vm0, %v3017_v49, -inf  ;;  %v3026_v52 = vld [vmem:[%s4934_s0 + $0xd0] sm:$0xff] }
   0xc   :  { %v3031_v53 = vld [vmem:[%s4934_s0 + $0xd8] sm:$0xff]  ;;  %v359_v54 = vsel %vm280_vm0, %v3026_v52, -inf  ;;  %v3040_v56 = vld [vmem:[%s4934_s0 + $0xe0] sm:$0xff]  ;;  %v3045_v57 = vld [vmem:[%s4934_s0 + $0xe8] sm:$0xff]  ;;  %v3075_v10 = vadd.s32 296, %v51_v63 }
   0xd   :  { %5055 = vst [vmem:[#allocation8_spill] sm:$0xff] %v3031_v53  ;;  %v362_v55 = vsel %vm280_vm0, %v3031_v53, -inf  ;;  %5056 = vst [vmem:[#allocation9_spill] sm:$0xff] %v3045_v57  ;;  %v365_v59 = vsel %vm280_vm0, %v3040_v56, -inf  ;;  %v368_v60 = vsel %vm280_vm0, %v3045_v57, -inf  ;;  %v3054_v61 = vld [vmem:[%s4934_s0 + $0xf0] sm:$0xff] }
   0xe   :  { %v3059_v62 = vld [vmem:[%s4934_s0 + $0xf8] sm:$0xff]  ;;  %v371_v3 = vsel %vm280_vm0, %v3054_v61, -inf  ;;  %v3068_v6 = vld [vmem:[%s4934_s0 + $0x100] sm:$0xff]  ;;  %v3073_v7 = vld [vmem:[%s4934_s0 + $0x108] sm:$0xff]  ;;  %5059 = vst [vmem:[#allocation12_spill] sm:$0xff] %v3075_v10  ;;  %vm165_vm1 = vcmp.lt.s32.totalorder %v3075_v10, 300 }
   0xf   :  { %300 = vmax.xlane.f32.xlu0 %v299_v14  ;;  %303 = vmax.xlane.f32.xlu1 %v302_v15  ;;  %5057 = vst [vmem:[#allocation10_spill] sm:$0xff] %v3059_v62  ;;  %v374_v4 = vsel %vm280_vm0, %v3059_v62, -inf  ;;  %5058 = vst [vmem:[#allocation11_spill] sm:$0xff] %v3073_v7  ;;  %v377_v11 = vsel %vm280_vm0, %v3068_v6, -inf  ;;  %v380_v14 = vsel %vm280_vm0, %v3073_v7, -inf  ;;  %v3084_v15 = vld [vmem:[%s4934_s0 + $0x110] sm:$0xff] }
  0x13   :  { %306 = vmax.xlane.f32.xlu0 %v305_v18  ;;  %309 = vmax.xlane.f32.xlu1 %v308_v19  ;;  %v3089_v18 = vld [vmem:[%s4934_s0 + $0x118] sm:$0xff]  ;;  %v48_v19 = vld [vmem:[%s4934_s0 + $0x128] sm:$0xff] }
  0x14   :  { %5060 = vst [vmem:[#allocation13_spill] sm:$0xff] %v3089_v18 }
  0x17   :  { %312 = vmax.xlane.f32.xlu0 %v311_v22  ;;  %315 = vmax.xlane.f32.xlu1 %v314_v23  ;;  %v383_v22 = vsel %vm280_vm0, %v3084_v15, -inf  ;;  %v386_v23 = vsel %vm280_vm0, %v3089_v18, -inf }
  0x1b   :  { %318 = vmax.xlane.f32.xlu0 %v317_v26  ;;  %321 = vmax.xlane.f32.xlu1 %v320_v27  ;;  %v3102_v26 = vld [vmem:[%s4934_s0 + $0x120] sm:$0xff]  ;;  %v3106_v27 = vsel %vm165_vm1, %v48_v19, 0.0 }
  0x1f   :  { %324 = vmax.xlane.f32.xlu0 %v323_v30  ;;  %327 = vmax.xlane.f32.xlu1 %v326_v31  ;;  %v389_v30 = vsel %vm280_vm0, %v3102_v26, -inf  ;;  %v392_v31 = vsel %vm280_vm0, %v3106_v27, -inf }
  0x23   :  { %330 = vmax.xlane.f32.xlu0 %v329_v34  ;;  %333 = vmax.xlane.f32.xlu1 %v332_v35  ;;  %v3112_v34 = vand.u32 127, %v50_v58 }
  0x27   :  { %336 = vmax.xlane.f32.xlu0 %v335_v38  ;;  %339 = vmax.xlane.f32.xlu1 %v338_v39 }
  0x2b   :  { %342 = vmax.xlane.f32.xlu0 %v341_v42  ;;  %345 = vmax.xlane.f32.xlu1 %v344_v43 }
  0x2f   :  { %348 = vmax.xlane.f32.xlu0 %v347_v46  ;;  %351 = vmax.xlane.f32.xlu1 %v350_v47 }
  0x33   :  { %354 = vmax.xlane.f32.xlu0 %v353_v50  ;;  %357 = vmax.xlane.f32.xlu1 %v356_v51 }
  0x37   :  { %360 = vmax.xlane.f32.xlu0 %v359_v54  ;;  %363 = vmax.xlane.f32.xlu1 %v362_v55 }
  0x3b   :  { %366 = vmax.xlane.f32.xlu0 %v365_v59  ;;  %369 = vmax.xlane.f32.xlu1 %v368_v60 }
  0x3f   :  { %372 = vmax.xlane.f32.xlu0 %v371_v3  ;;  %375 = vmax.xlane.f32.xlu1 %v374_v4 }
  0x43   :  { %378 = vmax.xlane.f32.xlu0 %v377_v11  ;;  %381 = vmax.xlane.f32.xlu1 %v380_v14 }
  0x47   :  { %384 = vmax.xlane.f32.xlu0 %v383_v22  ;;  %387 = vmax.xlane.f32.xlu1 %v386_v23 }
  0x4b   :  { %390 = vmax.xlane.f32.xlu0 %v389_v30  ;;  %393 = vmax.xlane.f32.xlu1 %v392_v31 }
  0x90   :  { %v283_v35 = vpop.xlane.xlu0 %282  ;;  %v289_v38 = vpop.xlane.xlu1 %288 }
  0x91   :  { %v395_v39 = vsub.f32 %v2844_v0, %v283_v35  ;;  %vm701_vm2 = vcmp.ge.f32.partialorder %v2844_v0, %v283_v35  ;;  %v397_v42 = vsub.f32 %v2849_v1, %v289_v38  ;;  %vm703_vm3 = vcmp.ge.f32.partialorder %v2849_v1, %v289_v38 }
  0x92   :  { %v739_v43 = vsel %vm701_vm2, %v3112_v34, 16  ;;  %v741_v46 = vsel %vm703_vm3, %v3112_v34, 16 }
  0x93   :  { %v433_v47 = vmul.f32 1.442695, %v395_v39  ;;  %v3121_v50 = vsel %vm280_vm0, %v739_v43, 2147483647  ;;  %v437_v51 = vmul.f32 1.442695, %v397_v42 }
  0x94   :  { %5061 = vst [vmem:[#allocation14_spill] sm:$0xff] %v3121_v50  ;;  %v286_v54 = vpop.xlane.xlu0 %285  ;;  %v3123_v55 = vpop.xlane.xlu1 %291  ;;  %v779_v58 = vshra.s32 %v3121_v50, 16  ;;  %v3131_v59 = vsel %vm280_vm0, %v741_v46, 2147483647 }
  0x95   :  { %v396_v0 = vsub.f32 %v2854_v2, %v286_v54  ;;  %vm702_vm4 = vcmp.ge.f32.partialorder %v2854_v2, %v286_v54  ;;  %v398_v1 = vsub.f32 %v2863_v5, %v3123_v55  ;;  %5062 = vst [vmem:[#allocation15_spill] sm:$0xff] %v3131_v59  ;;  %2672 = vpow2.f32 %v433_v47 }
  0x96   :  { %v3133_v60 = vcvt.s32.f32 %v779_v58  ;;  %v740_v63 = vsel %vm702_vm4, %v3112_v34, 16  ;;  %2674 = vpow2.f32 %v437_v51  ;;  %v809_v22 = vshra.s32 %v3131_v59, 16 }
  0x97   :  { %v435_v3 = vmul.f32 1.442695, %v396_v0  ;;  %v439_v4 = vmul.f32 1.442695, %v398_v1  ;;  %v3137_v11 = vsel %vm280_vm0, %v740_v63, 2147483647  ;;  %vm704_vm6 = vcmp.ge.f32.partialorder %v2863_v5, %v3123_v55 }
  0x98   :  { %5063 = vst [vmem:[#allocation16_spill] sm:$0xff] %v3133_v60  ;;  %5064 = vst [vmem:[#allocation17_spill] sm:$0xff] %v3137_v11  ;;  %782 = vmin.xlane.f32.xlu0 %v3133_v60  ;;  %v3140_v2 = vpop.xlane.xlu0 %294  ;;  %v3142_v14 = vpop.xlane.xlu1 %297  ;;  %v794_v19 = vshra.s32 %v3137_v11, 16  ;;  %v3157_v43 = vcvt.s32.f32 %v809_v22  ;;  %v742_v5 = vsel %vm704_vm6, %v3112_v34, 16 }
  0x99   :  { %2676 = vpow2.f32 %v435_v3  ;;  %v399_v23 = vsub.f32 %v2872_v8, %v3140_v2  ;;  %v400_v30 = vsub.f32 %v2877_v9, %v3142_v14  ;;  %vm705_vm8 = vcmp.ge.f32.partialorder %v2872_v8, %v3140_v2 }
  0x9a   :  { %2678 = vpow2.f32 %v439_v4  ;;  %v3150_v31 = vcvt.s32.f32 %v794_v19  ;;  %5066 = vst [vmem:[#allocation19_spill] sm:$0xff] %v3157_v43  ;;  %v743_v2 = vsel %vm705_vm8, %v3112_v34, 16  ;;  %vm706_vm10 = vcmp.ge.f32.partialorder %v2877_v9, %v3142_v14 }
  0x9b   :  { %v441_v35 = vmul.f32 1.442695, %v399_v23  ;;  %v443_v38 = vmul.f32 1.442695, %v400_v30  ;;  %v744_v14 = vsel %vm706_vm10, %v3112_v34, 16 }
  0x9c   :  { %5065 = vst [vmem:[#allocation18_spill] sm:$0xff] %v3150_v31  ;;  %797 = vmin.xlane.f32.xlu0 %v3150_v31  ;;  %v3153_v39 = vpop.xlane.xlu0 %300  ;;  %v3155_v42 = vpop.xlane.xlu1 %303 }
  0x9d   :  { %2680 = vpow2.f32 %v441_v35  ;;  %v401_v46 = vsub.f32 %v2886_v12, %v3153_v39  ;;  %v402_v47 = vsub.f32 %v2891_v13, %v3155_v42  ;;  %vm707_vm12 = vcmp.ge.f32.partialorder %v2886_v12, %v3153_v39 }
  0x9e   :  { %2682 = vpow2.f32 %v443_v38  ;;  %v745_v39 = vsel %vm707_vm12, %v3112_v34, 16  ;;  %vm708_vm13 = vcmp.ge.f32.partialorder %v2891_v13, %v3155_v42 }
  0x9f   :  { %v445_v51 = vmul.f32 1.442695, %v401_v46  ;;  %v447_v54 = vmul.f32 1.442695, %v402_v47  ;;  %v2673_v58 = vpop.eup %2672  ;;  %v746_v13 = vsel %vm708_vm13, %v3112_v34, 16 }
  0xa0   :  { %812 = vmin.xlane.f32.xlu0 %v3157_v43  ;;  %v3164_v0 = vpop.xlane.xlu0 %306  ;;  %v3166_v1 = vpop.xlane.xlu1 %309  ;;  %v509_v30 = vsel %vm280_vm0, %v2673_v58, 0.0 }
  0xa1   :  { %2684 = vpow2.f32 %v445_v51  ;;  %v403_v63 = vsub.f32 %v2900_v16, %v3164_v0  ;;  %v404_v3 = vsub.f32 %v2905_v17, %v3166_v1  ;;  %v2675_v4 = vpop.eup %2674  ;;  %vm709_vm5 = vcmp.ge.f32.partialorder %v2900_v16, %v3164_v0 }
  0xa2   :  { %2686 = vpow2.f32 %v447_v54  ;;  %vm710_vm15 = vcmp.ge.f32.partialorder %v2905_v17, %v3166_v1 }
  0xa3   :  { %v2677_v19 = vpop.eup %2676  ;;  %v449_v22 = vmul.f32 1.442695, %v403_v63  ;;  %v451_v23 = vmul.f32 1.442695, %v404_v3  ;;  %v515_v63 = vsel %vm280_vm0, %v2675_v4, 0.0  ;;  %v748_v1 = vsel %vm710_vm15, %v3112_v34, 16 }
  0xa4   :  { %v2679_v35 = vpop.eup %2678  ;;  %510 = vadd.xlane.f32.xlu0 %v509_v30  ;;  %v512_v38 = vsel %vm280_vm0, %v2677_v19, 0.0  ;;  %v3174_v46 = vpop.xlane.xlu0 %312 }
  0xa5   :  { %v3176_v47 = vpop.xlane.xlu1 %315  ;;  %2688 = vpow2.f32 %v449_v22  ;;  %513 = vadd.xlane.f32.xlu1 %v512_v38  ;;  %v405_v51 = vsub.f32 %v2914_v20, %v3174_v46  ;;  %v518_v58 = vsel %vm280_vm0, %v2679_v35, 0.0  ;;  %vm711_vm7 = vcmp.ge.f32.partialorder %v2914_v20, %v3174_v46 }
  0xa6   :  { %v406_v54 = vsub.f32 %v2919_v21, %v3176_v47  ;;  %2690 = vpow2.f32 %v451_v23  ;;  %v749_v46 = vsel %vm711_vm7, %v3112_v34, 16  ;;  %vm712_vm3 = vcmp.ge.f32.partialorder %v2919_v21, %v3176_v47 }
  0xa7   :  { %v2681_v3 = vpop.eup %2680  ;;  %v453_v30 = vmul.f32 1.442695, %v405_v51  ;;  %v3341_v8 = vsel %vm280_vm0, %v749_v46, 2147483647  ;;  %v3391_v46 = vsel %vm280_vm0, %v745_v39, 2147483647 }
  0xa8   :  { %v455_v19 = vmul.f32 1.442695, %v406_v54  ;;  %v2683_v10 = vpop.eup %2682  ;;  %516 = vadd.xlane.f32.xlu0 %v515_v63  ;;  %v3184_v43 = vpop.xlane.xlu0 %318  ;;  %v521_v23 = vsel %vm280_vm0, %v2681_v3, 0.0  ;;  %v869_v42 = vshra.s32 %v3391_v46, 16  ;;  %v750_v47 = vsel %vm712_vm3, %v3112_v34, 16 }
  0xa9   :  { %v3186_v22 = vpop.xlane.xlu1 %321  ;;  %2692 = vpow2.f32 %v453_v30  ;;  %519 = vadd.xlane.f32.xlu1 %v518_v58  ;;  %v407_v38 = vsub.f32 %v2928_v24, %v3184_v43  ;;  %v524_v35 = vsel %vm280_vm0, %v2683_v10, 0.0  ;;  %vm713_vm9 = vcmp.ge.f32.partialorder %v2928_v24, %v3184_v43 }
  0xaa   :  { %v408_v4 = vsub.f32 %v2933_v25, %v3186_v22  ;;  %2694 = vpow2.f32 %v455_v19  ;;  %v751_v43 = vsel %vm713_vm9, %v3112_v34, 16 }
  0xab   :  { %v2685_v51 = vpop.eup %2684  ;;  %v457_v54 = vmul.f32 1.442695, %v407_v38  ;;  %v3358_v9 = vsel %vm280_vm0, %v751_v43, 2147483647  ;;  %v3426_v43 = vsel %vm280_vm0, %v748_v1, 2147483647 }
  0xac   :  { %v459_v63 = vmul.f32 1.442695, %v408_v4  ;;  %v2687_v59 = vpop.eup %2686  ;;  %522 = vadd.xlane.f32.xlu0 %v521_v23  ;;  %v3194_v31 = vpop.xlane.xlu0 %324  ;;  %v527_v19 = vsel %vm280_vm0, %v2685_v51, 0.0 }
  0xad   :  { %v3196_v30 = vpop.xlane.xlu1 %327  ;;  %2696 = vpow2.f32 %v457_v54  ;;  %525 = vadd.xlane.f32.xlu1 %v524_v35  ;;  %v409_v58 = vsub.f32 %v2942_v28, %v3194_v31  ;;  %v530_v10 = vsel %vm280_vm0, %v2687_v59, 0.0  ;;  %vm715_vm11 = vcmp.ge.f32.partialorder %v2942_v28, %v3194_v31 }
  0xae   :  { %v410_v3 = vsub.f32 %v2947_v29, %v3196_v30  ;;  %2698 = vpow2.f32 %v459_v63  ;;  %v753_v28 = vsel %vm715_vm11, %v3112_v34, 16 }
  0xaf   :  { %v2689_v38 = vpop.eup %2688  ;;  %v461_v4 = vmul.f32 1.442695, %v409_v58  ;;  %v3376_v12 = vsel %vm280_vm0, %v753_v28, 2147483647  ;;  %v3445_v28 = vsel %vm280_vm0, %v750_v47, 2147483647 }
  0xb0   :  { %v463_v23 = vmul.f32 1.442695, %v410_v3  ;;  %v2691_v11 = vpop.eup %2690  ;;  %528 = vadd.xlane.f32.xlu0 %v527_v19  ;;  %v3204_v60 = vpop.xlane.xlu0 %330  ;;  %v533_v63 = vsel %vm280_vm0, %v2689_v38, 0.0 }
  0xb1   :  { %v3206_v54 = vpop.xlane.xlu1 %333  ;;  %2700 = vpow2.f32 %v461_v4  ;;  %531 = vadd.xlane.f32.xlu1 %v530_v10  ;;  %v411_v35 = vsub.f32 %v2956_v32, %v3204_v60  ;;  %v536_v59 = vsel %vm280_vm0, %v2691_v11, 0.0  ;;  %vm717_vm14 = vcmp.ge.f32.partialorder %v2956_v32, %v3204_v60 }
  0xb2   :  { %5067 = vst [vmem:[#allocation20_spill] sm:$0xff] %v3206_v54  ;;  %v412_v51 = vsub.f32 %v2961_v33, %v3206_v54  ;;  %2702 = vpow2.f32 %v463_v23  ;;  %v755_v32 = vsel %vm717_vm14, %v3112_v34, 16 }
  0xb3   :  { %v2693_v58 = vpop.eup %2692  ;;  %v465_v3 = vmul.f32 1.442695, %v411_v35  ;;  %v3411_v17 = vsel %vm280_vm0, %v755_v32, 2147483647 }
  0xb4   :  { %v467_v19 = vmul.f32 1.442695, %v412_v51  ;;  %v2695_v50 = vpop.eup %2694  ;;  %534 = vadd.xlane.f32.xlu0 %v533_v63  ;;  %v3214_v29 = vpop.xlane.xlu0 %336  ;;  %v539_v23 = vsel %vm280_vm0, %v2693_v58, 0.0 }
  0xb5   :  { %v3216_v4 = vpop.xlane.xlu1 %339  ;;  %2704 = vpow2.f32 %v465_v3  ;;  %537 = vadd.xlane.f32.xlu1 %v536_v59  ;;  %v413_v10 = vsub.f32 %v2970_v36, %v3214_v29  ;;  %v542_v11 = vsel %vm280_vm0, %v2695_v50, 0.0  ;;  %vm719_vm2 = vcmp.ge.f32.partialorder %v2970_v36, %v3214_v29 }
  0xb6   :  { %5068 = vst [vmem:[#allocation21_spill] sm:$0xff] %v3216_v4  ;;  %v414_v38 = vsub.f32 %v2975_v37, %v3216_v4  ;;  %2706 = vpow2.f32 %v467_v19  ;;  %v757_v29 = vsel %vm719_vm2, %v3112_v34, 16  ;;  %v3420_v36 = vcvt.s32.f32 %v869_v42 }
  0xb7   :  { %v2697_v35 = vpop.eup %2696  ;;  %v469_v51 = vmul.f32 1.442695, %v413_v10  ;;  %v3430_v21 = vsel %vm280_vm0, %v757_v29, 2147483647 }
  0xb8   :  { %v471_v63 = vmul.f32 1.442695, %v414_v38  ;;  %v2699_v33 = vpop.eup %2698  ;;  %540 = vadd.xlane.f32.xlu0 %v539_v23  ;;  %v3224_v54 = vpop.xlane.xlu0 %342  ;;  %v545_v19 = vsel %vm280_vm0, %v2697_v35, 0.0  ;;  %5083 = vst [vmem:[#allocation36_spill] sm:$0xff] %v3420_v36 }
  0xb9   :  { %v3226_v3 = vpop.xlane.xlu1 %345  ;;  %2708 = vpow2.f32 %v469_v51  ;;  %543 = vadd.xlane.f32.xlu1 %v542_v11  ;;  %v415_v59 = vsub.f32 %v2984_v40, %v3224_v54  ;;  %v548_v50 = vsel %vm280_vm0, %v2699_v33, 0.0  ;;  %vm721_vm4 = vcmp.ge.f32.partialorder %v2984_v40, %v3224_v54  ;;  %v5089_v32 = vld [vmem:[#allocation20_spill] sm:$0xff] }
  0xba   :  { %5069 = vst [vmem:[#allocation22_spill] sm:$0xff] %v3226_v3  ;;  %v416_v58 = vsub.f32 %v2989_v41, %v3226_v3  ;;  %2710 = vpow2.f32 %v471_v63  ;;  %v759_v40 = vsel %vm721_vm4, %v3112_v34, 16 }
  0xbb   :  { %v2701_v10 = vpop.eup %2700  ;;  %v473_v38 = vmul.f32 1.442695, %v415_v59 }
  0xbc   :  { %v475_v23 = vmul.f32 1.442695, %v416_v58  ;;  %v2703_v37 = vpop.eup %2702  ;;  %546 = vadd.xlane.f32.xlu0 %v545_v19  ;;  %v3234_v4 = vpop.xlane.xlu0 %348  ;;  %v551_v63 = vsel %vm280_vm0, %v2701_v10, 0.0 }
  0xbd   :  { %v3236_v51 = vpop.xlane.xlu1 %351  ;;  %2712 = vpow2.f32 %v473_v38  ;;  %549 = vadd.xlane.f32.xlu1 %v548_v50  ;;  %v417_v11 = vsub.f32 %v2998_v44, %v3234_v4  ;;  %v554_v33 = vsel %vm280_vm0, %v2703_v37, 0.0  ;;  %vm723_vm6 = vcmp.ge.f32.partialorder %v2998_v44, %v3234_v4  ;;  %v5086_v44 = vld [vmem:[#allocation2_spill] sm:$0xff]  ;;  %v5093_v47 = vld [vmem:[#allocation21_spill] sm:$0xff] }
  0xbe   :  { %5070 = vst [vmem:[#allocation23_spill] sm:$0xff] %v3236_v51  ;;  %v418_v35 = vsub.f32 %v3003_v45, %v3236_v51  ;;  %2714 = vpow2.f32 %v475_v23  ;;  %vm716_vm7 = vcmp.ge.f32.partialorder %v5086_v44, %v3196_v30  ;;  %v761_v4 = vsel %vm723_vm6, %v3112_v34, 16 }
  0xbf   :  { %v2705_v59 = vpop.eup %2704  ;;  %v477_v58 = vmul.f32 1.442695, %v417_v11  ;;  %v754_v30 = vsel %vm716_vm7, %v3112_v34, 16 }
  0xc0   :  { %v479_v19 = vmul.f32 1.442695, %v418_v35  ;;  %v2707_v41 = vpop.eup %2706  ;;  %552 = vadd.xlane.f32.xlu0 %v551_v63  ;;  %v3244_v3 = vpop.xlane.xlu0 %354  ;;  %v557_v23 = vsel %vm280_vm0, %v2705_v59, 0.0 }
  0xc1   :  { %v3246_v38 = vpop.xlane.xlu1 %357  ;;  %2716 = vpow2.f32 %v477_v58  ;;  %555 = vadd.xlane.f32.xlu1 %v554_v33  ;;  %v419_v50 = vsub.f32 %v3012_v48, %v3244_v3  ;;  %v560_v37 = vsel %vm280_vm0, %v2707_v41, 0.0  ;;  %vm725_vm8 = vcmp.ge.f32.partialorder %v3012_v48, %v3244_v3  ;;  %v5090_v48 = vld [vmem:[#allocation3_spill] sm:$0xff] }
  0xc2   :  { %5071 = vst [vmem:[#allocation24_spill] sm:$0xff] %v3246_v38  ;;  %v420_v10 = vsub.f32 %v3017_v49, %v3246_v38  ;;  %2718 = vpow2.f32 %v479_v19  ;;  %vm718_vm9 = vcmp.ge.f32.partialorder %v5090_v48, %v5089_v32  ;;  %v763_v3 = vsel %vm725_vm8, %v3112_v34, 16 }
  0xc3   :  { %v2709_v11 = vpop.eup %2708  ;;  %v481_v35 = vmul.f32 1.442695, %v419_v50 }
  0xc4   :  { %v483_v63 = vmul.f32 1.442695, %v420_v10  ;;  %v2711_v45 = vpop.eup %2710  ;;  %558 = vadd.xlane.f32.xlu0 %v557_v23  ;;  %v3254_v51 = vpop.xlane.xlu0 %360  ;;  %v563_v19 = vsel %vm280_vm0, %v2709_v11, 0.0 }
  0xc5   :  { %v3256_v58 = vpop.xlane.xlu1 %363  ;;  %2720 = vpow2.f32 %v481_v35  ;;  %561 = vadd.xlane.f32.xlu1 %v560_v37  ;;  %v421_v33 = vsub.f32 %v3026_v52, %v3254_v51  ;;  %v566_v41 = vsel %vm280_vm0, %v2711_v45, 0.0  ;;  %vm727_vm10 = vcmp.ge.f32.partialorder %v3026_v52, %v3254_v51  ;;  %v5094_v52 = vld [vmem:[#allocation4_spill] sm:$0xff] }
  0xc6   :  { %5072 = vst [vmem:[#allocation25_spill] sm:$0xff] %v3256_v58  ;;  %v422_v59 = vsub.f32 %v3031_v53, %v3256_v58  ;;  %2722 = vpow2.f32 %v483_v63  ;;  %vm720_vm11 = vcmp.ge.f32.partialorder %v5094_v52, %v5093_v47  ;;  %v765_v51 = vsel %vm727_vm10, %v3112_v34, 16  ;;  %v5101_v47 = vld [vmem:[#allocation23_spill] sm:$0xff] }
  0xc7   :  { %v2713_v50 = vpop.eup %2712  ;;  %v485_v10 = vmul.f32 1.442695, %v421_v33 }
  0xc8   :  { %v487_v23 = vmul.f32 1.442695, %v422_v59  ;;  %v2715_v49 = vpop.eup %2714  ;;  %564 = vadd.xlane.f32.xlu0 %v563_v19  ;;  %v3264_v38 = vpop.xlane.xlu0 %366  ;;  %v569_v63 = vsel %vm280_vm0, %v2713_v50, 0.0 }
  0xc9   :  { %v3266_v35 = vpop.xlane.xlu1 %369  ;;  %2724 = vpow2.f32 %v485_v10  ;;  %567 = vadd.xlane.f32.xlu1 %v566_v41  ;;  %v423_v37 = vsub.f32 %v3040_v56, %v3264_v38  ;;  %v572_v45 = vsel %vm280_vm0, %v2715_v49, 0.0  ;;  %vm729_vm12 = vcmp.ge.f32.partialorder %v3040_v56, %v3264_v38  ;;  %v5098_v56 = vld [vmem:[#allocation5_spill] sm:$0xff] }
  0xca   :  { %5073 = vst [vmem:[#allocation26_spill] sm:$0xff] %v3266_v35  ;;  %v424_v11 = vsub.f32 %v3045_v57, %v3266_v35  ;;  %2726 = vpow2.f32 %v487_v23  ;;  %v767_v38 = vsel %vm729_vm12, %v3112_v34, 16 }
  0xcb   :  { %v2717_v33 = vpop.eup %2716  ;;  %v489_v59 = vmul.f32 1.442695, %v423_v37 }
  0xcc   :  { %v491_v19 = vmul.f32 1.442695, %v424_v11  ;;  %v2719_v53 = vpop.eup %2718  ;;  %570 = vadd.xlane.f32.xlu0 %v569_v63  ;;  %v3274_v58 = vpop.xlane.xlu0 %372  ;;  %v575_v23 = vsel %vm280_vm0, %v2717_v33, 0.0 }
  0xcd   :  { %v3276_v10 = vpop.xlane.xlu1 %375  ;;  %2728 = vpow2.f32 %v489_v59  ;;  %573 = vadd.xlane.f32.xlu1 %v572_v45  ;;  %v425_v41 = vsub.f32 %v3054_v61, %v3274_v58  ;;  %v578_v49 = vsel %vm280_vm0, %v2719_v53, 0.0  ;;  %vm731_vm14 = vcmp.ge.f32.partialorder %v3054_v61, %v3274_v58  ;;  %v5102_v61 = vld [vmem:[#allocation6_spill] sm:$0xff] }
  0xce   :  { %5074 = vst [vmem:[#allocation27_spill] sm:$0xff] %v3276_v10  ;;  %v426_v50 = vsub.f32 %v3059_v62, %v3276_v10  ;;  %2730 = vpow2.f32 %v491_v19  ;;  %vm724_vm15 = vcmp.ge.f32.partialorder %v5102_v61, %v5101_v47  ;;  %v769_v58 = vsel %vm731_vm14, %v3112_v34, 16 }
  0xcf   :  { %v2721_v37 = vpop.eup %2720  ;;  %v493_v11 = vmul.f32 1.442695, %v425_v41 }
  0xd0   :  { %v495_v63 = vmul.f32 1.442695, %v426_v50  ;;  %v2723_v57 = vpop.eup %2722  ;;  %576 = vadd.xlane.f32.xlu0 %v575_v23  ;;  %v3284_v35 = vpop.xlane.xlu0 %378  ;;  %v581_v19 = vsel %vm280_vm0, %v2721_v37, 0.0 }
  0xd1   :  { %v3286_v59 = vpop.xlane.xlu1 %381  ;;  %2732 = vpow2.f32 %v493_v11  ;;  %579 = vadd.xlane.f32.xlu1 %v578_v49  ;;  %v427_v45 = vsub.f32 %v3068_v6, %v3284_v35  ;;  %v584_v53 = vsel %vm280_vm0, %v2723_v57, 0.0  ;;  %vm733_vm2 = vcmp.ge.f32.partialorder %v3068_v6, %v3284_v35  ;;  %v5106_v6 = vld [vmem:[#allocation7_spill] sm:$0xff] }
  0xd2   :  { %5075 = vst [vmem:[#allocation28_spill] sm:$0xff] %v3286_v59  ;;  %v428_v33 = vsub.f32 %v3073_v7, %v3286_v59  ;;  %2734 = vpow2.f32 %v495_v63  ;;  %v771_v35 = vsel %vm733_vm2, %v3112_v34, 16 }
  0xd3   :  { %v2725_v41 = vpop.eup %2724  ;;  %v497_v50 = vmul.f32 1.442695, %v427_v45 }
  0xd4   :  { %v499_v23 = vmul.f32 1.442695, %v428_v33  ;;  %v2727_v62 = vpop.eup %2726  ;;  %582 = vadd.xlane.f32.xlu0 %v581_v19  ;;  %v3294_v10 = vpop.xlane.xlu0 %384  ;;  %v587_v63 = vsel %vm280_vm0, %v2725_v41, 0.0 }
  0xd5   :  { %v3296_v11 = vpop.xlane.xlu1 %387  ;;  %2736 = vpow2.f32 %v497_v50  ;;  %585 = vadd.xlane.f32.xlu1 %v584_v53  ;;  %v429_v49 = vsub.f32 %v3084_v15, %v3294_v10  ;;  %v590_v57 = vsel %vm280_vm0, %v2727_v62, 0.0  ;;  %vm735_vm4 = vcmp.ge.f32.partialorder %v3084_v15, %v3294_v10  ;;  %v5110_v15 = vld [vmem:[#allocation8_spill] sm:$0xff] }
  0xd6   :  { %v430_v37 = vsub.f32 %v3089_v18, %v3296_v11  ;;  %2738 = vpow2.f32 %v499_v23  ;;  %v773_v10 = vsel %vm735_vm4, %v3112_v34, 16 }
  0xd7   :  { %v2729_v45 = vpop.eup %2728  ;;  %v501_v33 = vmul.f32 1.442695, %v429_v49 }
  0xd8   :  { %v503_v19 = vmul.f32 1.442695, %v430_v37  ;;  %v2731_v7 = vpop.eup %2730  ;;  %588 = vadd.xlane.f32.xlu0 %v587_v63  ;;  %v3304_v59 = vpop.xlane.xlu0 %390  ;;  %v593_v50 = vsel %vm280_vm0, %v2729_v45, 0.0  ;;  %v747_v45 = vsel %vm709_vm5, %v3112_v34, 16  ;;  %vm714_vm5 = vcmp.ge.f32.partialorder %v2933_v25, %v3186_v22 }
  0xd9   :  { %2740 = vpow2.f32 %v501_v33  ;;  %591 = vadd.xlane.f32.xlu1 %v590_v57  ;;  %v431_v53 = vsub.f32 %v3102_v26, %v3304_v59  ;;  %v596_v41 = vsel %vm280_vm0, %v2731_v7, 0.0  ;;  %v3321_v33 = vpop.xlane.xlu1 %393  ;;  %v3449_v25 = vsel %vm280_vm0, %v759_v40, 2147483647 }
  0xda   :  { %2742 = vpow2.f32 %v503_v19  ;;  %v3324_v19 = vsel %vm280_vm0, %v747_v45, 2147483647  ;;  %v432_v20 = vsub.f32 %v3106_v27, %v3321_v33  ;;  %v752_v22 = vsel %vm714_vm5, %v3112_v34, 16 }
  0xdb   :  { %v2733_v23 = vpop.eup %2732  ;;  %v505_v18 = vmul.f32 1.442695, %v431_v53  ;;  %vm737_vm6 = vcmp.ge.f32.partialorder %v3102_v26, %v3304_v59  ;;  %v5114_v26 = vld [vmem:[#allocation9_spill] sm:$0xff]  ;;  %vm738_vm12 = vcmp.ge.f32.partialorder %v3106_v27, %v3321_v33 }
  0xdc   :  { %v2735_v62 = vpop.eup %2734  ;;  %594 = vadd.xlane.f32.xlu0 %v593_v50  ;;  %v599_v49 = vsel %vm280_vm0, %v2733_v23, 0.0  ;;  %v3338_v23 = vsel %vm280_vm0, %v742_v5, 2147483647  ;;  %v775_v59 = vsel %vm737_vm6, %v3112_v34, 16 }
  0xdd   :  { %2744 = vpow2.f32 %v505_v18  ;;  %597 = vadd.xlane.f32.xlu1 %v596_v41  ;;  %v602_v37 = vsel %vm280_vm0, %v2735_v62, 0.0  ;;  %v899_v41 = vshra.s32 %v3324_v19, 16  ;;  %v507_v62 = vmul.f32 1.442695, %v432_v20 }
  0xde   :  { %v989_v20 = vshra.s32 %v3376_v12, 16 }
  0xdf   :  { %v2737_v63 = vpop.eup %2736  ;;  %2746 = vpow2.f32 %v507_v62 }
  0xe0   :  { %v2739_v57 = vpop.eup %2738  ;;  %600 = vadd.xlane.f32.xlu0 %v599_v49  ;;  %v605_v7 = vsel %vm280_vm0, %v2737_v63, 0.0  ;;  %v824_v49 = vshra.s32 %v3338_v23, 16  ;;  %v929_v63 = vshra.s32 %v3341_v8, 16 }
  0xe1   :  { %603 = vadd.xlane.f32.xlu1 %v602_v37  ;;  %v608_v18 = vsel %vm280_vm0, %v2739_v57, 0.0  ;;  %v3351_v37 = vcvt.s32.f32 %v899_v41  ;;  %v3355_v57 = vsel %vm280_vm0, %v743_v2, 2147483647  ;;  %v3407_v41 = vsel %vm280_vm0, %v746_v13, 2147483647 }
  0xe2   :  { %v3365_v31 = vcvt.s32.f32 %v824_v49  ;;  %v3368_v45 = vcvt.s32.f32 %v929_v63  ;;  %v884_v62 = vshra.s32 %v3407_v41, 16  ;;  %v914_v49 = vshra.s32 %v3426_v43, 16 }
  0xe3   :  { %v2741_v16 = vpop.eup %2740  ;;  %5076 = vst [vmem:[#allocation29_spill] sm:$0xff] %v3351_v37  ;;  %v3470_v13 = vsel %vm280_vm0, %v761_v4, 2147483647  ;;  %v758_v4 = vsel %vm720_vm11, %v3112_v34, 16 }
  0xe4   :  { %v2743_v0 = vpop.eup %2742  ;;  %606 = vadd.xlane.f32.xlu0 %v605_v7  ;;  %v611_v55 = vsel %vm280_vm0, %v2741_v16, 0.0  ;;  %5077 = vst [vmem:[#allocation30_spill] sm:$0xff] %v3365_v31  ;;  %v839_v7 = vshra.s32 %v3355_v57, 16  ;;  %5078 = vst [vmem:[#allocation31_spill] sm:$0xff] %v3368_v45  ;;  %v3372_v16 = vsel %vm280_vm0, %v744_v14, 2147483647  ;;  %v3438_v54 = vcvt.s32.f32 %v884_v62 }
  0xe5   :  { %609 = vadd.xlane.f32.xlu1 %v608_v18  ;;  %v614_v53 = vsel %vm280_vm0, %v2743_v0, 0.0  ;;  %v959_v18 = vshra.s32 %v3358_v9, 16  ;;  %v854_v5 = vshra.s32 %v3372_v16, 16  ;;  %v1049_v14 = vshra.s32 %v3430_v21, 16 }
  0xe6   :  { %v3384_v0 = vcvt.s32.f32 %v839_v7  ;;  %5084 = vst [vmem:[#allocation37_spill] sm:$0xff] %v3438_v54  ;;  %v3458_v7 = vcvt.s32.f32 %v914_v49  ;;  %v1109_v29 = vshra.s32 %v3470_v13, 16  ;;  %v756_v62 = vsel %vm718_vm9, %v3112_v34, 16 }
  0xe7   :  { %v2745_v50 = vpop.eup %2744  ;;  %v3401_v60 = vcvt.s32.f32 %v854_v5  ;;  %v3461_v39 = vcvt.s32.f32 %v1049_v14  ;;  %v1079_v5 = vshra.s32 %v3449_v25, 16  ;;  %v3505_v44 = vsel %vm280_vm0, %v756_v62, 2147483647 }
  0xe8   :  { %612 = vadd.xlane.f32.xlu0 %v611_v55  ;;  %v617_v24 = vsel %vm280_vm0, %v2745_v50, 0.0  ;;  %5079 = vst [vmem:[#allocation32_spill] sm:$0xff] %v3384_v0  ;;  %v3387_v55 = vcvt.s32.f32 %v959_v18  ;;  %v3404_v50 = vcvt.s32.f32 %v989_v20  ;;  %5087 = vst [vmem:[#allocation2_spill] sm:$0xff] %v3458_v7  ;;  %v944_v18 = vshra.s32 %v3445_v28, 16 }
  0xe9   :  { %615 = vadd.xlane.f32.xlu1 %v614_v53  ;;  %5081 = vst [vmem:[#allocation34_spill] sm:$0xff] %v3401_v60  ;;  %v2747_v53 = vpop.eup %2746  ;;  %5088 = vst [vmem:[#allocation39_spill] sm:$0xff] %v3461_v39  ;;  %v3465_v20 = vsel %vm280_vm0, %v752_v22, 2147483647  ;;  %v3481_v1 = vcvt.s32.f32 %v1079_v5  ;;  %v3501_v14 = vcvt.s32.f32 %v1109_v29  ;;  %v5097_v5 = vld [vmem:[#allocation22_spill] sm:$0xff]  ;;  %v1034_v32 = vshra.s32 %v3505_v44, 16 }
  0xea   :  { %5080 = vst [vmem:[#allocation33_spill] sm:$0xff] %v3387_v55  ;;  %5082 = vst [vmem:[#allocation35_spill] sm:$0xff] %v3404_v50  ;;  %v620_v2 = vsel %vm280_vm0, %v2747_v53, 0.0  ;;  %v3478_v42 = vcvt.s32.f32 %v944_v18  ;;  %v974_v53 = vshra.s32 %v3465_v20, 16  ;;  %v3510_v18 = vsel %vm280_vm0, %v765_v51, 2147483647 }
  0xeb   :  { %5092 = vst [vmem:[#allocation3_spill] sm:$0xff] %v3481_v1  ;;  %5096 = vst [vmem:[#allocation4_spill] sm:$0xff] %v3501_v14  ;;  %vm722_vm13 = vcmp.ge.f32.partialorder %v5098_v56, %v5097_v5  ;;  %v3530_v62 = vsel %vm280_vm0, %v767_v38, 2147483647  ;;  %v3538_v52 = vcvt.s32.f32 %v1034_v32  ;;  %v762_v5 = vsel %vm724_vm15, %v3112_v34, 16  ;;  %v5105_v38 = vld [vmem:[#allocation24_spill] sm:$0xff] }
  0xec   :  { %618 = vadd.xlane.f32.xlu0 %v617_v24  ;;  %v1019_v24 = vshra.s32 %v3411_v17, 16  ;;  %5091 = vst [vmem:[#allocation20_spill] sm:$0xff] %v3478_v42  ;;  %v3498_v40 = vcvt.s32.f32 %v974_v53  ;;  %v3525_v53 = vsel %vm280_vm0, %v758_v4, 2147483647  ;;  %v760_v29 = vsel %vm722_vm13, %v3112_v34, 16 }
  0xed   :  { %902 = vmin.xlane.f32.xlu1 %v3351_v37  ;;  %5103 = vst [vmem:[#allocation23_spill] sm:$0xff] %v3538_v52  ;;  %v1064_v51 = vshra.s32 %v3525_v53, 16  ;;  %v3545_v4 = vsel %vm280_vm0, %v760_v29, 2147483647  ;;  %v3550_v56 = vsel %vm280_vm0, %v769_v58, 2147483647  ;;  %vm726_vm3 = vcmp.ge.f32.partialorder %v5106_v6, %v5105_v38 }
  0xee   :  { %v3441_v63 = vcvt.s32.f32 %v1019_v24  ;;  %v3490_v24 = vsel %vm280_vm0, %v763_v3, 2147483647  ;;  %5095 = vst [vmem:[#allocation21_spill] sm:$0xff] %v3498_v40  ;;  %v1169_v3 = vshra.s32 %v3510_v18, 16  ;;  %v1229_v47 = vshra.s32 %v3550_v56, 16  ;;  %v5109_v6 = vld [vmem:[#allocation25_spill] sm:$0xff] }
  0xef   :  { %v1139_v22 = vshra.s32 %v3490_v24, 16  ;;  %v3558_v32 = vcvt.s32.f32 %v1064_v51  ;;  %v3565_v61 = vsel %vm280_vm0, %v762_v5, 2147483647  ;;  %v764_v58 = vsel %vm726_vm3, %v3112_v34, 16 }
  0xf0   :  { %827 = vmin.xlane.f32.xlu0 %v3365_v31  ;;  %5085 = vst [vmem:[#allocation38_spill] sm:$0xff] %v3441_v63  ;;  %v3570_v38 = vsel %vm280_vm0, %v771_v35, 2147483647  ;;  %vm728_vm5 = vcmp.ge.f32.partialorder %v5110_v15, %v5109_v6  ;;  %v3581_v5 = vcvt.s32.f32 %v1229_v47  ;;  %v3585_v35 = vsel %vm280_vm0, %v764_v58, 2147483647 }
  0xf1   :  { %932 = vmin.xlane.f32.xlu1 %v3368_v45  ;;  %v3521_v48 = vcvt.s32.f32 %v1139_v22  ;;  %v1199_v22 = vshra.s32 %v3530_v62, 16  ;;  %5107 = vst [vmem:[#allocation24_spill] sm:$0xff] %v3558_v32  ;;  %v766_v6 = vsel %vm728_vm5, %v3112_v34, 16  ;;  %v3590_v15 = vsel %vm280_vm0, %v773_v10, 2147483647 }
  0xf2   :  { %5112 = vst [vmem:[#allocation8_spill] sm:$0xff] %v3581_v5  ;;  %v1154_v47 = vshra.s32 %v3585_v35, 16 }
  0xf3   :  { %5100 = vst [vmem:[#allocation5_spill] sm:$0xff] %v3521_v48  ;;  %v3561_v29 = vcvt.s32.f32 %v1199_v22  ;;  %v1124_v22 = vshra.s32 %v3565_v61, 16 }
  0xf4   :  { %842 = vmin.xlane.f32.xlu0 %v3384_v0  ;;  %v973_v0 = vand.u32 65535, %v3465_v20 }
  0xf5   :  { %962 = vmin.xlane.f32.xlu1 %v3387_v55  ;;  %5108 = vst [vmem:[#allocation7_spill] sm:$0xff] %v3561_v29 }
  0xf8   :  { %857 = vmin.xlane.f32.xlu0 %v3401_v60  ;;  %v868_v60 = vand.u32 65535, %v3391_v46  ;;  %v1138_v46 = vand.u32 65535, %v3490_v24 }
  0xf9   :  { %992 = vmin.xlane.f32.xlu1 %v3404_v50 }
  0xfc   :  { %872 = vmin.xlane.f32.xlu0 %v3420_v36  ;;  %v958_v36 = vand.u32 65535, %v3358_v9  ;;  %v1078_v9 = vand.u32 65535, %v3449_v25 }
  0xfd   :  { %621 = vadd.xlane.f32.xlu1 %v620_v2  ;;  %v3485_v2 = vsel %vm280_vm0, %v754_v30, 2147483647 }
  0xfe   :  { %v1004_v49 = vshra.s32 %v3485_v2, 16 }
 0x100   :  { %887 = vmin.xlane.f32.xlu0 %v3438_v54  ;;  %v3518_v30 = vcvt.s32.f32 %v1004_v49  ;;  %v3541_v49 = vcvt.s32.f32 %v1169_v3  ;;  %v1094_v3 = vshra.s32 %v3545_v4, 16  ;;  %v928_v54 = vand.u32 65535, %v3341_v8 }
 0x101   :  { %1022 = vmin.xlane.f32.xlu1 %v3441_v63  ;;  %v943_v8 = vand.u32 65535, %v3445_v28 }
 0x102   :  { %5099 = vst [vmem:[#allocation22_spill] sm:$0xff] %v3518_v30  ;;  %5104 = vst [vmem:[#allocation6_spill] sm:$0xff] %v3541_v49  ;;  %v3578_v51 = vcvt.s32.f32 %v1094_v3  ;;  %v3596_v3 = vcvt.s32.f32 %v1124_v22  ;;  %v3613_v22 = vcvt.s32.f32 %v1154_v47  ;;  %v5123_v47 = vld [vmem:[#allocation14_spill] sm:$0xff] }
 0x104   :  { %917 = vmin.xlane.f32.xlu0 %v3458_v7  ;;  %5111 = vst [vmem:[#allocation25_spill] sm:$0xff] %v3578_v51 }
 0x105   :  { %1052 = vmin.xlane.f32.xlu1 %v3461_v39  ;;  %v853_v39 = vand.u32 65535, %v3372_v16  ;;  %v913_v16 = vand.u32 65535, %v3426_v43 }
 0x108   :  { %947 = vmin.xlane.f32.xlu0 %v3478_v42 }
 0x109   :  { %1082 = vmin.xlane.f32.xlu1 %v3481_v1 }
 0x10c   :  { %977 = vmin.xlane.f32.xlu0 %v3498_v40 }
 0x10d   :  { %1112 = vmin.xlane.f32.xlu1 %v3501_v14 }
 0x110   :  { %1007 = vmin.xlane.f32.xlu0 %v3518_v30  ;;  %v5122_v30 = vld [vmem:[#allocation11_spill] sm:$0xff] }
 0x111   :  { %1142 = vmin.xlane.f32.xlu1 %v3521_v48 }
 0x114   :  { %1037 = vmin.xlane.f32.xlu0 %v3538_v52 }
 0x115   :  { %1172 = vmin.xlane.f32.xlu1 %v3541_v49  ;;  %v1289_v49 = vshra.s32 %v3590_v15, 16 }
 0x117   :  { %v3616_v52 = vcvt.s32.f32 %v1289_v49 }
 0x118   :  { %1067 = vmin.xlane.f32.xlu0 %v3558_v32  ;;  %v1259_v32 = vshra.s32 %v3570_v38, 16 }
 0x119   :  { %1202 = vmin.xlane.f32.xlu1 %v3561_v29  ;;  %v5113_v29 = vld [vmem:[#allocation26_spill] sm:$0xff] }
 0x11a   :  { %vm730_vm7 = vcmp.ge.f32.partialorder %v5114_v26, %v5113_v29  ;;  %5115 = vst [vmem:[#allocation26_spill] sm:$0xff] %v3596_v3  ;;  %v3599_v58 = vcvt.s32.f32 %v1259_v32  ;;  %v3608_v29 = vsel %vm280_vm0, %v775_v59, 2147483647  ;;  %v5117_v26 = vld [vmem:[#allocation27_spill] sm:$0xff]  ;;  %v5121_v59 = vld [vmem:[#allocation28_spill] sm:$0xff] }
 0x11b   :  { %v768_v10 = vsel %vm730_vm7, %v3112_v34, 16  ;;  %5119 = vst [vmem:[#allocation27_spill] sm:$0xff] %v3613_v22  ;;  %vm734_vm9 = vcmp.ge.f32.partialorder %v5122_v30, %v5121_v59  ;;  %v5126_v30 = vld [vmem:[#allocation13_spill] sm:$0xff] }
 0x11c   :  { %1097 = vmin.xlane.f32.xlu0 %v3578_v51  ;;  %5116 = vst [vmem:[#allocation9_spill] sm:$0xff] %v3599_v58  ;;  %v3603_v51 = vsel %vm280_vm0, %v766_v6, 2147483647  ;;  %v1319_v6 = vshra.s32 %v3608_v29, 16  ;;  %v3620_v48 = vsel %vm280_vm0, %v768_v10, 2147483647  ;;  %vm736_vm10 = vcmp.ge.f32.partialorder %v5126_v30, %v3296_v11 }
 0x11d   :  { %1232 = vmin.xlane.f32.xlu1 %v3581_v5  ;;  %v5118_v5 = vld [vmem:[#allocation10_spill] sm:$0xff]  ;;  %v1184_v32 = vshra.s32 %v3603_v51, 16 }
 0x11e   :  { %vm732_vm8 = vcmp.ge.f32.partialorder %v5118_v5, %v5117_v26  ;;  %5120 = vst [vmem:[#allocation10_spill] sm:$0xff] %v3616_v52  ;;  %v778_v26 = vand.u32 65535, %v5123_v47  ;;  %v3633_v14 = vcvt.s32.f32 %v1319_v6  ;;  %v5128_v47 = vld [vmem:[#allocation17_spill] sm:$0xff] }
 0x11f   :  { %v3630_v49 = vcvt.s32.f32 %v1184_v32  ;;  %v5127_v32 = vld [vmem:[#allocation16_spill] sm:$0xff]  ;;  %v793_v6 = vand.u32 65535, %v5128_v47 }
 0x120   :  { %1127 = vmin.xlane.f32.xlu0 %v3596_v3  ;;  %v770_v3 = vsel %vm732_vm8, %v3112_v34, 16  ;;  %5125 = vst [vmem:[#allocation11_spill] sm:$0xff] %v3633_v14 }
 0x121   :  { %1262 = vmin.xlane.f32.xlu1 %v3599_v58  ;;  %5124 = vst [vmem:[#allocation28_spill] sm:$0xff] %v3630_v49  ;;  %v1214_v58 = vshra.s32 %v3620_v48, 16  ;;  %v3636_v10 = vsel %vm280_vm0, %v770_v3, 2147483647  ;;  %v780_v3 = vcvt.s32.f32 %v778_v26  ;;  %v5132_v26 = vld [vmem:[#allocation15_spill] sm:$0xff] }
 0x122   :  { %v1244_v40 = vshra.s32 %v3636_v10, 16 }
 0x124   :  { %1157 = vmin.xlane.f32.xlu0 %v3613_v22  ;;  %v772_v22 = vsel %vm734_vm9, %v3112_v34, 16  ;;  %v3663_v47 = vcvt.s32.f32 %v1244_v40 }
 0x125   :  { %1292 = vmin.xlane.f32.xlu1 %v3616_v52  ;;  %v3627_v5 = vpop.xlane.xlu0 %782  ;;  %v3648_v52 = vcvt.s32.f32 %v1214_v58  ;;  %v3652_v1 = vsel %vm280_vm0, %v772_v22, 2147483647  ;;  %v5131_v58 = vld [vmem:[#allocation18_spill] sm:$0xff]  ;;  %v795_v22 = vcvt.s32.f32 %v793_v6 }
 0x126   :  { %vm784_vm11 = vcmp.eq.f32.partialorder %v5127_v32, %v3627_v5  ;;  %v808_v32 = vand.u32 65535, %v5132_v26  ;;  %5133 = vst [vmem:[#allocation16_spill] sm:$0xff] %v3663_v47 }
 0x127   :  { %5129 = vst [vmem:[#allocation14_spill] sm:$0xff] %v3648_v52  ;;  %v785_v11 = vsel %vm784_vm11, %v780_v3, inf  ;;  %v776_v3 = vsel %vm738_vm12, %v3112_v34, 16  ;;  %vm1955_vm11 = vcmask 121856  }
 0x128   :  { %1187 = vmin.xlane.f32.xlu0 %v3630_v49  ;;  %v774_v49 = vsel %vm736_vm10, %v3112_v34, 16  ;;  %v810_v6 = vcvt.s32.f32 %v808_v32 }
 0x129   :  { %1322 = vmin.xlane.f32.xlu1 %v3633_v14  ;;  %v3643_v59 = vpop.xlane.xlu0 %797  ;;  %v1274_v14 = vshra.s32 %v3652_v1, 16  ;;  %v3667_v42 = vsel %vm280_vm0, %v774_v49, 2147483647  ;;  %v3677_v49 = vsel %vm280_vm0, %v776_v3, 2147483647 }
 0x12a   :  { %vm799_vm13 = vcmp.eq.f32.partialorder %v5131_v58, %v3643_v59  ;;  %v1304_v26 = vshra.s32 %v3667_v42, 16 }
 0x12b   :  { %v800_v27 = vsel %vm799_vm13, %v795_v22, inf  ;;  %v3673_v40 = vcvt.s32.f32 %v1274_v14 }
 0x12c   :  { %1217 = vmin.xlane.f32.xlu0 %v3648_v52  ;;  %v3680_v52 = vcvt.s32.f32 %v1304_v26 }
 0x12d   :  { %786 = vmin.xlane.f32.xlu1 %v785_v11  ;;  %v3658_v30 = vpop.xlane.xlu0 %812  ;;  %v5134_v11 = vld [vmem:[#allocation19_spill] sm:$0xff]  ;;  %5135 = vst [vmem:[#allocation17_spill] sm:$0xff] %v3673_v40 }
 0x12e   :  { %5130 = vst [vmem:[#allocation13_spill] sm:$0xff] %v3658_v30  ;;  %vm814_vm14 = vcmp.eq.f32.partialorder %v5134_v11, %v3658_v30  ;;  %5136 = vst [vmem:[#allocation18_spill] sm:$0xff] %v3680_v52 }
 0x130   :  { %1247 = vmin.xlane.f32.xlu0 %v3663_v47  ;;  %v815_v47 = vsel %vm814_vm14, %v810_v6, inf }
 0x131   :  { %801 = vmin.xlane.f32.xlu1 %v800_v27  ;;  %v511_v33 = vpop.xlane.xlu0 %510 }
 0x132   :  { %2748 = vrcp.f32 %v511_v33  ;;  %v514_v58 = vpop.xlane.xlu1 %513  ;;  %v1334_v33 = vshra.s32 %v3677_v49, 16 }
 0x133   :  { %2750 = vrcp.f32 %v514_v58 }
 0x134   :  { %1277 = vmin.xlane.f32.xlu0 %v3673_v40  ;;  %v3684_v11 = vcvt.s32.f32 %v1334_v33  ;;  %v823_v33 = vand.u32 65535, %v3338_v23  ;;  %v898_v40 = vand.u32 65535, %v3324_v19  ;;  %v988_v23 = vand.u32 65535, %v3376_v12 }
 0x135   :  { %816 = vmin.xlane.f32.xlu1 %v815_v47  ;;  %v517_v22 = vpop.xlane.xlu0 %516  ;;  %v883_v19 = vand.u32 65535, %v3407_v41  ;;  %v1108_v12 = vand.u32 65535, %v3470_v13  ;;  %v3732_v13 = vcvt.s32.f32 %v928_v54 }
 0x136   :  { %2752 = vrcp.f32 %v517_v22  ;;  %v520_v27 = vpop.xlane.xlu1 %519  ;;  %5137 = vst [vmem:[#allocation15_spill] sm:$0xff] %v3684_v11  ;;  %v3727_v28 = vcvt.s32.f32 %v898_v40  ;;  %v3730_v20 = vcvt.s32.f32 %v823_v33  ;;  %v3744_v40 = vcvt.s32.f32 %v988_v23 }
 0x137   :  { %2754 = vrcp.f32 %v520_v27  ;;  %v3746_v33 = vcvt.s32.f32 %v868_v60  ;;  %v3761_v23 = vcvt.s32.f32 %v1078_v9 }
 0x138   :  { %1307 = vmin.xlane.f32.xlu0 %v3680_v52 }
 0x139   :  { %v523_v14 = vpop.xlane.xlu0 %522 }
 0x13a   :  { %v526_v32 = vpop.xlane.xlu1 %525  ;;  %2756 = vrcp.f32 %v523_v14 }
 0x13c   :  { %v3686_v3 = vpop.eup %2748  ;;  %1337 = vmin.xlane.f32.xlu0 %v3684_v11  ;;  %v838_v11 = vand.u32 65535, %v3355_v57  ;;  %v1018_v57 = vand.u32 65535, %v3411_v17  ;;  %v1168_v17 = vand.u32 65535, %v3510_v18 }
 0x13d   :  { %v3689_v58 = vpop.eup %2750  ;;  %v3691_v47 = vpop.xlane.xlu0 %528  ;;  %v1499_v6 = vmul.f32 15.0, %v3686_v3 }
 0x13e   :  { %v3694_v26 = vpop.xlane.xlu1 %531  ;;  %v1500_v22 = vmul.f32 15.0, %v3689_v58  ;;  %v3734_v24 = vcvt.s32.f32 %v838_v11  ;;  %v3750_v11 = vcvt.s32.f32 %v1018_v57  ;;  %v1033_v57 = vand.u32 65535, %v3505_v44 }
 0x13f   :  { %v1537_v7 = vceil.f32 %v1499_v6  ;;  %v1048_v6 = vand.u32 65535, %v3430_v21  ;;  %v1198_v21 = vand.u32 65535, %v3530_v62  ;;  %v3742_v62 = vcvt.s32.f32 %v853_v39 }
 0x140   :  { %v3697_v52 = vpop.eup %2752  ;;  %v1538_v50 = vceil.f32 %v1500_v22  ;;  %5138 = vst [vmem:[#allocation19_spill] sm:$0xff] %v3734_v24  ;;  %v3752_v24 = vcvt.s32.f32 %v913_v16  ;;  %v2824_v39 = vmov 0   ;;  %v3778_v44 = vcvt.s32.f32 %v1168_v17 }
 0x141   :  { %v3700_v27 = vpop.xlane.xlu0 %534  ;;  %v1501_v14 = vmul.f32 15.0, %v3697_v52  ;;  %v3714_v55 = vpop.eup %2754  ;;  %v2587_v41 = vtrunc.f32 %v1537_v7  ;;  %v3736_v7 = vcvt.s32.f32 %v958_v36  ;;  %2665 = vset.pattern.permute.xlu0 %v2824_v39  ;;  %2671 = vset.pattern.permute.xlu1 %v2824_v39  ;;  %v1093_v39 = vand.u32 65535, %v3545_v4 }
 0x142   :  { %v3705_v63 = vpop.xlane.xlu1 %537  ;;  %v2589_v31 = vtrunc.f32 %v1538_v50  ;;  %v1502_v25 = vmul.f32 15.0, %v3714_v55  ;;  %5143 = vst [vmem:[#allocation44_spill] sm:$0xff] %v3778_v44  ;;  %v3786_v4 = vcvt.s32.f32 %v1033_v57 }
 0x143   :  { %v1539_v43 = vceil.f32 %v1501_v14  ;;  %5139 = vst [vmem:[#allocation40_spill] sm:$0xff] %v3736_v7  ;;  %v2588_v50 = vcvt.f32.s32 %v2587_v41  ;;  %v3756_v41 = vcvt.s32.f32 %v943_v8 }
 0x144   :  { %v3738_v30 = vpop.eup %2756  ;;  %v2590_v14 = vcvt.f32.s32 %v2589_v31  ;;  %v1540_v36 = vceil.f32 %v1502_v25  ;;  %v3768_v25 = vcvt.s32.f32 %v1108_v12  ;;  %5145 = vst [vmem:[#allocation46_spill] sm:$0xff] %v3786_v4  ;;  %v1273_v4 = vand.u32 65535, %v3652_v1 }
 0x145   :  { %v541_v22 = vpop.xlane.xlu0 %540  ;;  %v2591_v54 = vtrunc.f32 %v1539_v43  ;;  %5141 = vst [vmem:[#allocation42_spill] sm:$0xff] %v3756_v41  ;;  %v2511_v31 = vadd.s32 4294967295, %v2588_v50  ;;  %v3765_v43 = vcvt.s32.f32 %v973_v0  ;;  %v1228_v50 = vand.u32 65535, %v3550_v56 }
 0x146   :  { %v3723_v45 = vpop.xlane.xlu1 %543  ;;  %2758 = vrcp.f32 %v541_v22  ;;  %v3748_v22 = vcvt.s32.f32 %v883_v19  ;;  %v1003_v19 = vand.u32 65535, %v3485_v2  ;;  %v2512_v16 = vadd.s32 4294967295, %v2590_v14 }
 0x147   :  { %2760 = vrcp.f32 %v526_v32  ;;  %v3754_v32 = vcvt.s32.f32 %v1048_v6  ;;  %v1063_v6 = vand.u32 65535, %v3525_v53  ;;  %v2592_v8 = vcvt.f32.s32 %v2591_v54 }
 0x148   :  { %v2593_v41 = vtrunc.f32 %v1540_v36  ;;  %v3776_v2 = vcvt.s32.f32 %v1138_v46  ;;  %v3780_v0 = vcvt.s32.f32 %v1198_v21  ;;  %vm1651_vm0 = vcmp.gt.s32.totalorder %v2511_v31, 0 }
 0x149   :  { %v547_v37 = vpop.xlane.xlu0 %546  ;;  %5140 = vst [vmem:[#allocation41_spill] sm:$0xff] %v3754_v32  ;;  %v3784_v12 = vcvt.s32.f32 %v1003_v19  ;;  %v1123_v56 = vand.u32 65535, %v3565_v61  ;;  %vm1653_vm15 = vcmp.gt.s32.totalorder %v2512_v16, 0  ;;  %v3789_v54 = vcvt.s32.f32 %v1063_v6 }
 0x14a   :  { %v3740_v18 = vpop.xlane.xlu1 %549  ;;  %2762 = vrcp.f32 %v547_v37  ;;  %v1503_v37 = vmul.f32 15.0, %v3738_v30  ;;  %5142 = vst [vmem:[#allocation43_spill] sm:$0xff] %v3776_v2  ;;  %5144 = vst [vmem:[#allocation45_spill] sm:$0xff] %v3780_v0  ;;  %v1258_v46 = vand.u32 65535, %v3570_v38  ;;  %v2513_v36 = vadd.s32 4294967295, %v2592_v8 }
 0x14b   :  { %5146 = vst [vmem:[#allocation47_spill] sm:$0xff] %v3789_v54  ;;  %v3794_v21 = vcvt.s32.f32 %v1093_v39  ;;  %v2594_v0 = vcvt.f32.s32 %v2593_v41  ;;  %v1652_v57 = vsel %vm1651_vm0, %v2511_v31, 0  ;;  %v1153_v6 = vand.u32 65535, %v3585_v35 }
 0x14c   :  { %v1541_v14 = vceil.f32 %v1503_v37  ;;  %v3796_v37 = vcvt.s32.f32 %v1228_v50  ;;  %v1654_v38 = vsel %vm1653_vm15, %v2512_v16, 0  ;;  %v3807_v39 = vcvt.s32.f32 %v1123_v56 }
 0x14d   :  { %v553_v7 = vpop.xlane.xlu0 %552  ;;  %5147 = vst [vmem:[#allocation48_spill] sm:$0xff] %v3794_v21  ;;  %v1288_v41 = vand.u32 65535, %v3590_v15  ;;  %v3810_v50 = vcvt.s32.f32 %v1258_v46  ;;  %vm1655_vm2 = vcmp.gt.s32.totalorder %v2513_v36, 0  ;;  %vm1727_vm3 = vcmp.lt.s32.totalorder %v1652_v57, 14 }
 0x14e   :  { %v3759_v60 = vpop.xlane.xlu1 %555  ;;  %5148 = vst [vmem:[#allocation49_spill] sm:$0xff] %v3796_v37  ;;  %2764 = vrcp.f32 %v553_v7  ;;  %v2595_v54 = vtrunc.f32 %v1541_v14  ;;  %5149 = vst [vmem:[#allocation50_spill] sm:$0xff] %v3807_v39  ;;  %v1183_v37 = vand.u32 65535, %v3603_v51  ;;  %v2514_v31 = vadd.s32 4294967295, %v2594_v0 }
 0x14f   :  { %2766 = vrcp.f32 %v3691_v47  ;;  %5150 = vst [vmem:[#allocation51_spill] sm:$0xff] %v3810_v50  ;;  %vm1729_vm4 = vcmp.lt.s32.totalorder %v1654_v38, 14  ;;  %v3817_v14 = vcvt.s32.f32 %v1153_v6  ;;  %v1318_v56 = vand.u32 65535, %v3608_v29 }
 0x150   :  { %v3772_v32 = vpop.eup %2758  ;;  %v2596_v15 = vcvt.f32.s32 %v2595_v54  ;;  %v3822_v50 = vcvt.s32.f32 %v1288_v41  ;;  %v1213_v51 = vand.u32 65535, %v3620_v48  ;;  %v1243_v39 = vand.u32 65535, %v3636_v10 }
 0x151   :  { %v3774_v9 = vpop.xlane.xlu0 %558  ;;  %v3792_v17 = vpop.eup %2760  ;;  %v1509_v19 = vmul.f32 15.0, %v3772_v32  ;;  %5151 = vst [vmem:[#allocation52_spill] sm:$0xff] %v3817_v14  ;;  %v1656_v0 = vsel %vm1655_vm2, %v2513_v36, 0  ;;  %v3826_v21 = vcvt.s32.f32 %v1183_v37  ;;  %v1730_v6 = vsel %vm1729_vm4, %v1654_v38, 14 }
 0x152   :  { %v3782_v53 = vpop.xlane.xlu1 %561  ;;  %v1504_v7 = vmul.f32 15.0, %v3792_v17  ;;  %5152 = vst [vmem:[#allocation53_spill] sm:$0xff] %v3822_v50  ;;  %vm1657_vm5 = vcmp.gt.s32.totalorder %v2514_v31, 0  ;;  %v1303_v41 = vand.u32 65535, %v3667_v42  ;;  %v1333_v50 = vand.u32 65535, %v3677_v49 }
 0x153   :  { %v1547_v35 = vceil.f32 %v1509_v19  ;;  %v1728_v19 = vsel %vm1727_vm3, %v1652_v57, 14  ;;  %vm1731_vm6 = vcmp.lt.s32.totalorder %v1656_v0, 14  ;;  %v2515_v48 = vadd.s32 4294967295, %v2596_v15 }
 0x154   :  { %v3799_v44 = vpop.eup %2762  ;;  %v1542_v2 = vceil.f32 %v1504_v7  ;;  %v789_v10 = vcvt.f32.s32 %v3627_v5  ;;  %v3836_v37 = vcvt.s32.f32 %v1318_v56  ;;  %v3838_v1 = vcvt.s32.f32 %v1213_v51 }
 0x155   :  { %v3801_v61 = vpop.xlane.xlu0 %564  ;;  %v1511_v16 = vmul.f32 15.0, %v3799_v44  ;;  %v2607_v14 = vtrunc.f32 %v1547_v35  ;;  %v3840_v57 = vcvt.s32.f32 %v1243_v39  ;;  %vm1803_vm7 = vcmp.eq.s32.totalorder %v1728_v19, %v3112_v34 }
 0x156   :  { %v3805_v8 = vpop.xlane.xlu1 %567  ;;  %5153 = vst [vmem:[#allocation54_spill] sm:$0xff] %v3836_v37  ;;  %5154 = vst [vmem:[#allocation55_spill] sm:$0xff] %v3838_v1  ;;  %vm1804_vm8 = vcmp.eq.s32.totalorder %v1730_v6, %v3112_v34  ;;  %2768 = vrcp.f32 %v3694_v26  ;;  %v1658_v42 = vsel %vm1657_vm5, %v2514_v31, 0  ;;  %v1732_v5 = vsel %vm1731_vm6, %v1656_v0, 14 }
 0x157   :  { %v1549_v29 = vceil.f32 %v1511_v16  ;;  %5155 = vst [vmem:[#allocation56_spill] sm:$0xff] %v3840_v57  ;;  %v2608_v7 = vcvt.f32.s32 %v2607_v14  ;;  %v2597_v16 = vtrunc.f32 %v1542_v2  ;;  %v3852_v39 = vcvt.s32.f32 %v1273_v4  ;;  %v5166_v57 = vld [vmem:[#allocation13_spill] sm:$0xff] }
 0x158   :  { %v3842_v38 = vpop.eup %2764  ;;  %v3854_v15 = vcvt.s32.f32 %v1303_v41  ;;  %v3856_v51 = vcvt.s32.f32 %v1333_v50  ;;  %vm1659_vm9 = vcmp.gt.s32.totalorder %v2515_v48, 0  ;;  %v5000_v19 = vmov 0.0  }
 0x159   :  { %v3815_v47 = vpop.xlane.xlu0 %570  ;;  %v3848_v49 = vpop.eup %2766  ;;  %v2611_v35 = vtrunc.f32 %v1549_v29  ;;  %5156 = vst [vmem:[#allocation57_spill] sm:$0xff] %v3852_v39  ;;  %v3859_v26 = vsel %vm1803_vm7, 1.0, %v5000_v19  ;;  %v3862_v31 = vsel %vm1804_vm8, 1.0, %v5000_v19  ;;  %vm1733_vm10 = vcmp.lt.s32.totalorder %v1658_v42, 14 }
 0x15a   :  { %v3820_v46 = vpop.xlane.xlu1 %573  ;;  %5157 = vst [vmem:[#allocation58_spill] sm:$0xff] %v3854_v15  ;;  %5158 = vst [vmem:[#allocation59_spill] sm:$0xff] %v3856_v51  ;;  %v1513_v2 = vmul.f32 15.0, %v3842_v38  ;;  %v3867_v14 = vshll.u32 %v789_v10, 16  ;;  %vm1805_vm12 = vcmp.eq.s32.totalorder %v1732_v5, %v3112_v34  ;;  %v1505_v4 = vmul.f32 15.0, %v3848_v49 }
 0x15b   :  { %5159 = vst [vmem:[#allocation60_spill] sm:$0xff] %v3859_v26  ;;  %5160 = vst [vmem:[#allocation61_spill] sm:$0xff] %v3862_v31  ;;  %v2521_v50 = vadd.s32 4294967295, %v2608_v7  ;;  %v1660_v6 = vsel %vm1659_vm9, %v2515_v48, 0  ;;  %v2612_v29 = vcvt.f32.s32 %v2611_v35  ;;  %v2598_v41 = vcvt.f32.s32 %v2597_v16 }
 0x15c   :  { %5161 = vst [vmem:[#allocation62_spill] sm:$0xff] %v3867_v14  ;;  %v2039_v19 = vmul.f32 %v3686_v3, %v3859_v26  ;;  %v2040_v51 = vmul.f32 %v3689_v58, %v3862_v31  ;;  %2770 = vrcp.f32 %v3700_v27  ;;  %v1734_v10 = vsel %vm1733_vm10, %v1658_v42, 14 }
 0x15d   :  { %v3829_v54 = vpop.xlane.xlu0 %576  ;;  %2772 = vrcp.f32 %v3705_v63  ;;  %v1956_v48 = vsel %vm1955_vm11, %v3859_v26, 0.0  ;;  %v1957_v7 = vsel %vm1955_vm11, %v3862_v31, 0.0  ;;  %v1551_v35 = vceil.f32 %v1513_v2 }
 0x15e   :  { %v3834_v36 = vpop.xlane.xlu1 %579  ;;  %2774 = vrcp.f32 %v3723_v45  ;;  %v5162_v3 = vmov 0.0   ;;  %vm1735_vm13 = vcmp.lt.s32.totalorder %v1660_v6, 14  ;;  %v1543_v27 = vceil.f32 %v1505_v4 }
 0x15f   :  { %v3889_v58 = vsel %vm1805_vm12, 1.0, %v5162_v3  ;;  %vm1806_vm14 = vcmp.eq.s32.totalorder %v1734_v10, %v3112_v34  ;;  %vm1671_vm0 = vcmp.gt.s32.totalorder %v2521_v50, 0  ;;  %v2523_v63 = vadd.s32 4294967295, %v2612_v29 }
 0x160   :  { %5163 = vst [vmem:[#allocation63_spill] sm:$0xff] %v3889_v58  ;;  %v2516_v42 = vadd.s32 4294967295, %v2598_v41  ;;  %v3892_v16 = vpop.eup %2768  ;;  %2776 = vrcp.f32 %v3740_v18  ;;  %v1958_v2 = vadd.f32 %v1957_v7, %v1956_v48  ;;  %v2077_v45 = vsel %vm1955_vm11, %v2039_v19, 0.0 }
 0x161   :  { %v3850_v56 = vpop.xlane.xlu0 %582  ;;  %v2078_v5 = vsel %vm1955_vm11, %v2040_v51, 0.0  ;;  %v1959_v4 = vsel %vm1955_vm11, %v3889_v58, 0.0  ;;  %v2041_v29 = vmul.f32 %v3697_v52, %v3889_v58  ;;  %v1736_v41 = vsel %vm1735_vm13, %v1660_v6, 14 }
 0x162   :  { %v3864_v0 = vpop.xlane.xlu1 %585  ;;  %v2615_v14 = vtrunc.f32 %v1551_v35  ;;  %2778 = vrcp.f32 %v3774_v9  ;;  %v3909_v18 = vsel %vm1806_vm14, 1.0, %v5162_v3  ;;  %v1672_v19 = vsel %vm1671_vm0, %v2521_v50, 0 }
 0x163   :  { %5164 = vst [vmem:[#allocation64_spill] sm:$0xff] %v3909_v18  ;;  %v2599_v51 = vtrunc.f32 %v1543_v27  ;;  %v804_v48 = vcvt.f32.s32 %v3643_v59  ;;  %2780 = vrcp.f32 %v3759_v60  ;;  %vm1675_vm15 = vcmp.gt.s32.totalorder %v2523_v63, 0 }
 0x164   :  { %vm1661_vm2 = vcmp.gt.s32.totalorder %v2516_v42, 0  ;;  %v1960_v52 = vadd.f32 %v1959_v4, %v1958_v2  ;;  %v2079_v6 = vadd.f32 %v2078_v5, %v2077_v45  ;;  %vm1807_vm3 = vcmp.eq.s32.totalorder %v1736_v41, %v3112_v34 }
 0x165   :  { %v3876_v15 = vpop.xlane.xlu0 %588  ;;  %v1506_v9 = vmul.f32 15.0, %v3892_v16  ;;  %v2080_v35 = vsel %vm1955_vm11, %v2041_v29, 0.0  ;;  %v1961_v50 = vsel %vm1955_vm11, %v3909_v18, 0.0  ;;  %vm1747_vm4 = vcmp.lt.s32.totalorder %v1672_v19, 14 }
 0x166   :  { %v3879_v39 = vpop.xlane.xlu1 %591  ;;  %v2616_v59 = vcvt.f32.s32 %v2615_v14  ;;  %v3923_v60 = vpop.eup %2770  ;;  %v2042_v27 = vmul.f32 %v3714_v55, %v3909_v18  ;;  %v1676_v2 = vsel %vm1675_vm15, %v2523_v63, 0  ;;  %v1662_v45 = vsel %vm1661_vm2, %v2516_v42, 0 }
 0x167   :  { %v2600_v5 = vcvt.f32.s32 %v2599_v51  ;;  %v3927_v4 = vpop.eup %2772  ;;  %v3929_v58 = vshll.u32 %v804_v48, 16  ;;  %v819_v1 = vcvt.f32.s32 %v5166_v57  ;;  %2782 = vrcp.f32 %v3782_v53 }
 0x168   :  { %v3936_v14 = vsel %vm1807_vm3, 1.0, %v5162_v3  ;;  %v3938_v29 = vpop.eup %2774  ;;  %2784 = vrcp.f32 %v3801_v61  ;;  %v2081_v63 = vadd.f32 %v2080_v35, %v2079_v6  ;;  %v1748_v42 = vsel %vm1747_vm4, %v1672_v19, 14 }
 0x169   :  { %v3895_v26 = vpop.xlane.xlu0 %594  ;;  %5165 = vst [vmem:[#allocation65_spill] sm:$0xff] %v3929_v58  ;;  %5167 = vst [vmem:[#allocation13_spill] sm:$0xff] %v3936_v14  ;;  %v1544_v51 = vceil.f32 %v1506_v9  ;;  %v1962_v57 = vadd.f32 %v1961_v50, %v1960_v52  ;;  %vm1751_vm5 = vcmp.lt.s32.totalorder %v1676_v2, 14  ;;  %vm1737_vm6 = vcmp.lt.s32.totalorder %v1662_v45, 14 }
 0x16a   :  { %v3899_v31 = vpop.xlane.xlu1 %597  ;;  %v2525_v53 = vadd.s32 4294967295, %v2616_v59  ;;  %v3946_v18 = vpop.eup %2776  ;;  %v2082_v41 = vsel %vm1955_vm11, %v2042_v27, 0.0  ;;  %v1963_v58 = vsel %vm1955_vm11, %v3936_v14, 0.0  ;;  %v2043_v61 = vmul.f32 %v3738_v30, %v3936_v14 }
 0x16b   :  { %v2517_v6 = vadd.s32 4294967295, %v2600_v5  ;;  %v3953_v35 = vshll.u32 %v819_v1, 16  ;;  %2786 = vrcp.f32 %v3805_v8  ;;  %vm1813_vm7 = vcmp.eq.s32.totalorder %v1748_v42, %v3112_v34 }
 0x16c   :  { %v1507_v19 = vmul.f32 15.0, %v3923_v60  ;;  %v3958_v52 = vpop.eup %2778  ;;  %2788 = vrcp.f32 %v3815_v47  ;;  %v1752_v50 = vsel %vm1751_vm5, %v1676_v2, 14  ;;  %v1738_v59 = vsel %vm1737_vm6, %v1662_v45, 14 }
 0x16d   :  { %v3914_v7 = vpop.xlane.xlu0 %600  ;;  %5168 = vst [vmem:[#allocation66_spill] sm:$0xff] %v3953_v35  ;;  %v2601_v27 = vtrunc.f32 %v1544_v51  ;;  %v3963_v37 = vpop.eup %2780  ;;  %2790 = vrcp.f32 %v3820_v46  ;;  %v2083_v8 = vadd.f32 %v2082_v41, %v2081_v63  ;;  %v1964_v1 = vadd.f32 %v1963_v58, %v1962_v57 }
 0x16e   :  { %v3918_v10 = vpop.xlane.xlu1 %603  ;;  %vm1679_vm8 = vcmp.gt.s32.totalorder %v2525_v53, 0  ;;  %2792 = vrcp.f32 %v3829_v54  ;;  %v3970_v5 = vsel %vm1813_vm7, 1.0, %v5162_v3  ;;  %v2084_v47 = vsel %vm1955_vm11, %v2043_v61, 0.0 }
 0x16f   :  { %5169 = vst [vmem:[#allocation67_spill] sm:$0xff] %v3970_v5  ;;  %vm1663_vm9 = vcmp.gt.s32.totalorder %v2517_v6, 0  ;;  %vm1815_vm10 = vcmp.eq.s32.totalorder %v1752_v50, %v3112_v34  ;;  %vm1808_vm12 = vcmp.eq.s32.totalorder %v1738_v59, %v3112_v34  ;;  %v1515_v2 = vmul.f32 15.0, %v3958_v52  ;;  %v5176_v59 = vld [vmem:[#allocation30_spill] sm:$0xff] }
 0x170   :  { %v1545_v46 = vceil.f32 %v1507_v19  ;;  %2794 = vrcp.f32 %v3834_v36  ;;  %v1680_v58 = vsel %vm1679_vm8, %v2525_v53, 0  ;;  %v2602_v63 = vcvt.f32.s32 %v2601_v27  ;;  %v5171_v36 = vld [vmem:[#allocation29_spill] sm:$0xff] }
 0x171   :  { %v3941_v55 = vpop.xlane.xlu0 %606  ;;  %v1508_v54 = vmul.f32 15.0, %v3927_v4  ;;  %v3980_v42 = vpop.eup %2782  ;;  %2796 = vrcp.f32 %v3850_v56  ;;  %v2049_v57 = vmul.f32 %v3772_v32, %v3970_v5  ;;  %v3987_v41 = vadd.f32 %v2084_v47, %v2083_v8 }
 0x172   :  { %v3944_v48 = vpop.xlane.xlu1 %609  ;;  %v1664_v61 = vsel %vm1663_vm9, %v2517_v6, 0  ;;  %v3989_v19 = vpop.eup %2784  ;;  %v3995_v53 = vsel %vm1955_vm11, %v3970_v5, 0.0  ;;  %v4000_v56 = vsel %vm1815_vm10, 1.0, %v5162_v3  ;;  %v4005_v32 = vsel %vm1808_vm12, 1.0, %v5162_v3 }
 0x173   :  { %5172 = vst [vmem:[#allocation29_spill] sm:$0xff] %v4000_v56  ;;  %5173 = vst [vmem:[#allocation69_spill] sm:$0xff] %v4005_v32  ;;  %vm1755_vm14 = vcmp.lt.s32.totalorder %v1680_v58, 14  ;;  %v1553_v27 = vceil.f32 %v1515_v2  ;;  %v2603_v8 = vtrunc.f32 %v1545_v46  ;;  %2798 = vrcp.f32 %v3864_v0 }
 0x174   :  { %vm1739_vm0 = vcmp.lt.s32.totalorder %v1664_v61, 14  ;;  %v1546_v50 = vceil.f32 %v1508_v54  ;;  %v1965_v2 = vsel %vm1955_vm11, %v4005_v32, 0.0  ;;  %v2044_v0 = vmul.f32 %v3792_v17, %v4005_v32  ;;  %v5177_v54 = vld [vmem:[#allocation31_spill] sm:$0xff] }
 0x175   :  { %v3961_v9 = vpop.xlane.xlu0 %612  ;;  %v4011_v5 = vpop.eup %2786  ;;  %v1740_v17 = vsel %vm1739_vm0, %v1664_v61, 14  ;;  %v2619_v32 = vtrunc.f32 %v1553_v27  ;;  %2800 = vrcp.f32 %v3876_v15 }
 0x176   :  { %v3966_v30 = vpop.xlane.xlu1 %615  ;;  %v4024_v46 = vpop.eup %2788  ;;  %vm1809_vm7 = vcmp.eq.s32.totalorder %v1740_v17, %v3112_v34  ;;  %2802 = vrcp.f32 %v3879_v39 }
 0x177   :  { %v4082_v39 = vsel %vm1809_vm7, 1.0, %v5162_v3  ;;  %2804 = vrcp.f32 %v3895_v26 }
 0x178   :  { %2806 = vrcp.f32 %v3899_v31 }
 0x179   :  { %v3977_v45 = vpop.xlane.xlu0 %618  ;;  %2808 = vrcp.f32 %v3914_v7 }
 0x17a   :  { %v3983_v51 = vpop.xlane.xlu1 %902  ;;  %2810 = vrcp.f32 %v3918_v10 }
 0x17b   :  { %5170 = vst [vmem:[#allocation68_spill] sm:$0xff] %v3983_v51  ;;  %vm904_vm13 = vcmp.eq.f32.partialorder %v5171_v36, %v3983_v51  ;;  %v2518_v36 = vadd.s32 4294967295, %v2602_v63  ;;  %2812 = vrcp.f32 %v3941_v55 }
 0x17c   :  { %v905_v6 = vsel %vm904_vm13, %v3727_v28, inf  ;;  %v4018_v28 = vsel %vm1955_vm11, %v2049_v57, 0.0  ;;  %v1756_v57 = vsel %vm1755_vm14, %v1680_v58, 14  ;;  %v2605_v58 = vtrunc.f32 %v1546_v50  ;;  %v5183_v50 = vld [vmem:[#allocation40_spill] sm:$0xff] }
 0x17d   :  { %906 = vmin.xlane.f32.xlu0 %v905_v6  ;;  %v4009_v47 = vpop.xlane.xlu0 %827  ;;  %v4031_v6 = vsel %vm1955_vm11, %v4000_v56, 0.0  ;;  %vm1665_vm3 = vcmp.gt.s32.totalorder %v2518_v36, 0  ;;  %vm1817_vm5 = vcmp.eq.s32.totalorder %v1756_v57, %v3112_v34  ;;  %2814 = vrcp.f32 %v3944_v48  ;;  %v5194_v48 = vld [vmem:[#allocation2_spill] sm:$0xff] }
 0x17e   :  { %5174 = vst [vmem:[#allocation70_spill] sm:$0xff] %v4009_v47  ;;  %v4013_v14 = vpop.xlane.xlu1 %932  ;;  %vm829_vm15 = vcmp.eq.f32.partialorder %v5176_v59, %v4009_v47  ;;  %v4034_v59 = vpop.eup %2790  ;;  %v2604_v47 = vcvt.f32.s32 %v2603_v8  ;;  %v5181_v8 = vld [vmem:[#allocation19_spill] sm:$0xff]  ;;  %2816 = vrcp.f32 %v3961_v9 }
 0x17f   :  { %5175 = vst [vmem:[#allocation71_spill] sm:$0xff] %v4013_v14  ;;  %v830_v63 = vsel %vm829_vm15, %v3730_v20, inf  ;;  %vm934_vm2 = vcmp.eq.f32.partialorder %v5177_v54, %v4013_v14  ;;  %v4038_v35 = vpop.eup %2792  ;;  %v2051_v54 = vmul.f32 %v3799_v44, %v4000_v56  ;;  %v4044_v14 = vadd.f32 %v1965_v2, %v1964_v1  ;;  %v5182_v44 = vld [vmem:[#allocation33_spill] sm:$0xff] }
 0x180   :  { %831 = vmin.xlane.f32.xlu1 %v830_v63  ;;  %v935_v51 = vsel %vm934_vm2, %v3732_v13, inf  ;;  %v5179_v13 = vld [vmem:[#allocation32_spill] sm:$0xff]  ;;  %v4053_v27 = vpop.eup %2794  ;;  %v2086_v1 = vsel %vm1955_vm11, %v2044_v0, 0.0  ;;  %v2620_v56 = vcvt.f32.s32 %v2619_v32  ;;  %v2606_v0 = vcvt.f32.s32 %v2605_v58  ;;  %5187 = vst [vmem:[#allocation33_spill] sm:$0xff] %v4082_v39  ;;  %v5188_v58 = vld [vmem:[#allocation35_spill] sm:$0xff] }
 0x181   :  { %936 = vmin.xlane.f32.xlu0 %v935_v51  ;;  %v4040_v20 = vpop.xlane.xlu0 %842  ;;  %v1517_v51 = vmul.f32 15.0, %v3989_v19  ;;  %5180 = vst [vmem:[#allocation31_spill] sm:$0xff] %v4053_v27  ;;  %v4060_v15 = vpop.eup %2796  ;;  %v4077_v32 = vsel %vm1955_vm11, %v2051_v54, 0.0  ;;  %v1521_v9 = vmul.f32 15.0, %v4038_v35  ;;  %2818 = vrcp.f32 %v3966_v30  ;;  %v5204_v30 = vld [vmem:[#allocation21_spill] sm:$0xff] }
 0x182   :  { %5178 = vst [vmem:[#allocation30_spill] sm:$0xff] %v4040_v20  ;;  %vm844_vm4 = vcmp.eq.f32.partialorder %v5179_v13, %v4040_v20  ;;  %v4049_v61 = vpop.xlane.xlu1 %962  ;;  %v1666_v13 = vsel %vm1665_vm3, %v2518_v36, 0  ;;  %v2519_v20 = vadd.s32 4294967295, %v2604_v47  ;;  %v4084_v36 = vpop.eup %2798  ;;  %v2527_v17 = vadd.s32 4294967295, %v2620_v56 }
 0x183   :  { %v845_v63 = vsel %vm844_vm4, %v5181_v8, inf  ;;  %vm964_vm6 = vcmp.eq.f32.partialorder %v5182_v44, %v4049_v61  ;;  %v4069_v8 = vsel %vm1817_vm5, 1.0, %v5162_v3  ;;  %v1510_v44 = vmul.f32 15.0, %v3938_v29 }
 0x184   :  { %846 = vmin.xlane.f32.xlu1 %v845_v63  ;;  %v965_v2 = vsel %vm964_vm6, %v5183_v50, inf  ;;  %5184 = vst [vmem:[#allocation32_spill] sm:$0xff] %v4069_v8  ;;  %v5185_v63 = vld [vmem:[#allocation34_spill] sm:$0xff]  ;;  %v1555_v47 = vceil.f32 %v1517_v51  ;;  %vm1741_vm10 = vcmp.lt.s32.totalorder %v1666_v13, 14  ;;  %vm1667_vm12 = vcmp.gt.s32.totalorder %v2519_v20, 0 }
 0x185   :  { %966 = vmin.xlane.f32.xlu0 %v965_v2  ;;  %v4064_v27 = vpop.xlane.xlu0 %857  ;;  %v2087_v2 = vadd.f32 %v2086_v1, %v3987_v41  ;;  %v5189_v41 = vld [vmem:[#allocation36_spill] sm:$0xff]  ;;  %v4107_v1 = vsel %vm1955_vm11, %v4069_v8, 0.0  ;;  %vm1683_vm14 = vcmp.gt.s32.totalorder %v2527_v17, 0  ;;  %2820 = vrcp.f32 %v3977_v45 }
 0x186   :  { %vm859_vm8 = vcmp.eq.f32.partialorder %v5185_v63, %v4064_v27  ;;  %v4074_v50 = vpop.xlane.xlu1 %992  ;;  %v2053_v63 = vmul.f32 %v3842_v38, %v4069_v8  ;;  %v1742_v38 = vsel %vm1741_vm10, %v1666_v13, 14  ;;  %v2623_v56 = vtrunc.f32 %v1555_v47 }
 0x187   :  { %5186 = vst [vmem:[#allocation19_spill] sm:$0xff] %v4074_v50  ;;  %v860_v57 = vsel %vm859_vm8, %v3742_v62, inf  ;;  %vm994_vm9 = vcmp.eq.f32.partialorder %v5188_v58, %v4074_v50  ;;  %v2045_v62 = vmul.f32 %v3848_v49, %v4082_v39  ;;  %v2520_v58 = vadd.s32 4294967295, %v2606_v0  ;;  %v4109_v0 = vpop.eup %2800 }
 0x188   :  { %861 = vmin.xlane.f32.xlu1 %v860_v57  ;;  %v995_v54 = vsel %vm994_vm9, %v3744_v40, inf  ;;  %v1548_v50 = vceil.f32 %v1510_v44  ;;  %v1668_v49 = vsel %vm1667_vm12, %v2519_v20, 0  ;;  %v4113_v31 = vsel %vm1955_vm11, %v2053_v63, 0.0  ;;  %v5190_v20 = vld [vmem:[#allocation37_spill] sm:$0xff]  ;;  %v5191_v63 = vld [vmem:[#allocation38_spill] sm:$0xff] }
 0x189   :  { %996 = vmin.xlane.f32.xlu0 %v995_v54  ;;  %v4094_v51 = vpop.xlane.xlu0 %872  ;;  %v2088_v7 = vsel %vm1955_vm11, %v2045_v62, 0.0  ;;  %vm1810_vm0 = vcmp.eq.s32.totalorder %v1742_v38, %v3112_v34  ;;  %vm1669_vm15 = vcmp.gt.s32.totalorder %v2520_v58, 0  ;;  %vm1743_vm3 = vcmp.lt.s32.totalorder %v1668_v49, 14 }
 0x18a   :  { %vm874_vm13 = vcmp.eq.f32.partialorder %v5189_v41, %v4094_v51  ;;  %v4101_v40 = vpop.xlane.xlu1 %621  ;;  %v2609_v13 = vtrunc.f32 %v1548_v50  ;;  %v2624_v47 = vcvt.f32.s32 %v2623_v56  ;;  %v1512_v57 = vmul.f32 15.0, %v3946_v18  ;;  %v4126_v50 = vpop.eup %2802 }
 0x18b   :  { %v875_v26 = vsel %vm874_vm13, %v3746_v33, inf  ;;  %v1967_v33 = vsel %vm1955_vm11, %v4082_v39, 0.0  ;;  %v1684_v62 = vsel %vm1683_vm14, %v2527_v17, 0  ;;  %v2089_v55 = vadd.f32 %v2088_v7, %v2087_v2  ;;  %v5196_v2 = vld [vmem:[#allocation39_spill] sm:$0xff]  ;;  %v5200_v39 = vld [vmem:[#allocation42_spill] sm:$0xff] }
 0x18c   :  { %876 = vmin.xlane.f32.xlu1 %v875_v26  ;;  %v1670_v26 = vsel %vm1669_vm15, %v2520_v58, 0  ;;  %v2610_v56 = vcvt.f32.s32 %v2609_v13  ;;  %v1968_v8 = vadd.f32 %v1967_v33, %v4044_v14  ;;  %v1744_v17 = vsel %vm1743_vm3, %v1668_v49, 14  ;;  %v4148_v13 = vpop.eup %2804  ;;  %v5197_v49 = vld [vmem:[#allocation41_spill] sm:$0xff] }
 0x18d   :  { %v4115_v44 = vpop.xlane.xlu0 %887  ;;  %vm1759_vm6 = vcmp.lt.s32.totalorder %v1684_v62, 14  ;;  %v1550_v58 = vceil.f32 %v1512_v57  ;;  %vm1745_vm8 = vcmp.lt.s32.totalorder %v1670_v26, 14  ;;  %v1519_v38 = vmul.f32 15.0, %v4024_v46  ;;  %v4154_v33 = vpop.eup %2806 }
 0x18e   :  { %vm889_vm2 = vcmp.eq.f32.partialorder %v5190_v20, %v4115_v44  ;;  %v4123_v10 = vpop.xlane.xlu1 %1022  ;;  %vm1811_vm9 = vcmp.eq.s32.totalorder %v1744_v17, %v3112_v34  ;;  %v4159_v57 = vpop.eup %2808  ;;  %v1559_v17 = vceil.f32 %v1521_v9  ;;  %2822 = vrcp.f32 %v4101_v40  ;;  %v5255_v40 = vld [vmem:[#allocation16_spill] sm:$0xff] }
 0x18f   :  { %v890_v54 = vsel %vm889_vm2, %v3748_v22, inf  ;;  %vm1024_vm4 = vcmp.eq.f32.partialorder %v5191_v63, %v4123_v10  ;;  %v4141_v22 = vsel %vm1810_vm0, 1.0, %v5162_v3 }
 0x190   :  { %891 = vmin.xlane.f32.xlu1 %v890_v54  ;;  %v1025_v41 = vsel %vm1024_vm4, %v3750_v11, inf  ;;  %5193 = vst [vmem:[#allocation34_spill] sm:$0xff] %v4141_v22  ;;  %v2529_v11 = vadd.s32 4294967295, %v2624_v47  ;;  %v2522_v47 = vadd.s32 4294967295, %v2610_v56  ;;  %v1969_v63 = vsel %vm1955_vm11, %v4141_v22, 0.0 }
 0x191   :  { %1026 = vmin.xlane.f32.xlu0 %v1025_v41  ;;  %v4135_v20 = vpop.xlane.xlu0 %917  ;;  %v2046_v41 = vmul.f32 %v3892_v16, %v4141_v22  ;;  %v4182_v16 = vsel %vm1811_vm9, 1.0, %v5162_v3  ;;  %v1970_v22 = vadd.f32 %v1969_v63, %v1968_v8 }
 0x192   :  { %5192 = vst [vmem:[#allocation40_spill] sm:$0xff] %v4135_v20  ;;  %vm919_vm5 = vcmp.eq.f32.partialorder %v5194_v48, %v4135_v20  ;;  %v4146_v54 = vpop.xlane.xlu1 %1052  ;;  %v1760_v48 = vsel %vm1759_vm6, %v1684_v62, 14  ;;  %vm1687_vm12 = vcmp.gt.s32.totalorder %v2529_v11, 0  ;;  %v5201_v20 = vld [vmem:[#allocation3_spill] sm:$0xff]  ;;  %5202 = vst [vmem:[#allocation37_spill] sm:$0xff] %v4182_v16  ;;  %v1557_v62 = vceil.f32 %v1519_v38 }
 0x193   :  { %5195 = vst [vmem:[#allocation35_spill] sm:$0xff] %v4146_v54  ;;  %v920_v14 = vsel %vm919_vm5, %v3752_v24, inf  ;;  %vm1054_vm7 = vcmp.eq.f32.partialorder %v5196_v2, %v4146_v54  ;;  %v5198_v2 = vld [vmem:[#allocation20_spill] sm:$0xff]  ;;  %vm1673_vm14 = vcmp.gt.s32.totalorder %v2522_v47, 0  ;;  %vm1819_vm0 = vcmp.eq.s32.totalorder %v1760_v48, %v3112_v34  ;;  %v5210_v48 = vld [vmem:[#allocation22_spill] sm:$0xff] }
 0x194   :  { %921 = vmin.xlane.f32.xlu1 %v920_v14  ;;  %v1055_v7 = vsel %vm1054_vm7, %v5197_v49, inf  ;;  %v4169_v14 = vpop.eup %2810  ;;  %v1746_v49 = vsel %vm1745_vm8, %v1670_v26, 14  ;;  %v2047_v8 = vmul.f32 %v3923_v60, %v4182_v16  ;;  %v1674_v9 = vsel %vm1673_vm14, %v2522_v47, 0 }
 0x195   :  { %1056 = vmin.xlane.f32.xlu0 %v1055_v7  ;;  %v4161_v24 = vpop.xlane.xlu0 %947  ;;  %v2613_v7 = vtrunc.f32 %v1550_v58  ;;  %v4186_v26 = vpop.eup %2812  ;;  %vm1812_vm15 = vcmp.eq.s32.totalorder %v1746_v49, %v3112_v34  ;;  %v2631_v47 = vtrunc.f32 %v1559_v17  ;;  %vm1749_vm6 = vcmp.lt.s32.totalorder %v1674_v9, 14 }
 0x196   :  { %vm949_vm10 = vcmp.eq.f32.partialorder %v5198_v2, %v4161_v24  ;;  %v4173_v56 = vpop.xlane.xlu1 %1082  ;;  %v4193_v58 = vpop.eup %2814  ;;  %v4215_v60 = vsel %vm1812_vm15, 1.0, %v5162_v3  ;;  %v2092_v49 = vsel %vm1955_vm11, %v2047_v8, 0.0 }
 0x197   :  { %5199 = vst [vmem:[#allocation36_spill] sm:$0xff] %v4173_v56  ;;  %v950_v54 = vsel %vm949_vm10, %v5200_v39, inf  ;;  %vm1084_vm13 = vcmp.eq.f32.partialorder %v5201_v20, %v4173_v56  ;;  %v2090_v20 = vsel %vm1955_vm11, %v2046_v41, 0.0  ;;  %v2614_v38 = vcvt.f32.s32 %v2613_v7  ;;  %v5206_v41 = vld [vmem:[#allocation4_spill] sm:$0xff]  ;;  %5208 = vst [vmem:[#allocation41_spill] sm:$0xff] %v4215_v60 }
 0x198   :  { %951 = vmin.xlane.f32.xlu1 %v950_v54  ;;  %v1085_v2 = vsel %vm1084_vm13, %v3761_v23, inf  ;;  %v1688_v54 = vsel %vm1687_vm12, %v2529_v11, 0  ;;  %v1971_v11 = vsel %vm1955_vm11, %v4182_v16, 0.0  ;;  %v2048_v17 = vmul.f32 %v3927_v4, %v4215_v60 }
 0x199   :  { %1086 = vmin.xlane.f32.xlu0 %v1085_v2  ;;  %v4188_v39 = vpop.xlane.xlu0 %977  ;;  %v2627_v2 = vtrunc.f32 %v1557_v62  ;;  %vm1763_vm4 = vcmp.lt.s32.totalorder %v1688_v54, 14 }
 0x19a   :  { %5203 = vst [vmem:[#allocation38_spill] sm:$0xff] %v4188_v39  ;;  %vm979_vm2 = vcmp.eq.f32.partialorder %v5204_v30, %v4188_v39  ;;  %v4197_v23 = vpop.xlane.xlu1 %1112  ;;  %v2091_v30 = vadd.f32 %v2090_v20, %v2089_v55  ;;  %v4210_v39 = vsel %vm1819_vm0, 1.0, %v5162_v3  ;;  %v4222_v55 = vpop.eup %2816  ;;  %v5212_v20 = vld [vmem:[#allocation5_spill] sm:$0xff] }
 0x19b   :  { %5205 = vst [vmem:[#allocation2_spill] sm:$0xff] %v4197_v23  ;;  %v980_v63 = vsel %vm979_vm2, %v3765_v43, inf  ;;  %vm1114_vm3 = vcmp.eq.f32.partialorder %v5206_v41, %v4197_v23  ;;  %5207 = vst [vmem:[#allocation39_spill] sm:$0xff] %v4210_v39  ;;  %v5213_v41 = vld [vmem:[#allocation43_spill] sm:$0xff]  ;;  %v2055_v8 = vmul.f32 %v3958_v52, %v4210_v39  ;;  %v1973_v52 = vsel %vm1955_vm11, %v4215_v60, 0.0 }
 0x19c   :  { %981 = vmin.xlane.f32.xlu1 %v980_v63  ;;  %v1115_v56 = vsel %vm1114_vm3, %v3768_v25, inf  ;;  %v1523_v25 = vmul.f32 15.0, %v4060_v15  ;;  %v2628_v63 = vcvt.f32.s32 %v2627_v2  ;;  %v4244_v2 = vpop.eup %2818  ;;  %v2093_v23 = vadd.f32 %v2092_v49, %v2091_v30 }
 0x19d   :  { %1116 = vmin.xlane.f32.xlu0 %v1115_v56  ;;  %v4217_v43 = vpop.xlane.xlu0 %1007  ;;  %v2524_v56 = vadd.s32 4294967295, %v2614_v38  ;;  %v1972_v38 = vadd.f32 %v1971_v11, %v1970_v22  ;;  %v5216_v22 = vld [vmem:[#allocation46_spill] sm:$0xff] }
 0x19e   :  { %5209 = vst [vmem:[#allocation20_spill] sm:$0xff] %v4217_v43  ;;  %vm1009_vm5 = vcmp.eq.f32.partialorder %v5210_v48, %v4217_v43  ;;  %v4226_v7 = vpop.xlane.xlu1 %1142  ;;  %v4237_v48 = vsel %vm1955_vm11, %v4210_v39, 0.0  ;;  %v2632_v43 = vcvt.f32.s32 %v2631_v47  ;;  %v1561_v4 = vceil.f32 %v1523_v25  ;;  %v5217_v11 = vld [vmem:[#allocation6_spill] sm:$0xff]  ;;  %v5218_v47 = vld [vmem:[#allocation44_spill] sm:$0xff]  ;;  %v5222_v39 = vld [vmem:[#allocation47_spill] sm:$0xff] }
 0x19f   :  { %5211 = vst [vmem:[#allocation42_spill] sm:$0xff] %v4226_v7  ;;  %v1010_v62 = vsel %vm1009_vm5, %v3784_v12, inf  ;;  %vm1144_vm7 = vcmp.eq.f32.partialorder %v5212_v20, %v4226_v7  ;;  %v1764_v20 = vsel %vm1763_vm4, %v1688_v54, 14  ;;  %v1750_v7 = vsel %vm1749_vm6, %v1674_v9, 14 }
 0x1a0   :  { %1011 = vmin.xlane.f32.xlu1 %v1010_v62  ;;  %v1145_v16 = vsel %vm1144_vm7, %v5213_v41, inf  ;;  %v5214_v62 = vld [vmem:[#allocation23_spill] sm:$0xff]  ;;  %vm1677_vm9 = vcmp.gt.s32.totalorder %v2524_v56, 0  ;;  %v2094_v54 = vsel %vm1955_vm11, %v2048_v17, 0.0  ;;  %v2531_v9 = vadd.s32 4294967295, %v2628_v63  ;;  %v5220_v17 = vld [vmem:[#allocation24_spill] sm:$0xff] }
 0x1a1   :  { %1146 = vmin.xlane.f32.xlu0 %v1145_v16  ;;  %v4241_v12 = vpop.xlane.xlu0 %1037  ;;  %vm1821_vm12 = vcmp.eq.s32.totalorder %v1764_v20, %v3112_v34  ;;  %vm1814_vm13 = vcmp.eq.s32.totalorder %v1750_v7, %v3112_v34  ;;  %v2533_v49 = vadd.s32 4294967295, %v2632_v43  ;;  %v1974_v45 = vadd.f32 %v1973_v52, %v1972_v38  ;;  %v5228_v52 = vld [vmem:[#allocation25_spill] sm:$0xff] }
 0x1a2   :  { %vm1039_vm8 = vcmp.eq.f32.partialorder %v5214_v62, %v4241_v12  ;;  %v4248_v41 = vpop.xlane.xlu1 %1172  ;;  %v1678_v62 = vsel %vm1677_vm9, %v2524_v56, 0  ;;  %v4272_v43 = vsel %vm1955_vm11, %v2055_v8, 0.0  ;;  %vm1691_vm15 = vcmp.gt.s32.totalorder %v2531_v9, 0  ;;  %v5224_v56 = vld [vmem:[#allocation45_spill] sm:$0xff] }
 0x1a3   :  { %5215 = vst [vmem:[#allocation3_spill] sm:$0xff] %v4248_v41  ;;  %v1040_v16 = vsel %vm1039_vm8, %v5216_v22, inf  ;;  %vm1174_vm10 = vcmp.eq.f32.partialorder %v5217_v11, %v4248_v41  ;;  %v2635_v22 = vtrunc.f32 %v1561_v4  ;;  %v1514_v11 = vmul.f32 15.0, %v3963_v37 }
 0x1a4   :  { %1041 = vmin.xlane.f32.xlu1 %v1040_v16  ;;  %v1175_v25 = vsel %vm1174_vm10, %v5218_v47, inf  ;;  %v2095_v16 = vadd.f32 %v2094_v54, %v2093_v23  ;;  %v1525_v47 = vmul.f32 15.0, %v4109_v0  ;;  %v4283_v23 = vsel %vm1814_vm13, 1.0, %v5162_v3 }
 0x1a5   :  { %1176 = vmin.xlane.f32.xlu0 %v1175_v25  ;;  %v4260_v30 = vpop.xlane.xlu0 %1067  ;;  %v5223_v25 = vld [vmem:[#allocation7_spill] sm:$0xff]  ;;  %5226 = vst [vmem:[#allocation5_spill] sm:$0xff] %v4283_v23  ;;  %vm1753_vm2 = vcmp.lt.s32.totalorder %v1678_v62, 14  ;;  %vm1695_vm3 = vcmp.gt.s32.totalorder %v2533_v49, 0  ;;  %v2636_v8 = vcvt.f32.s32 %v2635_v22  ;;  %v1552_v38 = vceil.f32 %v1514_v11 }
 0x1a6   :  { %5219 = vst [vmem:[#allocation21_spill] sm:$0xff] %v4260_v30  ;;  %vm1069_vm14 = vcmp.eq.f32.partialorder %v5220_v17, %v4260_v30  ;;  %v4265_v63 = vpop.xlane.xlu1 %1202  ;;  %v4278_v17 = vsel %vm1821_vm12, 1.0, %v5162_v3  ;;  %v1692_v20 = vsel %vm1691_vm15, %v2531_v9, 0  ;;  %v2097_v7 = vadd.f32 %v4018_v28, %v2095_v16  ;;  %v4304_v16 = vpop.eup %2820 }
 0x1a7   :  { %5221 = vst [vmem:[#allocation4_spill] sm:$0xff] %v4265_v63  ;;  %v1070_v60 = vsel %vm1069_vm14, %v5222_v39, inf  ;;  %vm1204_vm0 = vcmp.eq.f32.partialorder %v5223_v25, %v4265_v63  ;;  %5225 = vst [vmem:[#allocation22_spill] sm:$0xff] %v4278_v17  ;;  %v1976_v25 = vadd.f32 %v3995_v53, %v1974_v45  ;;  %v2050_v22 = vmul.f32 %v3938_v29, %v4283_v23  ;;  %v5232_v29 = vld [vmem:[#allocation26_spill] sm:$0xff] }
 0x1a8   :  { %1071 = vmin.xlane.f32.xlu1 %v1070_v60  ;;  %v1205_v4 = vsel %vm1204_vm0, %v5224_v56, inf  ;;  %v1563_v60 = vceil.f32 %v1525_v47  ;;  %v5229_v56 = vld [vmem:[#allocation8_spill] sm:$0xff]  ;;  %v1754_v11 = vsel %vm1753_vm2, %v1678_v62, 14  ;;  %v5231_v47 = vld [vmem:[#allocation49_spill] sm:$0xff]  ;;  %v2617_v41 = vtrunc.f32 %v1552_v38 }
 0x1a9   :  { %1206 = vmin.xlane.f32.xlu0 %v1205_v4  ;;  %v4285_v39 = vpop.xlane.xlu0 %1097  ;;  %v5230_v4 = vld [vmem:[#allocation48_spill] sm:$0xff]  ;;  %vm1767_vm6 = vcmp.lt.s32.totalorder %v1692_v20, 14  ;;  %v1977_v53 = vsel %vm1955_vm11, %v4283_v23, 0.0  ;;  %v1516_v45 = vmul.f32 15.0, %v3980_v42  ;;  %vm1816_vm8 = vcmp.eq.s32.totalorder %v1754_v11, %v3112_v34 }
 0x1aa   :  { %5227 = vst [vmem:[#allocation43_spill] sm:$0xff] %v4285_v39  ;;  %vm1099_vm4 = vcmp.eq.f32.partialorder %v5228_v52, %v4285_v39  ;;  %v4289_v54 = vpop.xlane.xlu1 %1232  ;;  %v1696_v52 = vsel %vm1695_vm3, %v2533_v49, 0  ;;  %v2535_v39 = vadd.s32 4294967295, %v2636_v8  ;;  %v2639_v28 = vtrunc.f32 %v1563_v60  ;;  %v5234_v49 = vld [vmem:[#allocation9_spill] sm:$0xff]  ;;  %v5236_v60 = vld [vmem:[#allocation51_spill] sm:$0xff] }
 0x1ab   :  { %vm1234_vm5 = vcmp.eq.f32.partialorder %v5229_v56, %v4289_v54  ;;  %v1100_v63 = vsel %vm1099_vm4, %v5230_v4, inf  ;;  %v2098_v38 = vsel %vm1955_vm11, %v2050_v22, 0.0  ;;  %vm1771_vm12 = vcmp.lt.s32.totalorder %v1696_v52, 14 }
 0x1ac   :  { %1101 = vmin.xlane.f32.xlu1 %v1100_v63  ;;  %v1235_v30 = vsel %vm1234_vm5, %v5231_v47, inf  ;;  %vm1699_vm9 = vcmp.gt.s32.totalorder %v2535_v39, 0  ;;  %v5235_v63 = vld [vmem:[#allocation50_spill] sm:$0xff]  ;;  %v1768_v4 = vsel %vm1767_vm6, %v1692_v20, 14  ;;  %v1978_v47 = vadd.f32 %v1977_v53, %v1976_v25  ;;  %v5240_v25 = vld [vmem:[#allocation52_spill] sm:$0xff] }
 0x1ad   :  { %1236 = vmin.xlane.f32.xlu0 %v1235_v30  ;;  %v4299_v9 = vpop.xlane.xlu0 %1127  ;;  %v2618_v30 = vcvt.f32.s32 %v2617_v41  ;;  %v4320_v41 = vsel %vm1816_vm8, 1.0, %v5162_v3  ;;  %v1700_v11 = vsel %vm1699_vm9, %v2535_v39, 0  ;;  %v5239_v20 = vld [vmem:[#allocation10_spill] sm:$0xff]  ;;  %vm1823_vm15 = vcmp.eq.s32.totalorder %v1768_v4, %v3112_v34  ;;  %v5241_v39 = vld [vmem:[#allocation53_spill] sm:$0xff] }
 0x1ae   :  { %vm1129_vm7 = vcmp.eq.f32.partialorder %v5232_v29, %v4299_v9  ;;  %v4308_v62 = vpop.xlane.xlu1 %1262  ;;  %5237 = vst [vmem:[#allocation46_spill] sm:$0xff] %v4320_v41  ;;  %vm1775_vm2 = vcmp.lt.s32.totalorder %v1700_v11, 14 }
 0x1af   :  { %5233 = vst [vmem:[#allocation23_spill] sm:$0xff] %v4308_v62  ;;  %vm1264_vm10 = vcmp.eq.f32.partialorder %v5234_v49, %v4308_v62  ;;  %v1130_v8 = vsel %vm1129_vm7, %v5235_v63, inf  ;;  %v2526_v29 = vadd.s32 4294967295, %v2618_v30  ;;  %v2640_v49 = vcvt.f32.s32 %v2639_v28  ;;  %v5238_v63 = vld [vmem:[#allocation27_spill] sm:$0xff] }
 0x1b0   :  { %1131 = vmin.xlane.f32.xlu1 %v1130_v8  ;;  %v1265_v56 = vsel %vm1264_vm10, %v5236_v60, inf  ;;  %v1554_v62 = vceil.f32 %v1516_v45  ;;  %v2099_v8 = vadd.f32 %v2098_v38, %v2097_v7  ;;  %v1772_v60 = vsel %vm1771_vm12, %v1696_v52, 14 }
 0x1b1   :  { %1266 = vmin.xlane.f32.xlu0 %v1265_v56  ;;  %v4317_v23 = vpop.xlane.xlu0 %1157  ;;  %vm1681_vm14 = vcmp.gt.s32.totalorder %v2526_v29, 0  ;;  %v2057_v30 = vmul.f32 %v3989_v19, %v4278_v17  ;;  %v1980_v45 = vadd.f32 %v4031_v6, %v1978_v47  ;;  %v2052_v7 = vmul.f32 %v3946_v18, %v4320_v41  ;;  %v5243_v19 = vld [vmem:[#allocation28_spill] sm:$0xff]  ;;  %v5245_v18 = vld [vmem:[#allocation11_spill] sm:$0xff] }
 0x1b2   :  { %vm1159_vm13 = vcmp.eq.f32.partialorder %v5238_v63, %v4317_v23  ;;  %v4324_v22 = vpop.xlane.xlu1 %1292  ;;  %vm1825_vm3 = vcmp.eq.s32.totalorder %v1772_v60, %v3112_v34  ;;  %v1682_v38 = vsel %vm1681_vm14, %v2526_v29, 0  ;;  %v2537_v56 = vadd.s32 4294967295, %v2640_v49 }
 0x1b3   :  { %vm1294_vm0 = vcmp.eq.f32.partialorder %v5239_v20, %v4324_v22  ;;  %v1160_v53 = vsel %vm1159_vm13, %v5240_v25, inf  ;;  %v2621_v63 = vtrunc.f32 %v1554_v62  ;;  %v1981_v6 = vsel %vm1955_vm11, %v4320_v41, 0.0  ;;  %v5246_v62 = vld [vmem:[#allocation54_spill] sm:$0xff] }
 0x1b4   :  { %1161 = vmin.xlane.f32.xlu1 %v1160_v53  ;;  %v1295_v28 = vsel %vm1294_vm0, %v5241_v39, inf  ;;  %v2101_v47 = vadd.f32 %v4077_v32, %v2099_v8  ;;  %vm1757_vm5 = vcmp.lt.s32.totalorder %v1682_v38, 14  ;;  %v1776_v53 = vsel %vm1775_vm2, %v1700_v11, 14 }
 0x1b5   :  { %1296 = vmin.xlane.f32.xlu0 %v1295_v28  ;;  %v4336_v52 = vpop.xlane.xlu0 %1187  ;;  %v1758_v29 = vsel %vm1757_vm5, %v1682_v38, 14  ;;  %v2102_v39 = vsel %vm1955_vm11, %v2052_v7, 0.0  ;;  %vm1703_vm8 = vcmp.gt.s32.totalorder %v2537_v56, 0  ;;  %v4356_v32 = vsel %vm1955_vm11, %v4278_v17, 0.0  ;;  %v5250_v7 = vld [vmem:[#allocation14_spill] sm:$0xff] }
 0x1b6   :  { %5242 = vst [vmem:[#allocation6_spill] sm:$0xff] %v4336_v52  ;;  %vm1189_vm4 = vcmp.eq.f32.partialorder %v5243_v19, %v4336_v52  ;;  %v4341_v20 = vpop.xlane.xlu1 %1322  ;;  %vm1818_vm7 = vcmp.eq.s32.totalorder %v1758_v29, %v3112_v34  ;;  %v2622_v8 = vcvt.f32.s32 %v2621_v63  ;;  %v1982_v19 = vadd.f32 %v1981_v6, %v1980_v45 }
 0x1b7   :  { %5244 = vst [vmem:[#allocation44_spill] sm:$0xff] %v4341_v20  ;;  %vm1324_vm6 = vcmp.eq.f32.partialorder %v5245_v18, %v4341_v20  ;;  %v1190_v25 = vsel %vm1189_vm4, %v3826_v21, inf  ;;  %v4361_v21 = vsel %vm1823_vm15, 1.0, %v5162_v3  ;;  %v4364_v11 = vsel %vm1818_vm7, 1.0, %v5162_v3 }
 0x1b8   :  { %1191 = vmin.xlane.f32.xlu1 %v1190_v25  ;;  %v1325_v49 = vsel %vm1324_vm6, %v5246_v62, inf  ;;  %5248 = vst [vmem:[#allocation47_spill] sm:$0xff] %v4361_v21  ;;  %5249 = vst [vmem:[#allocation7_spill] sm:$0xff] %v4364_v11  ;;  %vm1827_vm10 = vcmp.eq.s32.totalorder %v1776_v53, %v3112_v34  ;;  %v1704_v18 = vsel %vm1703_vm8, %v2537_v56, 0  ;;  %v5251_v25 = vld [vmem:[#allocation55_spill] sm:$0xff]  ;;  %v4371_v62 = vsel %vm1955_vm11, %v2057_v30, 0.0 }
 0x1b9   :  { %1326 = vmin.xlane.f32.xlu0 %v1325_v49  ;;  %v4352_v28 = vpop.xlane.xlu0 %1217  ;;  %v4376_v4 = vsel %vm1825_vm3, 1.0, %v5162_v3  ;;  %v2103_v49 = vadd.f32 %v2102_v39, %v2101_v47  ;;  %v4381_v45 = vsel %vm1955_vm11, %v4361_v21, 0.0  ;;  %v2054_v56 = vmul.f32 %v3963_v37, %v4364_v11 }
 0x1ba   :  { %5247 = vst [vmem:[#allocation24_spill] sm:$0xff] %v4352_v28  ;;  %vm1219_vm9 = vcmp.eq.f32.partialorder %v5250_v7, %v4352_v28  ;;  %v787_v38 = vpop.xlane.xlu1 %786  ;;  %5252 = vst [vmem:[#allocation45_spill] sm:$0xff] %v4376_v4  ;;  %v2528_v63 = vadd.s32 4294967295, %v2622_v8  ;;  %v2059_v60 = vmul.f32 %v4024_v46, %v4361_v21  ;;  %v4390_v53 = vsel %vm1827_vm10, 1.0, %v5162_v3  ;;  %v5256_v7 = vld [vmem:[#allocation56_spill] sm:$0xff] }
 0x1bb   :  { %v1220_v29 = vsel %vm1219_vm9, %v5251_v25, inf  ;;  %v788_v6 = vcvt.f32.s32 %v787_v38  ;;  %5254 = vst [vmem:[#allocation8_spill] sm:$0xff] %v4390_v53  ;;  %vm1779_vm12 = vcmp.lt.s32.totalorder %v1704_v18, 14  ;;  %v2061_v39 = vmul.f32 %v4038_v35, %v4376_v4  ;;  %v5257_v35 = vld [vmem:[#allocation62_spill] sm:$0xff] }
 0x1bc   :  { %1221 = vmin.xlane.f32.xlu1 %v1220_v29  ;;  %v1984_v37 = vadd.f32 %v4107_v1, %v1982_v19  ;;  %vm1685_vm14 = vcmp.gt.s32.totalorder %v2528_v63, 0  ;;  %v1985_v46 = vsel %vm1955_vm11, %v4364_v11, 0.0  ;;  %v2105_v25 = vadd.f32 %v4113_v31, %v2103_v49  ;;  %v1348_v1 = vld [vmem:[%s4935_s1 + $0x8] sm:$0xff]  ;;  %v5258_v19 = vld [vmem:[#allocation65_spill] sm:$0xff] }
 0x1bd   :  { %v4385_v30 = vpop.xlane.xlu0 %1247  ;;  %v2063_v29 = vmul.f32 %v4060_v15, %v4390_v53  ;;  %v1780_v21 = vsel %vm1779_vm12, %v1704_v18, 14  ;;  %v1686_v17 = vsel %vm1685_vm14, %v2528_v63, 0  ;;  %v791_v41 = vadd.s32 %v5257_v35, %v788_v6  ;;  %v1347_v15 = vld [vmem:[%s4935_s1] sm:$0xff]  ;;  %v5260_v18 = vld [vmem:[#allocation17_spill] sm:$0xff]  ;;  %v5267_v11 = vld [vmem:[#allocation15_spill] sm:$0xff] }
 0x1be   :  { %5253 = vst [vmem:[#allocation25_spill] sm:$0xff] %v4385_v30  ;;  %vm1249_vm13 = vcmp.eq.f32.partialorder %v5255_v40, %v4385_v30  ;;  %v802_v47 = vpop.xlane.xlu1 %801  ;;  %v2106_v40 = vsel %vm1955_vm11, %v2054_v56, 0.0  ;;  %vm1761_vm0 = vcmp.lt.s32.totalorder %v1686_v17, 14  ;;  %v1527_v31 = vmul.f32 15.0, %v4148_v13  ;;  %v5261_v6 = vld [vmem:[#allocation57_spill] sm:$0xff] }
 0x1bf   :  { %v803_v8 = vcvt.f32.s32 %v802_v47  ;;  %v1250_v38 = vsel %vm1249_vm13, %v5256_v7, inf  ;;  %v4418_v49 = vsel %vm1955_vm11, %v2059_v60, 0.0  ;;  %v1986_v56 = vadd.f32 %v1985_v46, %v1984_v37 }
 0x1c0   :  { %1251 = vmin.xlane.f32.xlu1 %v1250_v38  ;;  %v1762_v63 = vsel %vm1761_vm0, %v1686_v17, 14  ;;  %v2107_v35 = vadd.f32 %v2106_v40, %v2105_v25  ;;  %vm1829_vm4 = vcmp.eq.s32.totalorder %v1780_v21, %v3112_v34  ;;  %v1565_v60 = vceil.f32 %v1527_v31 }
 0x1c1   :  { %v806_v47 = vadd.s32 %v5258_v19, %v803_v8  ;;  %v4409_v7 = vpop.xlane.xlu0 %1277  ;;  %v4423_v8 = vsel %vm1955_vm11, %v4376_v4, 0.0  ;;  %vm1820_vm2 = vcmp.eq.s32.totalorder %v1762_v63, %v3112_v34  ;;  %vm1385_vm5 = vcmp.eq.s32.totalorder %v791_v41, %v1347_v15  ;;  %v5264_v63 = vld [vmem:[#allocation18_spill] sm:$0xff] }
 0x1c2   :  { %5259 = vst [vmem:[#allocation48_spill] sm:$0xff] %v4409_v7  ;;  %vm1279_vm15 = vcmp.eq.f32.partialorder %v5260_v18, %v4409_v7  ;;  %v4428_v19 = vsel %vm1820_vm2, 1.0, %v5162_v3  ;;  %v817_v37 = vpop.xlane.xlu1 %816  ;;  %v4433_v46 = vsel %vm1955_vm11, %v2061_v39, 0.0  ;;  %v4437_v25 = vsel %vm1955_vm11, %v4390_v53, 0.0  ;;  %v4442_v18 = vpop.eup %2822 }
 0x1c3   :  { %v1280_v38 = vsel %vm1279_vm15, %v5261_v6, inf  ;;  %vm1386_vm3 = vcmp.eq.s32.totalorder %v806_v47, %v1348_v1  ;;  %5262 = vst [vmem:[#allocation49_spill] sm:$0xff] %v4428_v19  ;;  %v4440_v40 = vsel %vm1955_vm11, %v2063_v29, 0.0  ;;  %v1988_v41 = vadd.f32 %v4237_v48, %v1986_v56  ;;  %v5265_v6 = vld [vmem:[#allocation58_spill] sm:$0xff] }
 0x1c4   :  { %1281 = vmin.xlane.f32.xlu1 %v1280_v38  ;;  %v2056_v31 = vmul.f32 %v3980_v42, %v4428_v19  ;;  %v2643_v15 = vtrunc.f32 %v1565_v60  ;;  %v2474_v39 = vsel %vm1386_vm3, 1.0, %v5162_v3  ;;  %v4455_v29 = vsel %vm1829_vm4, 1.0, %v5162_v3 }
 0x1c5   :  { %v4430_v17 = vpop.xlane.xlu0 %1307  ;;  %v1518_v53 = vmul.f32 15.0, %v4011_v5  ;;  %v818_v4 = vcvt.f32.s32 %v817_v37  ;;  %v2109_v48 = vadd.f32 %v4272_v43, %v2107_v35  ;;  %v1989_v1 = vsel %vm1955_vm11, %v4428_v19, 0.0  ;;  %v5269_v19 = vld [vmem:[#allocation31_spill] sm:$0xff] }
 0x1c6   :  { %5263 = vst [vmem:[#allocation26_spill] sm:$0xff] %v4430_v17  ;;  %vm1309_vm6 = vcmp.eq.f32.partialorder %v5264_v63, %v4430_v17  ;;  %v2473_v63 = vsel %vm1385_vm5, 1.0, %v5162_v3  ;;  %v2644_v42 = vcvt.f32.s32 %v2643_v15  ;;  %v1529_v60 = vmul.f32 15.0, %v4159_v57  ;;  %v5268_v17 = vld [vmem:[#allocation59_spill] sm:$0xff] }
 0x1c7   :  { %v1310_v38 = vsel %vm1309_vm6, %v5265_v6, inf  ;;  %v1556_v47 = vceil.f32 %v1518_v53  ;;  %v1520_v21 = vmul.f32 15.0, %v4034_v59  ;;  %v2666_v6 = vpack.i.bf16 %v2474_v39, %v2473_v63 }
 0x1c8   :  { %1311 = vmin.xlane.f32.xlu1 %v1310_v38  ;;  %v2110_v37 = vsel %vm1955_vm11, %v2056_v31, 0.0  ;;  %v2539_v38 = vadd.s32 4294967295, %v2644_v42  ;;  %v1567_v15 = vceil.f32 %v1529_v60  ;;  %v1990_v30 = vadd.f32 %v1989_v1, %v1988_v41  ;;  %v5270_v1 = vld [vmem:[#allocation66_spill] sm:$0xff] }
 0x1c9   :  { %v4460_v56 = vpop.xlane.xlu0 %1337  ;;  %v2625_v35 = vtrunc.f32 %v1556_v47  ;;  %v1558_v7 = vceil.f32 %v1520_v21  ;;  %v1531_v53 = vmul.f32 15.0, %v4186_v26  ;;  %v1522_v28 = vmul.f32 15.0, %v5269_v19 }
 0x1ca   :  { %5266 = vst [vmem:[#allocation9_spill] sm:$0xff] %v4460_v56  ;;  %vm1339_vm7 = vcmp.eq.f32.partialorder %v5267_v11, %v4460_v56  ;;  %vm1707_vm8 = vcmp.gt.s32.totalorder %v2539_v38, 0  ;;  %v2647_v63 = vtrunc.f32 %v1567_v15  ;;  %v2111_v11 = vadd.f32 %v2110_v37, %v2109_v48 }
 0x1cb   :  { %v1340_v43 = vsel %vm1339_vm7, %v5268_v17, inf  ;;  %v1708_v20 = vsel %vm1707_vm8, %v2539_v38, 0  ;;  %v2626_v39 = vcvt.f32.s32 %v2625_v35  ;;  %v2629_v52 = vtrunc.f32 %v1558_v7 }
 0x1cc   :  { %1341 = vmin.xlane.f32.xlu1 %v1340_v43  ;;  %vm1783_vm9 = vcmp.lt.s32.totalorder %v1708_v20, 14  ;;  %v1569_v31 = vceil.f32 %v1531_v53  ;;  %v1560_v42 = vceil.f32 %v1522_v28  ;;  %v2065_v17 = vmul.f32 %v4109_v0, %v4455_v29 }
 0x1cd   :  { %v2530_v47 = vadd.s32 4294967295, %v2626_v39  ;;  %v2648_v60 = vcvt.f32.s32 %v2647_v63  ;;  %v2630_v41 = vcvt.f32.s32 %v2629_v52  ;;  %v821_v21 = vadd.s32 %v5270_v1, %v818_v4 }
 0x1ce   :  { %v1992_v43 = vadd.f32 %v4356_v32, %v1990_v30  ;;  %v2651_v56 = vtrunc.f32 %v1569_v31  ;;  %v2633_v38 = vtrunc.f32 %v1560_v42  ;;  %v1784_v35 = vsel %vm1783_vm9, %v1708_v20, 14 }
 0x1cf   :  { %2667 = vperm.xlu0 %2665, %v2666_v6   ;;  %vm1689_vm10 = vcmp.gt.s32.totalorder %v2530_v47, 0  ;;  %v2541_v7 = vadd.s32 4294967295, %v2648_v60  ;;  %v2532_v48 = vadd.s32 4294967295, %v2630_v41  ;;  %v2113_v28 = vadd.f32 %v4371_v62, %v2111_v11  ;;  %v1349_v62 = vld [vmem:[%s4935_s1 + $0x10] sm:$0xff] }
 0x1d0   :  { %v1690_v37 = vsel %vm1689_vm10, %v2530_v47, 0  ;;  %v2652_v6 = vcvt.f32.s32 %v2651_v56  ;;  %v1533_v15 = vmul.f32 15.0, %v4222_v55  ;;  %v2634_v0 = vcvt.f32.s32 %v2633_v38 }
 0x1d1   :  { %vm1765_vm12 = vcmp.lt.s32.totalorder %v1690_v37, 14  ;;  %vm1711_vm13 = vcmp.gt.s32.totalorder %v2541_v7, 0  ;;  %vm1693_vm14 = vcmp.gt.s32.totalorder %v2532_v48, 0  ;;  %vm1831_vm0 = vcmp.eq.s32.totalorder %v1784_v35, %v3112_v34 }
 0x1d2   :  { %v1766_v52 = vsel %vm1765_vm12, %v1690_v37, 14  ;;  %v1712_v32 = vsel %vm1711_vm13, %v2541_v7, 0  ;;  %v1694_v4 = vsel %vm1693_vm14, %v2532_v48, 0  ;;  %v2543_v20 = vadd.s32 4294967295, %v2652_v6 }
 0x1d3   :  { %vm1822_vm15 = vcmp.eq.s32.totalorder %v1766_v52, %v3112_v34  ;;  %vm1787_vm2 = vcmp.lt.s32.totalorder %v1712_v32, 14  ;;  %vm1769_vm3 = vcmp.lt.s32.totalorder %v1694_v4, 14  ;;  %v1571_v39 = vceil.f32 %v1533_v15 }
 0x1d4   :  { %v4484_v30 = vsel %vm1822_vm15, 1.0, %v5162_v3  ;;  %v1788_v56 = vsel %vm1787_vm2, %v1712_v32, 14  ;;  %v1770_v53 = vsel %vm1769_vm3, %v1694_v4, 14  ;;  %v2534_v31 = vadd.s32 4294967295, %v2634_v0 }
 0x1d5   :  { %v1993_v63 = vsel %vm1955_vm11, %v4484_v30, 0.0  ;;  %v2058_v11 = vmul.f32 %v4011_v5, %v4484_v30  ;;  %vm1824_vm4 = vcmp.eq.s32.totalorder %v1770_v53, %v3112_v34  ;;  %v4493_v42 = vsel %vm1955_vm11, %v4455_v29, 0.0 }
 0x1d6   :  { %v1994_v47 = vadd.f32 %v1993_v63, %v1992_v43  ;;  %v4496_v60 = vsel %vm1824_vm4, 1.0, %v5162_v3  ;;  %vm1715_vm5 = vcmp.gt.s32.totalorder %v2543_v20, 0  ;;  %vm1387_vm6 = vcmp.eq.s32.totalorder %v821_v21, %v1349_v62 }
 0x1d7   :  { %v4499_v41 = vsel %vm1955_vm11, %v2065_v17, 0.0  ;;  %v4504_v5 = vsel %vm1831_vm0, 1.0, %v5162_v3  ;;  %v2114_v1 = vsel %vm1955_vm11, %v2058_v11, 0.0  ;;  %vm1833_vm7 = vcmp.eq.s32.totalorder %v1788_v56, %v3112_v34 }
 0x1d8   :  { %v2115_v38 = vadd.f32 %v2114_v1, %v2113_v28  ;;  %v2060_v43 = vmul.f32 %v4034_v59, %v4496_v60  ;;  %v1716_v7 = vsel %vm1715_vm5, %v2543_v20, 0  ;;  %v1996_v48 = vadd.f32 %v4381_v45, %v1994_v47 }
 0x1d9   :  { %vm1791_vm8 = vcmp.lt.s32.totalorder %v1716_v7, 14  ;;  %vm1697_vm9 = vcmp.gt.s32.totalorder %v2534_v31, 0  ;;  %v2655_v17 = vtrunc.f32 %v1571_v39  ;;  %v2475_v21 = vsel %vm1387_vm6, 1.0, %v5162_v3 }
 0x1da   :  { %v1997_v35 = vsel %vm1955_vm11, %v4496_v60, 0.0  ;;  %v2117_v37 = vadd.f32 %v4418_v49, %v2115_v38  ;;  %v1792_v6 = vsel %vm1791_vm8, %v1716_v7, 14  ;;  %v1698_v28 = vsel %vm1697_vm9, %v2534_v31, 0 }
 0x1db   :  { %vm1835_vm10 = vcmp.eq.s32.totalorder %v1792_v6, %v3112_v34  ;;  %v2656_v15 = vcvt.f32.s32 %v2655_v17  ;;  %v1524_v59 = vmul.f32 15.0, %v4084_v36  ;;  %v2067_v45 = vmul.f32 %v4148_v13, %v4504_v5 }
 0x1dc   :  { %v4522_v0 = vsel %vm1833_vm7, 1.0, %v5162_v3  ;;  %v2118_v52 = vsel %vm1955_vm11, %v2060_v43, 0.0  ;;  %vm1773_vm12 = vcmp.lt.s32.totalorder %v1698_v28, 14  ;;  %v4527_v49 = vsel %vm1955_vm11, %v4504_v5, 0.0 }
 0x1dd   :  { %2171 = vperm.xlu1 %2671, %v2475_v21   ;;  %v1998_v32 = vadd.f32 %v1997_v35, %v1996_v48  ;;  %v1774_v4 = vsel %vm1773_vm12, %v1698_v28, 14  ;;  %v2545_v20 = vadd.s32 4294967295, %v2656_v15  ;;  %v4530_v62 = vsel %vm1835_vm10, 1.0, %v5162_v3 }
 0x1de   :  { %vm1826_vm13 = vcmp.eq.s32.totalorder %v1774_v4, %v3112_v34  ;;  %v1562_v13 = vceil.f32 %v1524_v59  ;;  %v1535_v56 = vmul.f32 15.0, %v4304_v16  ;;  %v2069_v53 = vmul.f32 %v4159_v57, %v4522_v0 }
 0x1df   :  { %v2119_v39 = vadd.f32 %v2118_v52, %v2117_v37  ;;  %v4537_v63 = vsel %vm1826_vm13, 1.0, %v5162_v3  ;;  %v1526_v11 = vmul.f32 15.0, %v4126_v50  ;;  %v4541_v31 = vsel %vm1955_vm11, %v2067_v45, 0.0 }
 0x1e0   :  { %v2062_v47 = vmul.f32 %v5269_v19, %v4537_v63  ;;  %vm1719_vm14 = vcmp.gt.s32.totalorder %v2545_v20, 0  ;;  %v2637_v1 = vtrunc.f32 %v1562_v13  ;;  %v2071_v38 = vmul.f32 %v4186_v26, %v4530_v62 }
 0x1e1   :  { %v2000_v43 = vadd.f32 %v4423_v8, %v1998_v32  ;;  %v1573_v57 = vceil.f32 %v1535_v56  ;;  %v1564_v7 = vceil.f32 %v1526_v11  ;;  %v4550_v48 = vsel %vm1955_vm11, %v4522_v0, 0.0 }
 0x1e2   :  { %v2001_v17 = vsel %vm1955_vm11, %v4537_v63, 0.0  ;;  %v2638_v21 = vcvt.f32.s32 %v2637_v1  ;;  %v1528_v35 = vmul.f32 15.0, %v4154_v33  ;;  %v4556_v19 = vsel %vm1955_vm11, %v2069_v53, 0.0 }
 0x1e3   :  { %v2121_v37 = vadd.f32 %v4433_v46, %v2119_v39  ;;  %v1720_v26 = vsel %vm1719_vm14, %v2545_v20, 0  ;;  %v2659_v6 = vtrunc.f32 %v1573_v57  ;;  %v2122_v8 = vsel %vm1955_vm11, %v2062_v47, 0.0 }
 0x1e4   :  { %v2536_v28 = vadd.s32 4294967295, %v2638_v21  ;;  %v2641_v15 = vtrunc.f32 %v1564_v7  ;;  %v1566_v59 = vceil.f32 %v1528_v35  ;;  %v4562_v45 = vsel %vm1955_vm11, %v4530_v62, 0.0 }
 0x1e5   :  { %v4565_v52 = vsel %vm1955_vm11, %v2071_v38, 0.0  ;;  %v2002_v32 = vadd.f32 %v2001_v17, %v2000_v43  ;;  %v2660_v4 = vcvt.f32.s32 %v2659_v6  ;;  %v1530_v46 = vmul.f32 15.0, %v4169_v14 }
 0x1e6   :  { %vm1701_vm0 = vcmp.gt.s32.totalorder %v2536_v28, 0  ;;  %v2642_v13 = vcvt.f32.s32 %v2641_v15  ;;  %v2645_v56 = vtrunc.f32 %v1566_v59  ;;  %v2123_v20 = vadd.f32 %v2122_v8, %v2121_v37 }
 0x1e7   :  { %vm1795_vm15 = vcmp.lt.s32.totalorder %v1720_v26, 14  ;;  %v1702_v53 = vsel %vm1701_vm0, %v2536_v28, 0  ;;  %v2547_v39 = vadd.s32 4294967295, %v2660_v4  ;;  %v1532_v1 = vmul.f32 15.0, %v4193_v58 }
 0x1e8   :  { %vm1777_vm2 = vcmp.lt.s32.totalorder %v1702_v53, 14  ;;  %v2538_v11 = vadd.s32 4294967295, %v2642_v13  ;;  %v2646_v47 = vcvt.f32.s32 %v2645_v56  ;;  %v2004_v38 = vadd.f32 %v4437_v25, %v2002_v32 }
 0x1e9   :  { %v1778_v57 = vsel %vm1777_vm2, %v1702_v53, 14  ;;  %vm1723_vm3 = vcmp.gt.s32.totalorder %v2547_v39, 0  ;;  %v1568_v43 = vceil.f32 %v1530_v46  ;;  %v1796_v7 = vsel %vm1795_vm15, %v1720_v26, 14 }
 0x1ea   :  { %vm1828_vm4 = vcmp.eq.s32.totalorder %v1778_v57, %v3112_v34  ;;  %vm1705_vm5 = vcmp.gt.s32.totalorder %v2538_v11, 0  ;;  %v2540_v17 = vadd.s32 4294967295, %v2646_v47  ;;  %v2125_v35 = vadd.f32 %v4440_v40, %v2123_v20 }
 0x1eb   :  { %v4572_v21 = vsel %vm1828_vm4, 1.0, %v5162_v3  ;;  %v1724_v37 = vsel %vm1723_vm3, %v2547_v39, 0  ;;  %v1706_v6 = vsel %vm1705_vm5, %v2538_v11, 0  ;;  %v1570_v28 = vceil.f32 %v1532_v1 }
 0x1ec   :  { %v2005_v8 = vsel %vm1955_vm11, %v4572_v21, 0.0  ;;  %v2064_v25 = vmul.f32 %v4084_v36, %v4572_v21  ;;  %vm1781_vm6 = vcmp.lt.s32.totalorder %v1706_v6, 14  ;;  %vm1709_vm7 = vcmp.gt.s32.totalorder %v2540_v17, 0 }
 0x1ed   :  { %v2006_v26 = vadd.f32 %v2005_v8, %v2004_v38  ;;  %v1782_v15 = vsel %vm1781_vm6, %v1706_v6, 14  ;;  %v2649_v59 = vtrunc.f32 %v1568_v43  ;;  %vm1799_vm8 = vcmp.lt.s32.totalorder %v1724_v37, 14 }
 0x1ee   :  { %v2126_v32 = vsel %vm1955_vm11, %v2064_v25, 0.0  ;;  %vm1830_vm9 = vcmp.eq.s32.totalorder %v1782_v15, %v3112_v34  ;;  %v1710_v40 = vsel %vm1709_vm7, %v2540_v17, 0  ;;  %vm1837_vm10 = vcmp.eq.s32.totalorder %v1796_v7, %v3112_v34 }
 0x1ef   :  { %v2127_v4 = vadd.f32 %v2126_v32, %v2125_v35  ;;  %v4583_v13 = vsel %vm1830_vm9, 1.0, %v5162_v3  ;;  %v1534_v36 = vmul.f32 15.0, %v4244_v2  ;;  %v2008_v56 = vadd.f32 %v4493_v42, %v2006_v26 }
 0x1f0   :  { %v2009_v46 = vsel %vm1955_vm11, %v4583_v13, 0.0  ;;  %v2066_v20 = vmul.f32 %v4126_v50, %v4583_v13  ;;  %vm1785_vm12 = vcmp.lt.s32.totalorder %v1710_v40, 14  ;;  %v1800_v53 = vsel %vm1799_vm8, %v1724_v37, 14 }
 0x1f1   :  { %v2129_v39 = vadd.f32 %v4499_v41, %v2127_v4  ;;  %v1786_v11 = vsel %vm1785_vm12, %v1710_v40, 14  ;;  %v2650_v47 = vcvt.f32.s32 %v2649_v59  ;;  %v2010_v1 = vadd.f32 %v2009_v46, %v2008_v56 }
 0x1f2   :  { %v2130_v57 = vsel %vm1955_vm11, %v2066_v20, 0.0  ;;  %vm1832_vm13 = vcmp.eq.s32.totalorder %v1786_v11, %v3112_v34  ;;  %v2653_v38 = vtrunc.f32 %v1570_v28  ;;  %v1572_v35 = vceil.f32 %v1534_v36 }
 0x1f3   :  { %v2131_v43 = vadd.f32 %v2130_v57, %v2129_v39  ;;  %v4595_v42 = vsel %vm1832_vm13, 1.0, %v5162_v3  ;;  %v2542_v17 = vadd.s32 4294967295, %v2650_v47  ;;  %v2012_v50 = vadd.f32 %v4527_v49, %v2010_v1 }
 0x1f4   :  { %v2013_v37 = vsel %vm1955_vm11, %v4595_v42, 0.0  ;;  %v2068_v41 = vmul.f32 %v4154_v33, %v4595_v42  ;;  %v2654_v6 = vcvt.f32.s32 %v2653_v38  ;;  %v2657_v25 = vtrunc.f32 %v1572_v35 }
 0x1f5   :  { %v2133_v8 = vadd.f32 %v4541_v31, %v2131_v43  ;;  %vm1713_vm14 = vcmp.gt.s32.totalorder %v2542_v17, 0  ;;  %v1536_v28 = vmul.f32 15.0, %v4442_v18  ;;  %v2014_v26 = vadd.f32 %v2013_v37, %v2012_v50 }
 0x1f6   :  { %v2134_v15 = vsel %vm1955_vm11, %v2068_v41, 0.0  ;;  %v1714_v59 = vsel %vm1713_vm14, %v2542_v17, 0  ;;  %v2544_v32 = vadd.s32 4294967295, %v2654_v6  ;;  %v2658_v49 = vcvt.f32.s32 %v2657_v25 }
 0x1f7   :  { %v2135_v40 = vadd.f32 %v2134_v15, %v2133_v8  ;;  %vm1789_vm0 = vcmp.lt.s32.totalorder %v1714_v59, 14  ;;  %v1574_v4 = vceil.f32 %v1536_v28  ;;  %v4608_v33 = vsel %vm1837_vm10, 1.0, %v5162_v3 }
 0x1f8   :  { %v1790_v36 = vsel %vm1789_vm0, %v1714_v59, 14  ;;  %v2016_v31 = vadd.f32 %v4550_v48, %v2014_v26  ;;  %vm1717_vm15 = vcmp.gt.s32.totalorder %v2544_v32, 0  ;;  %vm1839_vm2 = vcmp.eq.s32.totalorder %v1800_v53, %v3112_v34 }
 0x1f9   :  { %vm1834_vm3 = vcmp.eq.s32.totalorder %v1790_v36, %v3112_v34  ;;  %v1718_v56 = vsel %vm1717_vm15, %v2544_v32, 0  ;;  %v2546_v46 = vadd.s32 4294967295, %v2658_v49  ;;  %v2137_v39 = vadd.f32 %v4556_v19, %v2135_v40 }
 0x1fa   :  { %v4614_v20 = vsel %vm1834_vm3, 1.0, %v5162_v3  ;;  %vm1793_vm4 = vcmp.lt.s32.totalorder %v1718_v56, 14  ;;  %v2661_v11 = vtrunc.f32 %v1574_v4  ;;  %v2073_v43 = vmul.f32 %v4222_v55, %v4608_v33 }
 0x1fb   :  { %v2017_v7 = vsel %vm1955_vm11, %v4614_v20, 0.0  ;;  %v2070_v48 = vmul.f32 %v4169_v14, %v4614_v20  ;;  %v1794_v47 = vsel %vm1793_vm4, %v1718_v56, 14  ;;  %vm1721_vm5 = vcmp.gt.s32.totalorder %v2546_v46, 0 }
 0x1fc   :  { %v2018_v1 = vadd.f32 %v2017_v7, %v2016_v31  ;;  %vm1836_vm6 = vcmp.eq.s32.totalorder %v1794_v47, %v3112_v34  ;;  %v1722_v57 = vsel %vm1721_vm5, %v2546_v46, 0  ;;  %v2662_v38 = vcvt.f32.s32 %v2661_v11 }
 0x1fd   :  { %v2138_v19 = vsel %vm1955_vm11, %v2070_v48, 0.0  ;;  %v4626_v17 = vsel %vm1836_vm6, 1.0, %v5162_v3  ;;  %vm1797_vm7 = vcmp.lt.s32.totalorder %v1722_v57, 14  ;;  %v2023_v41 = vsel %vm1955_vm11, %v4608_v33, 0.0 }
 0x1fe   :  { %v2139_v35 = vadd.f32 %v2138_v19, %v2137_v39  ;;  %v2020_v50 = vadd.f32 %v4562_v45, %v2018_v1  ;;  %v2021_v14 = vsel %vm1955_vm11, %v4626_v17, 0.0  ;;  %v2072_v37 = vmul.f32 %v4193_v58, %v4626_v17  ;;  %v5273_v1 = vld [vmem:[#allocation71_spill] sm:$0xff] }
 0x1ff   :  { %v4638_v55 = vsel %vm1839_vm2, 1.0, %v5162_v3  ;;  %v1798_v6 = vsel %vm1797_vm7, %v1722_v57, 14  ;;  %v2548_v8 = vadd.s32 4294967295, %v2662_v38  ;;  %v2144_v26 = vsel %vm1955_vm11, %v2073_v43, 0.0 }
 0x200   :  { %v2022_v25 = vadd.f32 %v2021_v14, %v2020_v50  ;;  %v2141_v28 = vadd.f32 %v4565_v52, %v2139_v35  ;;  %v2142_v45 = vsel %vm1955_vm11, %v2072_v37, 0.0  ;;  %vm1838_vm8 = vcmp.eq.s32.totalorder %v1798_v6, %v3112_v34  ;;  %v5274_v35 = vld [vmem:[#allocation30_spill] sm:$0xff] }
 0x201   :  { %v4645_v58 = vsel %vm1838_vm8, 1.0, %v5162_v3  ;;  %vm1725_vm9 = vcmp.gt.s32.totalorder %v2548_v8, 0  ;;  %v2075_v52 = vmul.f32 %v4304_v16, %v4638_v55  ;;  %v2027_v31 = vsel %vm1955_vm11, %v4638_v55, 0.0 }
 0x202   :  { %v2143_v15 = vadd.f32 %v2142_v45, %v2141_v28  ;;  %v2024_v59 = vadd.f32 %v2023_v41, %v2022_v25  ;;  %v2025_v53 = vsel %vm1955_vm11, %v4645_v58, 0.0  ;;  %v2074_v32 = vmul.f32 %v4244_v2, %v4645_v58  ;;  %v5272_v2 = vld [vmem:[#allocation70_spill] sm:$0xff] }
 0x203   :  { %v1726_v40 = vsel %vm1725_vm9, %v2548_v8, 0  ;;  %v2148_v39 = vsel %vm1955_vm11, %v2075_v52, 0.0  ;;  %v834_v16 = vcvt.f32.s32 %v5272_v2  ;;  %v939_v57 = vcvt.f32.s32 %v5273_v1  ;;  %v1351_v1 = vld [vmem:[%s4935_s1 + $0x20] sm:$0xff] }
 0x204   :  { %v2026_v49 = vadd.f32 %v2025_v53, %v2024_v59  ;;  %v2145_v4 = vadd.f32 %v2144_v26, %v2143_v15  ;;  %v2146_v36 = vsel %vm1955_vm11, %v2074_v32, 0.0  ;;  %vm1801_vm10 = vcmp.lt.s32.totalorder %v1726_v40, 14  ;;  %v1357_v53 = vld [vmem:[%s4935_s1 + $0x50] sm:$0xff] }
 0x205   :  { %v1802_v56 = vsel %vm1801_vm10, %v1726_v40, 14  ;;  %v849_v50 = vcvt.f32.s32 %v5274_v35  ;;  %v835_v41 = vshll.u32 %v834_v16, 16  ;;  %v940_v45 = vshll.u32 %v939_v57, 16 }
 0x206   :  { %v2147_v46 = vadd.f32 %v2146_v36, %v2145_v4  ;;  %vm1840_vm12 = vcmp.eq.s32.totalorder %v1802_v56, %v3112_v34  ;;  %v2028_v47 = vadd.f32 %v2027_v31, %v2026_v49  ;;  %v969_v26 = vcvt.f32.s32 %v4049_v61  ;;  %v5275_v4 = vld [vmem:[#allocation19_spill] sm:$0xff] }
 0x207   :  { %vm1878_vm13 = vmand %vm1840_vm12, %vm165_vm1  ;;  %v850_v40 = vshll.u32 %v849_v50, 16  ;;  %v864_v49 = vcvt.f32.s32 %v4064_v27  ;;  %v999_v36 = vcvt.f32.s32 %v5275_v4  ;;  %v879_v50 = vcvt.f32.s32 %v4094_v51 }
 0x208   :  { %v4664_v48 = vsel %vm1878_vm13, 1.0, %v5162_v3  ;;  %v2149_v19 = vadd.f32 %v2148_v39, %v2147_v46  ;;  %v970_v2 = vshll.u32 %v969_v26, 16  ;;  %v1352_v26 = vld [vmem:[%s4935_s1 + $0x28] sm:$0xff]  ;;  %vm2037_vm2 = vcmask 114688  }
 0x209   :  { %v2029_v38 = vsel %vm1955_vm11, %v4664_v48, 0.0  ;;  %v2076_v34 = vmul.f32 %v4442_v18, %v4664_v48  ;;  %v1350_v18 = vld [vmem:[%s4935_s1 + $0x18] sm:$0xff]  ;;  %v1000_v35 = vshll.u32 %v999_v36, 16  ;;  %v894_v36 = vcvt.f32.s32 %v4115_v44 }
 0x20a   :  { %v4661_v7 = vpop.xlane.xlu0 %906  ;;  %v2030_v43 = vadd.f32 %v2029_v38, %v2028_v47  ;;  %v1359_v38 = vld [vmem:[%s4935_s1 + $0x60] sm:$0xff] }
 0x20b   :  { %v2150_v37 = vsel %vm1955_vm11, %v2076_v34, 0.0 }
 0x20c   :  { %v2031_v25 = vrot.slane %v2030_v43, 4  ;;  %v2151_v28 = vadd.f32 %v2150_v37, %v2149_v19  ;;  %v865_v19 = vshll.u32 %v864_v49, 16 }
 0x20d   :  { %v832_v14 = vpop.xlane.xlu1 %831 }
 0x20e   :  { %v833_v6 = vcvt.f32.s32 %v832_v14  ;;  %v937_v8 = vpop.xlane.xlu0 %936  ;;  %v2032_v32 = vadd.f32 %v2031_v25, %v2030_v43  ;;  %v2152_v52 = vrot.slane %v2151_v28, 4 }
 0x20f   :  { %v938_v15 = vcvt.f32.s32 %v937_v8 }
 0x210   :  { %v836_v59 = vadd.s32 %v835_v41, %v833_v6  ;;  %v2033_v39 = vrot.slane %v2032_v32, 2  ;;  %v2153_v11 = vadd.f32 %v2152_v52, %v2151_v28 }
 0x211   :  { %v941_v31 = vadd.s32 %v940_v45, %v938_v15  ;;  %v847_v56 = vpop.xlane.xlu1 %846 }
 0x212   :  { %v848_v61 = vcvt.f32.s32 %v847_v56  ;;  %v967_v46 = vpop.xlane.xlu0 %966  ;;  %vm1388_vm1 = vcmp.eq.s32.totalorder %v836_v59, %v1350_v18  ;;  %v2034_v34 = vadd.f32 %v2033_v39, %v2032_v32  ;;  %v2154_v43 = vrot.slane %v2153_v11, 2  ;;  %v1361_v18 = vld [vmem:[%s4935_s1 + $0x70] sm:$0xff] }
 0x213   :  { %v968_v16 = vcvt.f32.s32 %v967_v46  ;;  %v2476_v47 = vsel %vm1388_vm1, 1.0, %v5162_v3  ;;  %vm1395_vm14 = vcmp.eq.s32.totalorder %v941_v31, %v1357_v53  ;;  %v5276_v32 = vld [vmem:[#allocation68_spill] sm:$0xff] }
 0x214   :  { %v851_v57 = vadd.s32 %v850_v40, %v848_v61  ;;  %2176 = vperm.xlu1 %2671, %v2476_v47   ;;  %v2483_v27 = vsel %vm1395_vm14, 1.0, %v5162_v3  ;;  %v2035_v8 = vrot.slane %v2034_v34, 1  ;;  %v2155_v25 = vadd.f32 %v2154_v43, %v2153_v11  ;;  %v1353_v39 = vld [vmem:[%s4935_s1 + $0x30] sm:$0xff] }
 0x215   :  { %v971_v14 = vadd.s32 %v970_v2, %v968_v16  ;;  %v862_v37 = vpop.xlane.xlu1 %861  ;;  %2211 = vperm.xlu0 %2665, %v2483_v27   ;;  %v909_v52 = vcvt.f32.s32 %v5276_v32  ;;  %v880_v40 = vshll.u32 %v879_v50, 16  ;;  %v1029_v61 = vcvt.f32.s32 %v4123_v10  ;;  %v5277_v10 = vld [vmem:[#allocation40_spill] sm:$0xff]  ;;  %v5278_v27 = vld [vmem:[#allocation35_spill] sm:$0xff]  ;;  %v1354_v50 = vld [vmem:[%s4935_s1 + $0x38] sm:$0xff] }
 0x216   :  { %v863_v41 = vcvt.f32.s32 %v862_v37  ;;  %v997_v6 = vpop.xlane.xlu0 %996  ;;  %vm1389_vm0 = vcmp.eq.s32.totalorder %v851_v57, %v1351_v1  ;;  %v2036_v59 = vadd.f32 %v2035_v8, %v2034_v34  ;;  %v2156_v53 = vrot.slane %v2155_v25, 1 }
 0x217   :  { %v998_v28 = vcvt.f32.s32 %v997_v6  ;;  %v2477_v45 = vsel %vm1389_vm0, 1.0, %v5162_v3  ;;  %vm1397_vm15 = vcmp.eq.s32.totalorder %v971_v14, %v1359_v38  ;;  %v908_v11 = vcvt.f32.s32 %v4661_v7 }
 0x218   :  { %v866_v15 = vadd.s32 %v865_v19, %v863_v41  ;;  %2181 = vperm.xlu1 %2671, %v2477_v45   ;;  %v2485_v51 = vsel %vm1397_vm15, 1.0, %v5162_v3  ;;  %2038 = vst.msk [vmem:[%s4936_s2] sm:$0x1] %vm2037_vm2, %v2036_v59  ;;  %v2157_v56 = vadd.f32 %v2156_v53, %v2155_v25  ;;  %v910_v16 = vshll.u32 %v909_v52, 16  ;;  %v1363_v41 = vld [vmem:[%s4935_s1 + $0x80] sm:$0xff] }
 0x219   :  { %v1001_v49 = vadd.s32 %v1000_v35, %v998_v28  ;;  %v877_v4 = vpop.xlane.xlu1 %876  ;;  %2221 = vperm.xlu0 %2665, %v2485_v51   ;;  %v924_v47 = vcvt.f32.s32 %v5277_v10  ;;  %v895_v57 = vshll.u32 %v894_v36, 16  ;;  %v1059_v38 = vcvt.f32.s32 %v5278_v27  ;;  %v1355_v28 = vld [vmem:[%s4935_s1 + $0x40] sm:$0xff]  ;;  %v1356_v36 = vld [vmem:[%s4935_s1 + $0x48] sm:$0xff] }
 0x21a   :  { %v878_v31 = vcvt.f32.s32 %v877_v4  ;;  %vm1390_vm3 = vcmp.eq.s32.totalorder %v866_v15, %v1352_v26  ;;  %2158 = vst.msk [vmem:[%s4936_s2 + $0x1] sm:$0x1] %vm2037_vm2, %v2157_v56  ;;  %v1030_v7 = vshll.u32 %v1029_v61, 16  ;;  %v911_v14 = vadd.s32 %v910_v16, %v908_v11  ;;  %v5280_v56 = vld [vmem:[#allocation38_spill] sm:$0xff] }
 0x21b   :  { %v2478_v46 = vsel %vm1390_vm3, 1.0, %v5162_v3  ;;  %vm1399_vm4 = vcmp.eq.s32.totalorder %v1001_v49, %v1361_v18  ;;  %v925_v6 = vshll.u32 %v924_v47, 16  ;;  %v1060_v45 = vshll.u32 %v1059_v38, 16  ;;  %v5279_v18 = vld [vmem:[#allocation36_spill] sm:$0xff] }
 0x21c   :  { %v881_v44 = vadd.s32 %v880_v40, %v878_v31  ;;  %2186 = vperm.xlu1 %2671, %v2478_v46   ;;  %v2487_v2 = vsel %vm1399_vm4, 1.0, %v5162_v3  ;;  %v954_v26 = vcvt.f32.s32 %v4161_v24  ;;  %v1089_v59 = vcvt.f32.s32 %v5279_v18  ;;  %v1365_v49 = vld [vmem:[%s4935_s1 + $0x90] sm:$0xff]  ;;  %v5281_v46 = vld [vmem:[#allocation2_spill] sm:$0xff] }
 0x21d   :  { %v892_v1 = vpop.xlane.xlu1 %891  ;;  %2231 = vperm.xlu0 %2665, %v2487_v2   ;;  %vm1393_vm8 = vcmp.eq.s32.totalorder %v911_v14, %v1355_v28  ;;  %v984_v61 = vcvt.f32.s32 %v5280_v56  ;;  %v1371_v56 = vld [vmem:[%s4935_s1 + $0xc0] sm:$0xff] }
 0x21e   :  { %v893_v34 = vcvt.f32.s32 %v892_v1  ;;  %v1027_v43 = vpop.xlane.xlu0 %1026  ;;  %vm1391_vm5 = vcmp.eq.s32.totalorder %v881_v44, %v1353_v39  ;;  %v955_v31 = vshll.u32 %v954_v26, 16  ;;  %v1119_v39 = vcvt.f32.s32 %v5281_v46  ;;  %v1362_v46 = vld [vmem:[%s4935_s1 + $0x78] sm:$0xff] }
 0x21f   :  { %v1028_v19 = vcvt.f32.s32 %v1027_v43  ;;  %v2479_v35 = vsel %vm1391_vm5, 1.0, %v5162_v3  ;;  %v1090_v2 = vshll.u32 %v1089_v59, 16  ;;  %v2481_v10 = vsel %vm1393_vm8, 1.0, %v5162_v3 }
 0x220   :  { %v896_v37 = vadd.s32 %v895_v57, %v893_v34  ;;  %2191 = vperm.xlu1 %2671, %v2479_v35   ;;  %v1367_v57 = vld [vmem:[%s4935_s1 + $0xa0] sm:$0xff]  ;;  %v1358_v34 = vld [vmem:[%s4935_s1 + $0x58] sm:$0xff]  ;;  %v985_v43 = vshll.u32 %v984_v61, 16  ;;  %v1044_v59 = vcvt.f32.s32 %v4241_v12 }
 0x221   :  { %v1031_v8 = vadd.s32 %v1030_v7, %v1028_v19  ;;  %v922_v25 = vpop.xlane.xlu1 %921  ;;  %v1120_v7 = vshll.u32 %v1119_v39, 16  ;;  %v5282_v19 = vld [vmem:[#allocation20_spill] sm:$0xff] }
 0x222   :  { %v923_v15 = vcvt.f32.s32 %v922_v25  ;;  %v1057_v51 = vpop.xlane.xlu0 %1056  ;;  %vm1392_vm6 = vcmp.eq.s32.totalorder %v896_v37, %v1354_v50  ;;  %v1014_v35 = vcvt.f32.s32 %v5282_v19  ;;  %v5283_v37 = vld [vmem:[#allocation42_spill] sm:$0xff]  ;;  %v1045_v39 = vshll.u32 %v1044_v59, 16 }
 0x223   :  { %v1058_v53 = vcvt.f32.s32 %v1057_v51  ;;  %v2480_v32 = vsel %vm1392_vm6, 1.0, %v5162_v3  ;;  %vm1401_vm7 = vcmp.eq.s32.totalorder %v1031_v8, %v1363_v41  ;;  %v1149_v41 = vcvt.f32.s32 %v5283_v37  ;;  %v1360_v51 = vld [vmem:[%s4935_s1 + $0x68] sm:$0xff] }
 0x224   :  { %v926_v52 = vadd.s32 %v925_v6, %v923_v15  ;;  %2196 = vperm.xlu1 %2671, %v2480_v32   ;;  %v2489_v40 = vsel %vm1401_vm7, 1.0, %v5162_v3  ;;  %v1015_v18 = vshll.u32 %v1014_v35, 16  ;;  %v1364_v35 = vld [vmem:[%s4935_s1 + $0x88] sm:$0xff] }
 0x225   :  { %v1061_v4 = vadd.s32 %v1060_v45, %v1058_v53  ;;  %v952_v24 = vpop.xlane.xlu1 %951  ;;  %2241 = vperm.xlu0 %2665, %v2489_v40   ;;  %v1369_v45 = vld [vmem:[%s4935_s1 + $0xb0] sm:$0xff]  ;;  %v5284_v53 = vld [vmem:[#allocation3_spill] sm:$0xff] }
 0x226   :  { %v953_v11 = vcvt.f32.s32 %v952_v24  ;;  %v1087_v44 = vpop.xlane.xlu0 %1086  ;;  %vm1394_vm10 = vcmp.eq.s32.totalorder %v926_v52, %v1356_v36  ;;  %v1179_v32 = vcvt.f32.s32 %v5284_v53 }
 0x227   :  { %v1088_v16 = vcvt.f32.s32 %v1087_v44  ;;  %vm1403_vm9 = vcmp.eq.s32.totalorder %v1061_v4, %v1365_v49  ;;  %v2482_v8 = vsel %vm1394_vm10, 1.0, %v5162_v3  ;;  %v1150_v49 = vshll.u32 %v1149_v41, 16  ;;  %v5285_v44 = vld [vmem:[#allocation21_spill] sm:$0xff] }
 0x228   :  { %v956_v47 = vadd.s32 %v955_v31, %v953_v11  ;;  %2201 = vperm.xlu1 %2671, %v2481_v10   ;;  %v2491_v1 = vsel %vm1403_vm9, 1.0, %v5162_v3  ;;  %v1180_v11 = vshll.u32 %v1179_v32, 16  ;;  %v1239_v41 = vcvt.f32.s32 %v4289_v54  ;;  %v1366_v54 = vld [vmem:[%s4935_s1 + $0x98] sm:$0xff] }
 0x229   :  { %v1091_v27 = vadd.s32 %v1090_v2, %v1088_v16  ;;  %v982_v38 = vpop.xlane.xlu1 %981  ;;  %2251 = vperm.xlu0 %2665, %v2491_v1   ;;  %v1074_v2 = vcvt.f32.s32 %v5285_v44  ;;  %v1164_v44 = vcvt.f32.s32 %v4317_v23 }
 0x22a   :  { %v983_v50 = vcvt.f32.s32 %v982_v38  ;;  %v1117_v14 = vpop.xlane.xlu0 %1116  ;;  %vm1396_vm13 = vcmp.eq.s32.totalorder %v956_v47, %v1358_v34  ;;  %v5286_v47 = vld [vmem:[#allocation4_spill] sm:$0xff]  ;;  %v1240_v32 = vshll.u32 %v1239_v41, 16 }
 0x22b   :  { %v1118_v6 = vcvt.f32.s32 %v1117_v14  ;;  %vm1405_vm12 = vcmp.eq.s32.totalorder %v1091_v27, %v1367_v57  ;;  %v2484_v24 = vsel %vm1396_vm13, 1.0, %v5162_v3  ;;  %v1209_v1 = vcvt.f32.s32 %v5286_v47  ;;  %v5287_v14 = vld [vmem:[#allocation43_spill] sm:$0xff]  ;;  %v5290_v41 = vld [vmem:[#allocation44_spill] sm:$0xff] }
 0x22c   :  { %v986_v25 = vadd.s32 %v985_v43, %v983_v50  ;;  %2206 = vperm.xlu1 %2671, %v2482_v8   ;;  %v2493_v28 = vsel %vm1405_vm12, 1.0, %v5162_v3  ;;  %v1373_v43 = vld [vmem:[%s4935_s1 + $0xd0] sm:$0xff]  ;;  %v1075_v50 = vshll.u32 %v1074_v2, 16  ;;  %v1104_v37 = vcvt.f32.s32 %v5287_v14 }
 0x22d   :  { %v1121_v26 = vadd.s32 %v1120_v7, %v1118_v6  ;;  %v1012_v15 = vpop.xlane.xlu1 %1011  ;;  %2261 = vperm.xlu0 %2665, %v2493_v28   ;;  %v1299_v2 = vcvt.f32.s32 %v4324_v22  ;;  %v1370_v22 = vld [vmem:[%s4935_s1 + $0xb8] sm:$0xff] }
 0x22e   :  { %v1013_v52 = vcvt.f32.s32 %v1012_v15  ;;  %v1147_v40 = vpop.xlane.xlu0 %1146  ;;  %vm1398_vm14 = vcmp.eq.s32.totalorder %v986_v25, %v1360_v51  ;;  %v1210_v25 = vshll.u32 %v1209_v1, 16  ;;  %v1375_v51 = vld [vmem:[%s4935_s1 + $0xe0] sm:$0xff]  ;;  %v1105_v53 = vshll.u32 %v1104_v37, 16 }
 0x22f   :  { %v1148_v4 = vcvt.f32.s32 %v1147_v40  ;;  %vm1407_vm1 = vcmp.eq.s32.totalorder %v1121_v26, %v1369_v45  ;;  %v2486_v27 = vsel %vm1398_vm14, 1.0, %v5162_v3 }
 0x230   :  { %v1016_v36 = vadd.s32 %v1015_v18, %v1013_v52  ;;  %2216 = vperm.xlu1 %2671, %v2484_v24   ;;  %v2495_v31 = vsel %vm1407_vm1, 1.0, %v5162_v3  ;;  %v1134_v52 = vcvt.f32.s32 %v4299_v9  ;;  %v1368_v9 = vld [vmem:[%s4935_s1 + $0xa8] sm:$0xff] }
 0x231   :  { %v1151_v61 = vadd.s32 %v1150_v49, %v1148_v4  ;;  %v1042_v12 = vpop.xlane.xlu1 %1041  ;;  %2271 = vperm.xlu0 %2665, %v2495_v31   ;;  %v5288_v4 = vld [vmem:[#allocation23_spill] sm:$0xff] }
 0x232   :  { %v1043_v16 = vcvt.f32.s32 %v1042_v12  ;;  %v1177_v10 = vpop.xlane.xlu0 %1176  ;;  %vm1400_vm15 = vcmp.eq.s32.totalorder %v1016_v36, %v1362_v46  ;;  %v1269_v24 = vcvt.f32.s32 %v5288_v4  ;;  %v1377_v12 = vld [vmem:[%s4935_s1 + $0xf0] sm:$0xff] }
 0x233   :  { %v1178_v57 = vcvt.f32.s32 %v1177_v10  ;;  %vm1409_vm0 = vcmp.eq.s32.totalorder %v1151_v61, %v1371_v56  ;;  %v2488_v45 = vsel %vm1400_vm15, 1.0, %v5162_v3 }
 0x234   :  { %v1046_v38 = vadd.s32 %v1045_v39, %v1043_v16  ;;  %2226 = vperm.xlu1 %2671, %v2486_v27   ;;  %v2497_v34 = vsel %vm1409_vm0, 1.0, %v5162_v3  ;;  %v1270_v47 = vshll.u32 %v1269_v24, 16 }
 0x235   :  { %v1181_v7 = vadd.s32 %v1180_v11, %v1178_v57  ;;  %v1072_v19 = vpop.xlane.xlu1 %1071  ;;  %2281 = vperm.xlu0 %2665, %v2497_v34   ;;  %v1135_v11 = vshll.u32 %v1134_v52, 16  ;;  %v1379_v34 = vld [vmem:[%s4935_s1 + $0x100] sm:$0xff] }
 0x236   :  { %v1073_v6 = vcvt.f32.s32 %v1072_v19  ;;  %v1207_v8 = vpop.xlane.xlu0 %1206  ;;  %vm1402_vm4 = vcmp.eq.s32.totalorder %v1046_v38, %v1364_v35  ;;  %v1300_v19 = vshll.u32 %v1299_v2, 16  ;;  %v5289_v35 = vld [vmem:[#allocation6_spill] sm:$0xff] }
 0x237   :  { %v1208_v28 = vcvt.f32.s32 %v1207_v8  ;;  %vm1411_vm3 = vcmp.eq.s32.totalorder %v1181_v7, %v1373_v43  ;;  %v2490_v31 = vsel %vm1402_vm4, 1.0, %v5162_v3  ;;  %v1165_v7 = vshll.u32 %v1164_v44, 16 }
 0x238   :  { %v1076_v26 = vadd.s32 %v1075_v50, %v1073_v6  ;;  %2236 = vperm.xlu1 %2671, %v2488_v45   ;;  %v2499_v15 = vsel %vm1411_vm3, 1.0, %v5162_v3  ;;  %v1194_v50 = vcvt.f32.s32 %v5289_v35  ;;  %v1329_v6 = vcvt.f32.s32 %v5290_v41 }
 0x239   :  { %v1211_v18 = vadd.s32 %v1210_v25, %v1208_v28  ;;  %v1102_v59 = vpop.xlane.xlu1 %1101  ;;  %2291 = vperm.xlu0 %2665, %v2499_v15  }
 0x23a   :  { %v1103_v40 = vcvt.f32.s32 %v1102_v59  ;;  %v1237_v49 = vpop.xlane.xlu0 %1236  ;;  %vm1404_vm6 = vcmp.eq.s32.totalorder %v1076_v26, %v1366_v54  ;;  %v1381_v26 = vld [vmem:[%s4935_s1 + $0x110] sm:$0xff]  ;;  %v1195_v59 = vshll.u32 %v1194_v50, 16 }
 0x23b   :  { %v1238_v36 = vcvt.f32.s32 %v1237_v49  ;;  %vm1413_vm5 = vcmp.eq.s32.totalorder %v1211_v18, %v1375_v51  ;;  %v2492_v57 = vsel %vm1404_vm6, 1.0, %v5162_v3  ;;  %v1372_v18 = vld [vmem:[%s4935_s1 + $0xc8] sm:$0xff]  ;;  %v5291_v54 = vld [vmem:[#allocation24_spill] sm:$0xff] }
 0x23c   :  { %v1106_v56 = vadd.s32 %v1105_v53, %v1103_v40  ;;  %2246 = vperm.xlu1 %2671, %v2490_v31   ;;  %v2501_v61 = vsel %vm1413_vm5, 1.0, %v5162_v3  ;;  %v1224_v53 = vcvt.f32.s32 %v5291_v54  ;;  %v1330_v40 = vshll.u32 %v1329_v6, 16  ;;  %v1383_v31 = vld [vmem:[%s4935_s1 + $0x120] sm:$0xff]  ;;  %v1380_v6 = vld [vmem:[%s4935_s1 + $0x108] sm:$0xff] }
 0x23d   :  { %v1241_v46 = vadd.s32 %v1240_v32, %v1238_v36  ;;  %v1132_v39 = vpop.xlane.xlu1 %1131  ;;  %2301 = vperm.xlu0 %2665, %v2501_v61  }
 0x23e   :  { %v1133_v16 = vcvt.f32.s32 %v1132_v39  ;;  %v1267_v10 = vpop.xlane.xlu0 %1266  ;;  %vm1406_vm8 = vcmp.eq.s32.totalorder %v1106_v56, %v1368_v9  ;;  %v5292_v39 = vld [vmem:[#allocation25_spill] sm:$0xff] }
 0x23f   :  { %v1268_v1 = vcvt.f32.s32 %v1267_v10  ;;  %vm1415_vm7 = vcmp.eq.s32.totalorder %v1241_v46, %v1377_v12  ;;  %v2494_v25 = vsel %vm1406_vm8, 1.0, %v5162_v3  ;;  %v1374_v12 = vld [vmem:[%s4935_s1 + $0xd8] sm:$0xff]  ;;  %v1225_v46 = vshll.u32 %v1224_v53, 16 }
 0x240   :  { %v1136_v27 = vadd.s32 %v1135_v11, %v1133_v16  ;;  %2256 = vperm.xlu1 %2671, %v2492_v57   ;;  %v2503_v38 = vsel %vm1415_vm7, 1.0, %v5162_v3  ;;  %v1254_v9 = vcvt.f32.s32 %v5292_v39  ;;  %v5293_v57 = vld [vmem:[#allocation48_spill] sm:$0xff] }
 0x241   :  { %v1271_v43 = vadd.s32 %v1270_v47, %v1268_v1  ;;  %v1162_v23 = vpop.xlane.xlu1 %1161  ;;  %2311 = vperm.xlu0 %2665, %v2503_v38   ;;  %v1376_v47 = vld [vmem:[%s4935_s1 + $0xe8] sm:$0xff] }
 0x242   :  { %v1163_v14 = vcvt.f32.s32 %v1162_v23  ;;  %v1297_v37 = vpop.xlane.xlu0 %1296  ;;  %vm1408_vm10 = vcmp.eq.s32.totalorder %v1136_v27, %v1370_v22  ;;  %v1255_v1 = vshll.u32 %v1254_v9, 16  ;;  %v1284_v27 = vcvt.f32.s32 %v5293_v57  ;;  %v1378_v22 = vld [vmem:[%s4935_s1 + $0xf8] sm:$0xff]  ;;  %v5297_v9 = vld [vmem:[#allocation60_spill] sm:$0xff] }
 0x243   :  { %v1298_v8 = vcvt.f32.s32 %v1297_v37  ;;  %vm1417_vm9 = vcmp.eq.s32.totalorder %v1271_v43, %v1379_v34  ;;  %v2496_v4 = vsel %vm1408_vm10, 1.0, %v5162_v3 }
 0x244   :  { %v1166_v28 = vadd.s32 %v1165_v7, %v1163_v14  ;;  %2266 = vperm.xlu1 %2671, %v2494_v25   ;;  %v2505_v45 = vsel %vm1417_vm9, 1.0, %v5162_v3  ;;  %v1285_v7 = vshll.u32 %v1284_v27, 16  ;;  %v5295_v25 = vld [vmem:[#allocation9_spill] sm:$0xff] }
 0x245   :  { %v1301_v15 = vadd.s32 %v1300_v19, %v1298_v8  ;;  %v1192_v51 = vpop.xlane.xlu1 %1191  ;;  %2321 = vperm.xlu0 %2665, %v2505_v45   ;;  %v5294_v19 = vld [vmem:[#allocation26_spill] sm:$0xff] }
 0x246   :  { %v1193_v32 = vcvt.f32.s32 %v1192_v51  ;;  %v1327_v52 = vpop.xlane.xlu0 %1326  ;;  %vm1410_vm13 = vcmp.eq.s32.totalorder %v1166_v28, %v1372_v18  ;;  %v1314_v35 = vcvt.f32.s32 %v5294_v19  ;;  %v1344_v28 = vcvt.f32.s32 %v5295_v25  ;;  %v1382_v18 = vld [vmem:[%s4935_s1 + $0x118] sm:$0xff] }
 0x247   :  { %v1328_v49 = vcvt.f32.s32 %v1327_v52  ;;  %vm1419_vm12 = vcmp.eq.s32.totalorder %v1301_v15, %v1381_v26  ;;  %v2498_v44 = vsel %vm1410_vm13, 1.0, %v5162_v3  ;;  %v1384_v52 = vld [vmem:[%s4935_s1 + $0x128] sm:$0xff] }
 0x248   :  { %v1196_v24 = vadd.s32 %v1195_v59, %v1193_v32  ;;  %2276 = vperm.xlu1 %2671, %v2496_v4   ;;  %v2507_v36 = vsel %vm1419_vm12, 1.0, %v5162_v3  ;;  %v1315_v8 = vshll.u32 %v1314_v35, 16  ;;  %v1345_v59 = vshll.u32 %v1344_v28, 16  ;;  %v5303_v28 = vld [vmem:[#allocation34_spill] sm:$0xff] }
 0x249   :  { %v1331_v56 = vadd.s32 %v1330_v40, %v1328_v49  ;;  %v1222_v61 = vpop.xlane.xlu1 %1221  ;;  %2331 = vperm.xlu0 %2665, %v2507_v36  }
 0x24a   :  { %v1223_v11 = vcvt.f32.s32 %v1222_v61  ;;  %vm1412_vm14 = vcmp.eq.s32.totalorder %v1196_v24, %v1374_v12 }
 0x24b   :  { %vm1421_vm1 = vcmp.eq.s32.totalorder %v1331_v56, %v1383_v31  ;;  %v2500_v34 = vsel %vm1412_vm14, 1.0, %v5162_v3 }
 0x24c   :  { %v1226_v2 = vadd.s32 %v1225_v46, %v1223_v11  ;;  %2286 = vperm.xlu1 %2671, %v2498_v44   ;;  %v2509_v16 = vsel %vm1421_vm1, 1.0, %v5162_v3  ;;  %v5296_v46 = vld [vmem:[#allocation61_spill] sm:$0xff]  ;;  %v5298_v44 = vld [vmem:[#allocation63_spill] sm:$0xff] }
 0x24d   :  { %v1252_v10 = vpop.xlane.xlu1 %1251  ;;  %2341 = vperm.xlu0 %2665, %v2509_v16  }
 0x24e   :  { %v1253_v38 = vcvt.f32.s32 %v1252_v10  ;;  %vm1414_vm0 = vcmp.eq.s32.totalorder %v1226_v2, %v1376_v47  ;;  %v2668_v24 = vpop.permute.xlu0 %2667 }
 0x24f   :  { %v2502_v14 = vsel %vm1414_vm0, 1.0, %v5162_v3  ;;  %v2670_v31 = vunpack.i.h.bf16 %v2668_v24  ;;  %v2669_v56 = vunpack.i.l.bf16 %v2668_v24 }
 0x250   :  { %v1256_v43 = vadd.s32 %v1255_v1, %v1253_v38  ;;  %2296 = vperm.xlu1 %2671, %v2500_v34   ;;  %v5299_v1 = vld [vmem:[#allocation64_spill] sm:$0xff]  ;;  %v5300_v38 = vld [vmem:[#allocation13_spill] sm:$0xff] }
 0x251   :  { %v1282_v23 = vpop.xlane.xlu1 %1281  ;;  %v2350_v39 = vmul.f32 %v2670_v31, %v5296_v46  ;;  %v2349_v11 = vmul.f32 %v2669_v56, %v5297_v9  ;;  %v5306_v56 = vld [vmem:[#allocation41_spill] sm:$0xff] }
 0x252   :  { %v1283_v50 = vcvt.f32.s32 %v1282_v23  ;;  %vm1416_vm15 = vcmp.eq.s32.totalorder %v1256_v43, %v1378_v22 }
 0x253   :  { %v2504_v26 = vsel %vm1416_vm15, 1.0, %v5162_v3  ;;  %v2388_v47 = vsel %vm1955_vm11, %v2350_v39, 0.0 }
 0x254   :  { %v1286_v37 = vadd.s32 %v1285_v7, %v1283_v50  ;;  %2306 = vperm.xlu1 %2671, %v2502_v14   ;;  %v5301_v7 = vld [vmem:[#allocation69_spill] sm:$0xff] }
 0x255   :  { %v1312_v41 = vpop.xlane.xlu1 %1311 }
 0x256   :  { %v1313_v45 = vcvt.f32.s32 %v1312_v41  ;;  %vm1418_vm3 = vcmp.eq.s32.totalorder %v1286_v37, %v1380_v6  ;;  %v5302_v37 = vld [vmem:[#allocation33_spill] sm:$0xff] }
 0x257   :  { %v2506_v53 = vsel %vm1418_vm3, 1.0, %v5162_v3 }
 0x258   :  { %v1316_v15 = vadd.s32 %v1315_v8, %v1313_v45  ;;  %2316 = vperm.xlu1 %2671, %v2504_v26  }
 0x259   :  { %v1342_v51 = vpop.xlane.xlu1 %1341 }
 0x25a   :  { %v1343_v54 = vcvt.f32.s32 %v1342_v51  ;;  %vm1420_vm4 = vcmp.eq.s32.totalorder %v1316_v15, %v1382_v18 }
 0x25b   :  { %v2508_v40 = vsel %vm1420_vm4, 1.0, %v5162_v3 }
 0x25c   :  { %v1346_v32 = vadd.s32 %v1345_v59, %v1343_v54  ;;  %2326 = vperm.xlu1 %2671, %v2506_v53   ;;  %v5304_v53 = vld [vmem:[#allocation37_spill] sm:$0xff] }
 0x25d   :  { %v2172_v4 = vpop.permute.xlu1 %2171 }
 0x25e   :  { %vm1422_vm5 = vcmp.eq.s32.totalorder %v1346_v32, %v1384_v52  ;;  %v2351_v2 = vmul.f32 %v5298_v44, %v2172_v4 }
 0x25f   :  { %v2510_v49 = vsel %vm1422_vm5, 1.0, %v5162_v3  ;;  %v2387_v3 = vsel %vm1955_vm11, %v2349_v11, 0.0 }
 0x260   :  { %2336 = vperm.xlu1 %2671, %v2508_v40   ;;  %v2390_v27 = vsel %vm1955_vm11, %v2351_v2, 0.0  ;;  %v2389_v43 = vadd.f32 %v2388_v47, %v2387_v3  ;;  %v5308_v3 = vld [vmem:[#allocation5_spill] sm:$0xff] }
 0x262   :  { %v2391_v50 = vadd.f32 %v2390_v27, %v2389_v43 }
 0x264   :  { %2346 = vperm.xlu1 %2671, %v2510_v49  }
 0x293   :  { %v2177_v36 = vpop.permute.xlu1 %2176 }
 0x294   :  { %v2212_v61 = vpop.permute.xlu0 %2211  ;;  %v2352_v57 = vmul.f32 %v5299_v1, %v2177_v36  ;;  %v5305_v36 = vld [vmem:[#allocation67_spill] sm:$0xff] }
 0x295   :  { %v2359_v31 = vmul.f32 %v5305_v36, %v2212_v61 }
 0x296   :  { %v2392_v22 = vsel %vm1955_vm11, %v2352_v57, 0.0 }
 0x297   :  { %v2182_v12 = vpop.permute.xlu1 %2181  ;;  %v2393_v6 = vadd.f32 %v2392_v22, %v2391_v50  ;;  %v2406_v2 = vsel %vm1955_vm11, %v2359_v31, 0.0 }
 0x298   :  { %v2222_v16 = vpop.permute.xlu0 %2221  ;;  %v2353_v34 = vmul.f32 %v5300_v38, %v2182_v12 }
 0x29a   :  { %v2394_v14 = vsel %vm1955_vm11, %v2353_v34, 0.0 }
 0x29b   :  { %v2187_v10 = vpop.permute.xlu1 %2186  ;;  %v2395_v15 = vadd.f32 %v2394_v14, %v2393_v6  ;;  %v5311_v6 = vld [vmem:[#allocation39_spill] sm:$0xff] }
 0x29c   :  { %v2354_v19 = vmul.f32 %v5301_v7, %v2187_v10  ;;  %v2232_v35 = vpop.permute.xlu0 %2231  ;;  %v5307_v10 = vld [vmem:[#allocation29_spill] sm:$0xff]  ;;  %v5310_v7 = vld [vmem:[#allocation46_spill] sm:$0xff] }
 0x29d   :  { %v2361_v47 = vmul.f32 %v5307_v10, %v2222_v16  ;;  %v5316_v10 = vld [vmem:[#allocation45_spill] sm:$0xff] }
 0x29e   :  { %v2396_v25 = vsel %vm1955_vm11, %v2354_v19, 0.0 }
 0x29f   :  { %v2192_v23 = vpop.permute.xlu1 %2191  ;;  %v2397_v18 = vadd.f32 %v2396_v25, %v2395_v15  ;;  %v2410_v43 = vsel %vm1955_vm11, %v2361_v47, 0.0  ;;  %v5312_v25 = vld [vmem:[#allocation7_spill] sm:$0xff] }
 0x2a0   :  { %v2355_v41 = vmul.f32 %v5302_v37, %v2192_v23  ;;  %v5309_v23 = vld [vmem:[#allocation32_spill] sm:$0xff] }
 0x2a1   :  { %v2363_v22 = vmul.f32 %v5309_v23, %v2232_v35 }
 0x2a2   :  { %v2398_v51 = vsel %vm1955_vm11, %v2355_v41, 0.0 }
 0x2a3   :  { %v2197_v8 = vpop.permute.xlu1 %2196  ;;  %v2399_v40 = vadd.f32 %v2398_v51, %v2397_v18  ;;  %v2414_v16 = vsel %vm1955_vm11, %v2363_v22, 0.0 }
 0x2a4   :  { %v2356_v45 = vmul.f32 %v5303_v28, %v2197_v8  ;;  %v2242_v26 = vpop.permute.xlu0 %2241 }
 0x2a5   :  { %v2365_v8 = vmul.f32 %v5311_v6, %v2242_v26 }
 0x2a6   :  { %v2400_v54 = vsel %vm1955_vm11, %v2356_v45, 0.0 }
 0x2a7   :  { %v2202_v59 = vpop.permute.xlu1 %2201  ;;  %v2401_v4 = vadd.f32 %v2400_v54, %v2399_v40  ;;  %v2418_v35 = vsel %vm1955_vm11, %v2365_v8, 0.0  ;;  %v5313_v54 = vld [vmem:[#allocation22_spill] sm:$0xff] }
 0x2a8   :  { %v2357_v32 = vmul.f32 %v5304_v53, %v2202_v59  ;;  %v2252_v52 = vpop.permute.xlu0 %2251 }
 0x2a9   :  { %v2367_v53 = vmul.f32 %v5313_v54, %v2252_v52 }
 0x2aa   :  { %v2402_v49 = vsel %vm1955_vm11, %v2357_v32, 0.0  ;;  %v5314_v32 = vld [vmem:[#allocation49_spill] sm:$0xff] }
 0x2ab   :  { %v2207_v24 = vpop.permute.xlu1 %2206  ;;  %v2403_v46 = vadd.f32 %v2402_v49, %v2401_v4  ;;  %v2422_v31 = vsel %vm1955_vm11, %v2367_v53, 0.0 }
 0x2ac   :  { %v2358_v12 = vmul.f32 %v5306_v56, %v2207_v24  ;;  %v2262_v39 = vpop.permute.xlu0 %2261  ;;  %v5315_v56 = vld [vmem:[#allocation47_spill] sm:$0xff] }
 0x2ae   :  { %v2404_v9 = vsel %vm1955_vm11, %v2358_v12, 0.0  ;;  %v2369_v12 = vmul.f32 %v5315_v56, %v2262_v39 }
 0x2af   :  { %v2405_v11 = vadd.f32 %v2404_v9, %v2403_v46  ;;  %v2217_v44 = vpop.permute.xlu1 %2216 }
 0x2b0   :  { %v2360_v1 = vmul.f32 %v5308_v3, %v2217_v44  ;;  %v2272_v34 = vpop.permute.xlu0 %2271  ;;  %v2426_v52 = vsel %vm1955_vm11, %v2369_v12, 0.0 }
 0x2b1   :  { %v2407_v57 = vadd.f32 %v2406_v2, %v2405_v11  ;;  %v2371_v47 = vmul.f32 %v5316_v10, %v2272_v34 }
 0x2b2   :  { %v2408_v27 = vsel %vm1955_vm11, %v2360_v1, 0.0 }
 0x2b3   :  { %v2409_v38 = vadd.f32 %v2408_v27, %v2407_v57  ;;  %v2227_v61 = vpop.permute.xlu1 %2226  ;;  %v2430_v39 = vsel %vm1955_vm11, %v2371_v47, 0.0 }
 0x2b4   :  { %v2362_v19 = vmul.f32 %v5310_v7, %v2227_v61  ;;  %v2282_v45 = vpop.permute.xlu0 %2281 }
 0x2b5   :  { %v2411_v50 = vadd.f32 %v2410_v43, %v2409_v38 }
 0x2b6   :  { %v2412_v14 = vsel %vm1955_vm11, %v2362_v19, 0.0 }
 0x2b7   :  { %v2413_v37 = vadd.f32 %v2412_v14, %v2411_v50  ;;  %v2237_v41 = vpop.permute.xlu1 %2236 }
 0x2b8   :  { %v2364_v28 = vmul.f32 %v5312_v25, %v2237_v41  ;;  %v2292_v24 = vpop.permute.xlu0 %2291 }
 0x2b9   :  { %v2415_v15 = vadd.f32 %v2414_v16, %v2413_v37  ;;  %v2375_v14 = vmul.f32 %v4455_v29, %v2292_v24 }
 0x2ba   :  { %v2416_v51 = vsel %vm1955_vm11, %v2364_v28, 0.0 }
 0x2bb   :  { %v2417_v18 = vadd.f32 %v2416_v51, %v2415_v15  ;;  %v2247_v59 = vpop.permute.xlu1 %2246  ;;  %v2438_v25 = vsel %vm1955_vm11, %v2375_v14, 0.0 }
 0x2bc   :  { %v2366_v40 = vmul.f32 %v5314_v32, %v2247_v59  ;;  %v2302_v1 = vpop.permute.xlu0 %2301 }
 0x2bd   :  { %v2419_v49 = vadd.f32 %v2418_v35, %v2417_v18 }
 0x2be   :  { %v2420_v4 = vsel %vm1955_vm11, %v2366_v40, 0.0 }
 0x2bf   :  { %v2421_v36 = vadd.f32 %v2420_v4, %v2419_v49  ;;  %v2257_v26 = vpop.permute.xlu1 %2256 }
 0x2c0   :  { %v2368_v46 = vmul.f32 %v4484_v30, %v2257_v26  ;;  %v5317_v30 = vld [vmem:[#allocation8_spill] sm:$0xff]  ;;  %v2312_v19 = vpop.permute.xlu0 %2311 }
 0x2c1   :  { %v2423_v9 = vadd.f32 %v2422_v31, %v2421_v36  ;;  %v2373_v43 = vmul.f32 %v5317_v30, %v2282_v45 }
 0x2c2   :  { %v2424_v11 = vsel %vm1955_vm11, %v2368_v46, 0.0 }
 0x2c3   :  { %v2425_v44 = vadd.f32 %v2424_v11, %v2423_v9  ;;  %v2267_v2 = vpop.permute.xlu1 %2266 }
 0x2c4   :  { %v2370_v3 = vmul.f32 %v4496_v60, %v2267_v2  ;;  %v2434_v60 = vsel %vm1955_vm11, %v2373_v43, 0.0  ;;  %v2322_v45 = vpop.permute.xlu0 %2321 }
 0x2c5   :  { %v2427_v57 = vadd.f32 %v2426_v52, %v2425_v44  ;;  %v2381_v49 = vmul.f32 %v4530_v62, %v2322_v45 }
 0x2c6   :  { %v2428_v27 = vsel %vm1955_vm11, %v2370_v3, 0.0 }
 0x2c7   :  { %v2429_v38 = vadd.f32 %v2428_v27, %v2427_v57  ;;  %v2277_v61 = vpop.permute.xlu1 %2276 }
 0x2c8   :  { %v2372_v23 = vmul.f32 %v4537_v63, %v2277_v61  ;;  %v2377_v63 = vmul.f32 %v4504_v5, %v2302_v1  ;;  %v2332_v32 = vpop.permute.xlu0 %2331 }
 0x2c9   :  { %v2431_v22 = vadd.f32 %v2430_v39, %v2429_v38 }
 0x2ca   :  { %v2432_v7 = vsel %vm1955_vm11, %v2372_v23, 0.0  ;;  %v2442_v29 = vsel %vm1955_vm11, %v2377_v63, 0.0 }
 0x2cb   :  { %v2433_v50 = vadd.f32 %v2432_v7, %v2431_v22  ;;  %v2287_v34 = vpop.permute.xlu1 %2286 }
 0x2cc   :  { %v2374_v37 = vmul.f32 %v4572_v21, %v2287_v34  ;;  %v2379_v21 = vmul.f32 %v4522_v0, %v2312_v19  ;;  %v2450_v0 = vsel %vm1955_vm11, %v2381_v49, 0.0  ;;  %v2342_v12 = vpop.permute.xlu0 %2341 }
 0x2cd   :  { %v2435_v41 = vadd.f32 %v2434_v60, %v2433_v50 }
 0x2ce   :  { %v2436_v16 = vsel %vm1955_vm11, %v2374_v37, 0.0 }
 0x2cf   :  { %v2437_v6 = vadd.f32 %v2436_v16, %v2435_v41  ;;  %v2297_v8 = vpop.permute.xlu1 %2296 }
 0x2d0   :  { %v2376_v28 = vmul.f32 %v4583_v13, %v2297_v8  ;;  %v2446_v13 = vsel %vm1955_vm11, %v2379_v21, 0.0 }
 0x2d1   :  { %v2439_v15 = vadd.f32 %v2438_v25, %v2437_v6 }
 0x2d2   :  { %v2440_v51 = vsel %vm1955_vm11, %v2376_v28, 0.0 }
 0x2d3   :  { %v2441_v18 = vadd.f32 %v2440_v51, %v2439_v15  ;;  %v2307_v59 = vpop.permute.xlu1 %2306 }
 0x2d4   :  { %v2378_v35 = vmul.f32 %v4595_v42, %v2307_v59  ;;  %v2383_v42 = vmul.f32 %v4608_v33, %v2332_v32 }
 0x2d5   :  { %v2443_v54 = vadd.f32 %v2442_v29, %v2441_v18 }
 0x2d6   :  { %v2444_v53 = vsel %vm1955_vm11, %v2378_v35, 0.0  ;;  %v2454_v62 = vsel %vm1955_vm11, %v2383_v42, 0.0 }
 0x2d7   :  { %v2445_v40 = vadd.f32 %v2444_v53, %v2443_v54  ;;  %v2317_v5 = vpop.permute.xlu1 %2316 }
 0x2d8   :  { %v2380_v4 = vmul.f32 %v4614_v20, %v2317_v5  ;;  %v2385_v20 = vmul.f32 %v4638_v55, %v2342_v12 }
 0x2d9   :  { %v2447_v24 = vadd.f32 %v2446_v13, %v2445_v40 }
 0x2da   :  { %v2448_v36 = vsel %vm1955_vm11, %v2380_v4, 0.0  ;;  %v2458_v33 = vsel %vm1955_vm11, %v2385_v20, 0.0 }
 0x2db   :  { %v2449_v26 = vadd.f32 %v2448_v36, %v2447_v24  ;;  %v2327_v31 = vpop.permute.xlu1 %2326 }
 0x2dc   :  { %v2382_v56 = vmul.f32 %v4626_v17, %v2327_v31 }
 0x2dd   :  { %v2451_v46 = vadd.f32 %v2450_v0, %v2449_v26 }
 0x2de   :  { %v2452_v9 = vsel %vm1955_vm11, %v2382_v56, 0.0 }
 0x2df   :  { %v2453_v11 = vadd.f32 %v2452_v9, %v2451_v46  ;;  %v2337_v44 = vpop.permute.xlu1 %2336 }
 0x2e0   :  { %v2384_v2 = vmul.f32 %v4645_v58, %v2337_v44 }
 0x2e1   :  { %v2455_v52 = vadd.f32 %v2454_v62, %v2453_v11 }
 0x2e2   :  { %v2456_v10 = vsel %vm1955_vm11, %v2384_v2, 0.0 }
 0x2e3   :  { %v2457_v47 = vadd.f32 %v2456_v10, %v2455_v52  ;;  %v2347_v3 = vpop.permute.xlu1 %2346 }
 0x2e4   :  { %v2386_v17 = vmul.f32 %v4664_v48, %v2347_v3 }
 0x2e5   :  { %v2459_v1 = vadd.f32 %v2458_v33, %v2457_v47 }
 0x2e6   :  { %v2460_v57 = vsel %vm1955_vm11, %v2386_v17, 0.0 }
 0x2e7   :  { %v2461_v27 = vadd.f32 %v2460_v57, %v2459_v1 }
 0x2e9   :  { %v2462_v38 = vrot.slane %v2461_v27, 4 }
 0x2eb   :  { %v2463_v61 = vadd.f32 %v2462_v38, %v2461_v27 }
 0x2ed   :  { %v2464_v39 = vrot.slane %v2463_v61, 2 }
 0x2ef   :  { %v2465_v30 = vadd.f32 %v2464_v39, %v2463_v61 }
 0x2f1   :  { %v2466_v55 = vrot.slane %v2465_v30, 1 }
 0x2f3   :  { %v2467_v43 = vadd.f32 %v2466_v55, %v2465_v30 }
 0x2f5   :  { %2468 = vst.msk [vmem:[%s4936_s2 + $0x2] sm:$0x1] %vm2037_vm2, %v2467_v43 }

</bundles_post_ra>
